<compile_context>
chip_gen: v7x
topology: tpu7x:2x2x1
jax: 0.10.0
libtpu: 0.0.40
codegen_flags: <defaults>
</compile_context>

<pallas_src>
import math

import jax
import jax.numpy as jnp
from jax.experimental import pallas as pl
from jax.experimental.pallas import tpu as pltpu

EPS = 1e-5        # PyTorch LayerNorm default eps
NEG_BIG = -1e30   # additive masking bias (avoids -inf - -inf = NaN)


def _layernorm(x, g, b):
    mu = jnp.mean(x, axis=-1, keepdims=True)
    var = jnp.mean(jnp.square(x - mu), axis=-1, keepdims=True)
    return (x - mu) * jax.lax.rsqrt(var + EPS) * g + b


def _gelu(x):
    # exact erf-based GELU (matches PyTorch activation='gelu')
    return 0.5 * x * (1.0 + jax.lax.erf(x * 0.7071067811865476))


def _make_kernel(hidden):
    def kernel(x_ref, tree_ref, mask_ref,
               cand_ln_ref, cand_W_ref, tree_ln_ref, tree_W_ref,
               glob_Wa_ref, glob_Wb_ref,
               Wqkv_ref, bqkv_ref, Wo_ref,
               W1_ref, b1_ref, W2_ref,
               vecH_ref, headWt_ref, bhead_ref, cross_ref,
               out_v_ref, out_c_ref):
        f32, bf16 = jnp.float32, jnp.bfloat16

        x = x_ref[0]          # (TBS, V)  f32
        tree = tree_ref[0]    # (TBS, Dt) f32 (tree state already repeated per row)
        mask = mask_ref[0]    # (1, TBS)  f32, 1.0 => padded position

        vh = vecH_ref[...]    # (11, H) packed f32 vectors
        cand_b, tree_b, glob_b, bo = vh[0:1], vh[1:2], vh[2:3], vh[3:4]
        n1_g, n1_b, b2 = vh[4:5], vh[5:6], vh[6:7]
        n2_g, n2_b, enc_g, enc_b = vh[7:8], vh[8:9], vh[9:10], vh[10:11]

        def mm(a_bf, w_ref):  # bf16 x bf16 -> f32 on the MXU
            return jnp.dot(a_bf, w_ref[...], preferred_element_type=f32)

        # ---- CandidateEmbeddingNet / TreeEmbeddingNet ----
        cln = cand_ln_ref[...]
        h = mm(_layernorm(x, cln[0:1], cln[1:2]).astype(bf16), cand_W_ref) + cand_b
        tln = tree_ln_ref[...]
        ts = mm(_layernorm(tree, tln[0:1], tln[1:2]).astype(bf16), tree_W_ref) + tree_b

        # ---- tree gate: cat((h, ts), -1) @ Wg == h@Wa + ts@Wb (flat, no reshape) ----
        h = mm(h.astype(bf16), glob_Wa_ref) + mm(ts.astype(bf16), glob_Wb_ref) + glob_b

        # ---- TransformerEncoderLayer (post-norm, nhead=1), fused QKV ----
        # 1/sqrt(H) is pre-folded into Wq / bq on the wrapper side.
        qkv = mm(h.astype(bf16), Wqkv_ref) + bqkv_ref[...]            # (TBS, 3H) f32
        qkv_bf = qkv.astype(bf16)                                     # single cast
        q = qkv_bf[:, :hidden]
        k = qkv_bf[:, hidden:2 * hidden]
        v = qkv_bf[:, 2 * hidden:]

        # flattened attention: one (TBS,TBS) matmul for all sequences of the
        # tile; cross-sequence terms and padded keys are knocked out with an
        # additive bias (block-diagonal constant + key-padding row).
        scores = jax.lax.dot_general(q, k, (((1,), (1,)), ((), ())),
                                     preferred_element_type=f32)      # q @ k^T
        scores = scores + cross_ref[...] + mask * NEG_BIG
        m = jnp.max(scores, axis=-1, keepdims=True)
        p = jnp.exp(scores - m)
        attn = p * pl.reciprocal(jnp.sum(p, axis=-1, keepdims=True), approx=True)
        ao = jnp.dot(attn.astype(bf16), v, preferred_element_type=f32)  # (TBS, H)
        ao = mm(ao.astype(bf16), Wo_ref) + bo

        h = _layernorm(h + ao, n1_g, n1_b)
        ff = mm(_gelu(mm(h.astype(bf16), W1_ref) + b1_ref[...]).astype(bf16),
                W2_ref) + b2
        h = _layernorm(h + ff, n2_g, n2_b)
        h = _layernorm(h, enc_g, enc_b)          # final encoder LayerNorm

        # ---- fused output heads: row 0 = value head (lin1@lin2), row 1 = classifier
        # contraction on the last dim of both operands (q@k^T pattern), so the
        # implicit transpose lands on the MXU weight path, not an XLU vxpose.
        heads = jax.lax.dot_general(headWt_ref[...], h.astype(bf16),
                                    (((1,), (1,)), ((), ())),
                                    preferred_element_type=f32) + bhead_ref[...]
        pad = mask > 0.5
        out_v_ref[0] = jnp.where(pad, -jnp.inf, heads[0:1])   # lane-dense (1, TBS)
        out_c_ref[0] = jnp.where(pad, -jnp.inf, heads[1:2])

    return kernel


def init_params(key, var_dim, node_dim, mip_dim, hidden, ff):
    """Deterministic synthetic init (Xavier-uniform style, gain=sqrt(2))."""
    dt = node_dim + mip_dim
    keys = iter(jax.random.split(key, 32))

    def xavier(shape):
        fan_in, fan_out = shape
        lim = math.sqrt(2.0) * math.sqrt(6.0 / (fan_in + fan_out))
        return jax.random.uniform(next(keys), shape, jnp.float32, -lim, lim)

    def bias(n):
        return jax.random.uniform(next(keys), (1, n), jnp.float32, -0.1, 0.1)

    ones = lambda n: jnp.ones((1, n), jnp.float32)
    zeros = lambda n: jnp.zeros((1, n), jnp.float32)

    return dict(
        cand_ln_g=ones(var_dim), cand_ln_b=zeros(var_dim),
        cand_W=xavier((var_dim, hidden)), cand_b=bias(hidden),
        tree_ln_g=ones(dt), tree_ln_b=zeros(dt),
        tree_W=xavier((dt, hidden)), tree_b=bias(hidden),
        glob_Wa=xavier((hidden, hidden)), glob_Wb=xavier((hidden, hidden)),
        glob_b=bias(hidden),
        Wq=xavier((hidden, hidden)), bq=bias(hidden),
        Wk=xavier((hidden, hidden)), bk=bias(hidden),
        Wv=xavier((hidden, hidden)), bv=bias(hidden),
        Wo=xavier((hidden, hidden)), bo=bias(hidden),
        n1_g=ones(hidden), n1_b=zeros(hidden),
        W1=xavier((hidden, ff)), b1=bias(ff),
        W2=xavier((ff, hidden)), b2=bias(hidden),
        n2_g=ones(hidden), n2_b=zeros(hidden),
        enc_g=ones(hidden), enc_b=zeros(hidden),
        lin1_W=xavier((hidden, hidden)), lin1_b=bias(hidden),
        lin2_W=xavier((hidden, 1)), lin2_b=bias(1),
        cls_W=xavier((hidden, 1)), cls_b=bias(1),
    )


def brant_forward(cands, padding_mask, node_state, mip_state, params, tile_b=None):
    f32, bf16 = jnp.float32, jnp.bfloat16
    n, s, v = cands.shape
    hidden = params["cand_W"].shape[1]
    ff_dim = params["W1"].shape[1]
    dt = params["tree_W"].shape[0]

    if tile_b is None:
        # TBS = tile_b*s: aim for a multiple of 128 (128 on small batches,
        # 256 on larger ones) so matmul M tiles are full and output stores are
        # unmasked lane-dense, while keeping the grid length >= 2 so both
        # v7x TensorCores get work.
        tbs_target = 256 if n * s >= 512 else 128
        tile_b = max(1, min(pl.cdiv(tbs_target, s), pl.cdiv(n, 2)))
    nb = pl.cdiv(n, tile_b)
    n_pad = nb * tile_b
    tbs = tile_b * s

    if n_pad != n:
        pad = n_pad - n
        cands = jnp.pad(cands, ((0, pad), (0, 0), (0, 0)))
        padding_mask = jnp.pad(padding_mask, ((0, pad), (0, 0)), constant_values=1)
        node_state = jnp.pad(node_state, ((0, pad), (0, 0)))
        mip_state = jnp.pad(mip_state, ((0, pad), (0, 0)))

    tree_in = jnp.concatenate([node_state, mip_state], axis=1).astype(f32)   # (Np, Dt)
    tree_rep = jnp.repeat(tree_in, s, axis=0)                                # (Np*S, Dt)
    mask_f = padding_mask.astype(f32)                                        # (Np, S)

    x_blk = cands.astype(f32).reshape(nb, tbs, v)
    tree_blk = tree_rep.reshape(nb, tbs, dt)
    mask_blk = mask_f.reshape(nb, 1, tbs)

    # additive block-diagonal bias: query row i may only attend to keys of its
    # own sequence (row i // s) -- identical for every grid step.
    seq_id = jnp.repeat(jnp.arange(tile_b, dtype=jnp.int32), s)
    cross_bias = jnp.where(seq_id[:, None] == seq_id[None, :],
                           0.0, NEG_BIG).astype(f32)                         # (TBS, TBS)

    # ---- one-time parameter fusion / packing (wrapper side) ----
    p = params
    inv_sqrt_h = 1.0 / math.sqrt(hidden)
    Wqkv = jnp.concatenate([p["Wq"] * inv_sqrt_h, p["Wk"], p["Wv"]], axis=1)  # (H, 3H)
    bqkv = jnp.concatenate([p["bq"] * inv_sqrt_h, p["bk"], p["bv"]], axis=1)  # (1, 3H)
    # no nonlinearity between lin1 and lin2 (dropout == identity in eval) -> fuse
    w_out = p["lin1_W"] @ p["lin2_W"]                                         # (H, 1)
    b_out = p["lin1_b"] @ p["lin2_W"] + p["lin2_b"]                           # (1, 1)
    head_Wt = jnp.concatenate([w_out, p["cls_W"]], axis=1).T                  # (2, H)
    b_head = jnp.concatenate([b_out, p["cls_b"]], axis=1).T                   # (2, 1)
    vecH = jnp.concatenate([p["cand_b"], p["tree_b"], p["glob_b"], p["bo"],
                            p["n1_g"], p["n1_b"], p["b2"],
                            p["n2_g"], p["n2_b"], p["enc_g"], p["enc_b"]],
                           axis=0)                                            # (11, H)
    cand_ln = jnp.concatenate([p["cand_ln_g"], p["cand_ln_b"]], axis=0)       # (2, V)
    tree_ln = jnp.concatenate([p["tree_ln_g"], p["tree_ln_b"]], axis=0)       # (2, Dt)

    plist = [
        cand_ln.astype(f32), p["cand_W"].astype(bf16),
        tree_ln.astype(f32), p["tree_W"].astype(bf16),
        p["glob_Wa"].astype(bf16), p["glob_Wb"].astype(bf16),
        Wqkv.astype(bf16), bqkv.astype(f32),
        p["Wo"].astype(bf16),
        p["W1"].astype(bf16), p["b1"].astype(f32), p["W2"].astype(bf16),
        vecH.astype(f32), head_Wt.astype(bf16), b_head.astype(f32),
        cross_bias,
    ]

    def const_spec(arr):
        nd = arr.ndim
        # constants: full-array block whose index never changes -> 1 VMEM buffer
        return pl.BlockSpec(arr.shape, lambda b: (0,) * nd,
                            pipeline_mode=pl.Buffered(1))

    in_specs = ([pl.BlockSpec((1, tbs, v), lambda b: (b, 0, 0)),
                 pl.BlockSpec((1, tbs, dt), lambda b: (b, 0, 0)),
                 pl.BlockSpec((1, 1, tbs), lambda b: (b, 0, 0))]
                + [const_spec(a) for a in plist])
    out_specs = (pl.BlockSpec((1, 1, tbs), lambda b: (b, 0, 0)),
                 pl.BlockSpec((1, 1, tbs), lambda b: (b, 0, 0)))
    out_shape = (jax.ShapeDtypeStruct((nb, 1, tbs), f32),
                 jax.ShapeDtypeStruct((nb, 1, tbs), f32))

    macs = tbs * (v * hidden + dt * hidden + 2 * hidden * hidden
                  + 3 * hidden * hidden + 2 * tbs * hidden + hidden * hidden
                  + 2 * hidden * ff_dim + 2 * hidden)
    const_bytes = sum(int(a.size) * a.dtype.itemsize for a in plist)
    cost = pl.CostEstimate(
        flops=int(2 * macs * nb),
        transcendentals=int(nb * (tbs * tbs + tbs * ff_dim)),
        bytes_accessed=int(const_bytes
                           + 4 * (x_blk.size + tree_blk.size + mask_blk.size
                                  + 2 * nb * tbs)))

    res_v, res_c = pl.pallas_call(
        _make_kernel(hidden),
        grid=(nb,),
        in_specs=in_specs,
        out_specs=out_specs,
        out_shape=out_shape,
        compiler_params=pltpu.CompilerParams(
            dimension_semantics=("parallel",),
            vmem_limit_bytes=48 * 1024 * 1024),
        cost_estimate=cost,
    )(x_blk, tree_blk, mask_blk, *plist)

    # (nb, 1, TBS) -> (n_pad, s): pure reshape, no transpose over HBM.
    out = res_v.reshape(n_pad, s)[:n]
    raw = res_c.reshape(n_pad, s)[:n]
    return out, raw


def brant_reference(cands, padding_mask, node_state, mip_state, params):
    """Pure-JAX f32 reference of the PyTorch forward (dropout = identity)."""
    p = params
    f32 = jnp.float32

    def ln(x, g, b):
        mu = jnp.mean(x, -1, keepdims=True)
        var = jnp.mean(jnp.square(x - mu), -1, keepdims=True)
        return (x - mu) / jnp.sqrt(var + EPS) * g + b

    x = cands.astype(f32)
    h = ln(x, p["cand_ln_g"], p["cand_ln_b"]) @ p["cand_W"] + p["cand_b"]
    tree = jnp.concatenate([node_state, mip_state], axis=1).astype(f32)
    ts = ln(tree, p["tree_ln_g"], p["tree_ln_b"]) @ p["tree_W"] + p["tree_b"]
    h = h @ p["glob_Wa"] + (ts[:, None, :] @ p["glob_Wb"]) + p["glob_b"]

    scale = 1.0 / math.sqrt(h.shape[-1])
    q = h @ p["Wq"] + p["bq"]
    k = h @ p["Wk"] + p["bk"]
    v_ = h @ p["Wv"] + p["bv"]
    scores = jnp.einsum("nqh,nkh->nqk", q, k) * scale
    scores = scores + jnp.where(padding_mask[:, None, :] == 1, NEG_BIG, 0.0)
    attn = jax.nn.softmax(scores, axis=-1)
    ao = jnp.einsum("nqk,nkh->nqh", attn, v_) @ p["Wo"] + p["bo"]

    h = ln(h + ao, p["n1_g"], p["n1_b"])
    ffo = jax.nn.gelu(h @ p["W1"] + p["b1"], approximate=False) @ p["W2"] + p["b2"]
    h = ln(h + ffo, p["n2_g"], p["n2_b"])
    h = ln(h, p["enc_g"], p["enc_b"])

    out = ((h @ p["lin1_W"] + p["lin1_b"]) @ p["lin2_W"] + p["lin2_b"])[..., 0]
    raw = (h @ p["cls_W"] + p["cls_b"])[..., 0]
    pad = padding_mask == 1
    return jnp.where(pad, -jnp.inf, out), jnp.where(pad, -jnp.inf, raw)


if __name__ == "__main__":
    N, S = 32, 8
    VAR_DIM, NODE_DIM, MIP_DIM = 16, 8, 8
    HIDDEN, FF = 32, 32

    key = jax.random.PRNGKey(0)
    k1, k2, k3, kp = jax.random.split(key, 4)
    cands = jax.random.normal(k1, (N, S, VAR_DIM), jnp.float32)
    node_state = jax.random.normal(k2, (N, NODE_DIM), jnp.float32)
    mip_state = jax.random.normal(k3, (N, MIP_DIM), jnp.float32)
    lens = (jnp.arange(N, dtype=jnp.int32) % S) + 1                  # valid lengths
    padding_mask = (jnp.arange(S)[None, :] >= lens[:, None]).astype(jnp.int32)

    params = init_params(kp, VAR_DIM, NODE_DIM, MIP_DIM, HIDDEN, FF)

    # default heuristic: tile_b=16 -> TBS=128 (multiple of 128), grid=(2,)
    out, raw = brant_forward(cands, padding_mask, node_state, mip_state, params)
    jax.block_until_ready((out, raw))

    assert out.shape == (N, S) and raw.shape == (N, S)
    valid = padding_mask == 0
    # structural checks: finite on valid slots, -inf on padded slots
    assert bool(jnp.all(jnp.isfinite(jnp.where(valid, out, 0.0))))
    assert bool(jnp.all(jnp.isfinite(jnp.where(valid, raw, 0.0))))
    assert bool(jnp.all(jnp.isneginf(jnp.where(valid, -jnp.inf, out))))
    assert bool(jnp.all(jnp.isneginf(jnp.where(valid, -jnp.inf, raw))))

    # loose numerical check vs a pure-JAX f32 reference (kernel uses bf16 MXU
    # operands + approximate reciprocal, so only a coarse tolerance applies)
    ref_out, ref_raw = brant_reference(cands, padding_mask, node_state,
                                       mip_state, params)
    d_out = float(jnp.max(jnp.abs(jnp.where(valid, out - ref_out, 0.0))))
    d_raw = float(jnp.max(jnp.abs(jnp.where(valid, raw - ref_raw, 0.0))))
    assert d_out < 0.5 and d_raw < 0.5, (d_out, d_raw)

    print("KERNEL_OK")
</pallas_src>

<mosaic_0001>
module attributes {stable_mosaic.version = 11 : i64} {
  func.func @kernel(%arg0: i32, %arg1: memref<1x128x16xf32, #tpu.memory_space<vmem>>, %arg2: memref<1x128x16xf32, #tpu.memory_space<vmem>>, %arg3: memref<1x1x128xf32, #tpu.memory_space<vmem>>, %arg4: memref<2x16xf32, #tpu.memory_space<vmem>>, %arg5: memref<16x32xbf16, #tpu.memory_space<vmem>>, %arg6: memref<2x16xf32, #tpu.memory_space<vmem>>, %arg7: memref<16x32xbf16, #tpu.memory_space<vmem>>, %arg8: memref<32x32xbf16, #tpu.memory_space<vmem>>, %arg9: memref<32x32xbf16, #tpu.memory_space<vmem>>, %arg10: memref<32x96xbf16, #tpu.memory_space<vmem>>, %arg11: memref<1x96xf32, #tpu.memory_space<vmem>>, %arg12: memref<32x32xbf16, #tpu.memory_space<vmem>>, %arg13: memref<32x32xbf16, #tpu.memory_space<vmem>>, %arg14: memref<1x32xf32, #tpu.memory_space<vmem>>, %arg15: memref<32x32xbf16, #tpu.memory_space<vmem>>, %arg16: memref<11x32xf32, #tpu.memory_space<vmem>>, %arg17: memref<2x32xbf16, #tpu.memory_space<vmem>>, %arg18: memref<2x1xf32, #tpu.memory_space<vmem>>, %arg19: memref<128x128xf32, #tpu.memory_space<vmem>>, %arg20: memref<1x1x128xf32, #tpu.memory_space<vmem>>, %arg21: memref<1x1x128xf32, #tpu.memory_space<vmem>>) attributes {dimension_semantics = [#tpu.dimension_semantics<parallel>], iteration_bounds = array<i64: 2>, scalar_prefetch = 0 : i64, scratch_operands = 0 : i64, tpu.core_type = #tpu.core_type<tc>, window_params = [{transform_indices = @transform_0, window_bounds = array<i64: 1, 128, 16>}, {transform_indices = @transform_1, window_bounds = array<i64: 1, 128, 16>}, {transform_indices = @transform_2, window_bounds = array<i64: 1, 1, 128>}, {pipeline_mode = #tpu.pipeline_mode<synchronous>, transform_indices = @transform_3, window_bounds = array<i64: 2, 16>}, {pipeline_mode = #tpu.pipeline_mode<synchronous>, transform_indices = @transform_4, window_bounds = array<i64: 16, 32>}, {pipeline_mode = #tpu.pipeline_mode<synchronous>, transform_indices = @transform_5, window_bounds = array<i64: 2, 16>}, {pipeline_mode = #tpu.pipeline_mode<synchronous>, transform_indices = @transform_6, window_bounds = array<i64: 16, 32>}, {pipeline_mode = #tpu.pipeline_mode<synchronous>, transform_indices = @transform_7, window_bounds = array<i64: 32, 32>}, {pipeline_mode = #tpu.pipeline_mode<synchronous>, transform_indices = @transform_8, window_bounds = array<i64: 32, 32>}, {pipeline_mode = #tpu.pipeline_mode<synchronous>, transform_indices = @transform_9, window_bounds = array<i64: 32, 96>}, {pipeline_mode = #tpu.pipeline_mode<synchronous>, transform_indices = @transform_10, window_bounds = array<i64: 1, 96>}, {pipeline_mode = #tpu.pipeline_mode<synchronous>, transform_indices = @transform_11, window_bounds = array<i64: 32, 32>}, {pipeline_mode = #tpu.pipeline_mode<synchronous>, transform_indices = @transform_12, window_bounds = array<i64: 32, 32>}, {pipeline_mode = #tpu.pipeline_mode<synchronous>, transform_indices = @transform_13, window_bounds = array<i64: 1, 32>}, {pipeline_mode = #tpu.pipeline_mode<synchronous>, transform_indices = @transform_14, window_bounds = array<i64: 32, 32>}, {pipeline_mode = #tpu.pipeline_mode<synchronous>, transform_indices = @transform_15, window_bounds = array<i64: 11, 32>}, {pipeline_mode = #tpu.pipeline_mode<synchronous>, transform_indices = @transform_16, window_bounds = array<i64: 2, 32>}, {pipeline_mode = #tpu.pipeline_mode<synchronous>, transform_indices = @transform_17, window_bounds = array<i64: 2, 1>}, {pipeline_mode = #tpu.pipeline_mode<synchronous>, transform_indices = @transform_18, window_bounds = array<i64: 128, 128>}, {transform_indices = @transform_19, window_bounds = array<i64: 1, 1, 128>}, {transform_indices = @transform_20, window_bounds = array<i64: 1, 1, 128>}]} {
    %c0 = arith.constant 0 : index
    %c0_0 = arith.constant 0 : index
    %c0_1 = arith.constant 0 : index
    %0 = vector.load %arg1[%c0, %c0_0, %c0_1] : memref<1x128x16xf32, #tpu.memory_space<vmem>>, vector<1x128x16xf32>
    %1 = vector.shape_cast %0 : vector<1x128x16xf32> to vector<128x16xf32>
    %c0_2 = arith.constant 0 : index
    %c0_3 = arith.constant 0 : index
    %c0_4 = arith.constant 0 : index
    %2 = vector.load %arg2[%c0_2, %c0_3, %c0_4] : memref<1x128x16xf32, #tpu.memory_space<vmem>>, vector<1x128x16xf32>
    %3 = vector.shape_cast %2 : vector<1x128x16xf32> to vector<128x16xf32>
    %c0_5 = arith.constant 0 : index
    %c0_6 = arith.constant 0 : index
    %c0_7 = arith.constant 0 : index
    %4 = vector.load %arg3[%c0_5, %c0_6, %c0_7] : memref<1x1x128xf32, #tpu.memory_space<vmem>>, vector<1x1x128xf32>
    %5 = vector.shape_cast %4 : vector<1x1x128xf32> to vector<1x128xf32>
    %c0_8 = arith.constant 0 : index
    %c0_9 = arith.constant 0 : index
    %6 = vector.load %arg16[%c0_8, %c0_9] : memref<11x32xf32, #tpu.memory_space<vmem>>, vector<11x32xf32>
    %7 = vector.extract_strided_slice %6 {offsets = [0, 0], sizes = [1, 32], strides = [1, 1]} : vector<11x32xf32> to vector<1x32xf32>
    %8 = vector.extract_strided_slice %6 {offsets = [1, 0], sizes = [1, 32], strides = [1, 1]} : vector<11x32xf32> to vector<1x32xf32>
    %9 = vector.extract_strided_slice %6 {offsets = [2, 0], sizes = [1, 32], strides = [1, 1]} : vector<11x32xf32> to vector<1x32xf32>
    %10 = vector.extract_strided_slice %6 {offsets = [3, 0], sizes = [1, 32], strides = [1, 1]} : vector<11x32xf32> to vector<1x32xf32>
    %11 = vector.extract_strided_slice %6 {offsets = [4, 0], sizes = [1, 32], strides = [1, 1]} : vector<11x32xf32> to vector<1x32xf32>
    %12 = vector.extract_strided_slice %6 {offsets = [5, 0], sizes = [1, 32], strides = [1, 1]} : vector<11x32xf32> to vector<1x32xf32>
    %13 = vector.extract_strided_slice %6 {offsets = [6, 0], sizes = [1, 32], strides = [1, 1]} : vector<11x32xf32> to vector<1x32xf32>
    %14 = vector.extract_strided_slice %6 {offsets = [7, 0], sizes = [1, 32], strides = [1, 1]} : vector<11x32xf32> to vector<1x32xf32>
    %15 = vector.extract_strided_slice %6 {offsets = [8, 0], sizes = [1, 32], strides = [1, 1]} : vector<11x32xf32> to vector<1x32xf32>
    %16 = vector.extract_strided_slice %6 {offsets = [9, 0], sizes = [1, 32], strides = [1, 1]} : vector<11x32xf32> to vector<1x32xf32>
    %17 = vector.extract_strided_slice %6 {offsets = [10, 0], sizes = [1, 32], strides = [1, 1]} : vector<11x32xf32> to vector<1x32xf32>
    %c0_10 = arith.constant 0 : index
    %c0_11 = arith.constant 0 : index
    %18 = vector.load %arg4[%c0_10, %c0_11] : memref<2x16xf32, #tpu.memory_space<vmem>>, vector<2x16xf32>
    %19 = vector.extract_strided_slice %18 {offsets = [0, 0], sizes = [1, 16], strides = [1, 1]} : vector<2x16xf32> to vector<1x16xf32>
    %20 = vector.extract_strided_slice %18 {offsets = [1, 0], sizes = [1, 16], strides = [1, 1]} : vector<2x16xf32> to vector<1x16xf32>
    %cst = arith.constant dense<0.000000e+00> : vector<128xf32>
    %21 = vector.multi_reduction <add>, %1, %cst [1] : vector<128x16xf32> to vector<128xf32>
    %22 = vector.shape_cast %21 : vector<128xf32> to vector<128x1xf32>
    %cst_12 = arith.constant 1.600000e+01 : f32
    %23 = vector.broadcast %cst_12 : f32 to vector<128x1xf32>
    %24 = arith.divf %22, %23 : vector<128x1xf32>
    %25 = vector.broadcast %24 : vector<128x1xf32> to vector<128x16xf32>
    %26 = arith.subf %1, %25 : vector<128x16xf32>
    %27 = arith.mulf %26, %26 : vector<128x16xf32>
    %cst_13 = arith.constant dense<0.000000e+00> : vector<128xf32>
    %28 = vector.multi_reduction <add>, %27, %cst_13 [1] : vector<128x16xf32> to vector<128xf32>
    %29 = vector.shape_cast %28 : vector<128xf32> to vector<128x1xf32>
    %cst_14 = arith.constant 1.600000e+01 : f32
    %30 = vector.broadcast %cst_14 : f32 to vector<128x1xf32>
    %31 = arith.divf %29, %30 : vector<128x1xf32>
    %32 = vector.broadcast %24 : vector<128x1xf32> to vector<128x16xf32>
    %33 = arith.subf %1, %32 : vector<128x16xf32>
    %cst_15 = arith.constant 9.99999974E-6 : f32
    %34 = vector.broadcast %cst_15 : f32 to vector<128x1xf32>
    %35 = arith.addf %31, %34 : vector<128x1xf32>
    %36 = math.rsqrt %35 : vector<128x1xf32>
    %37 = vector.broadcast %36 : vector<128x1xf32> to vector<128x16xf32>
    %38 = arith.mulf %33, %37 : vector<128x16xf32>
    %39 = vector.broadcast %19 : vector<1x16xf32> to vector<128x16xf32>
    %40 = arith.mulf %38, %39 : vector<128x16xf32>
    %41 = vector.broadcast %20 : vector<1x16xf32> to vector<128x16xf32>
    %42 = arith.addf %40, %41 : vector<128x16xf32>
    %43 = arith.truncf %42 : vector<128x16xf32> to vector<128x16xbf16>
    %c0_16 = arith.constant 0 : index
    %c0_17 = arith.constant 0 : index
    %44 = vector.load %arg5[%c0_16, %c0_17] : memref<16x32xbf16, #tpu.memory_space<vmem>>, vector<16x32xbf16>
    %cst_18 = arith.constant dense<0.000000e+00> : vector<128x32xf32>
    %45 = tpu.matmul %43, %44, %cst_18 {dimension_numbers = #tpu.dot_dimension_numbers<[1], [0], [0], [1], [0, 0, 1, 1], [], []>} : vector<128x16xbf16>, vector<16x32xbf16>, vector<128x32xf32> -> vector<128x32xf32>
    %46 = vector.broadcast %7 : vector<1x32xf32> to vector<128x32xf32>
    %47 = arith.addf %45, %46 : vector<128x32xf32>
    %c0_19 = arith.constant 0 : index
    %c0_20 = arith.constant 0 : index
    %48 = vector.load %arg6[%c0_19, %c0_20] : memref<2x16xf32, #tpu.memory_space<vmem>>, vector<2x16xf32>
    %49 = vector.extract_strided_slice %48 {offsets = [0, 0], sizes = [1, 16], strides = [1, 1]} : vector<2x16xf32> to vector<1x16xf32>
    %50 = vector.extract_strided_slice %48 {offsets = [1, 0], sizes = [1, 16], strides = [1, 1]} : vector<2x16xf32> to vector<1x16xf32>
    %cst_21 = arith.constant dense<0.000000e+00> : vector<128xf32>
    %51 = vector.multi_reduction <add>, %3, %cst_21 [1] : vector<128x16xf32> to vector<128xf32>
    %52 = vector.shape_cast %51 : vector<128xf32> to vector<128x1xf32>
    %cst_22 = arith.constant 1.600000e+01 : f32
    %53 = vector.broadcast %cst_22 : f32 to vector<128x1xf32>
    %54 = arith.divf %52, %53 : vector<128x1xf32>
    %55 = vector.broadcast %54 : vector<128x1xf32> to vector<128x16xf32>
    %56 = arith.subf %3, %55 : vector<128x16xf32>
    %57 = arith.mulf %56, %56 : vector<128x16xf32>
    %cst_23 = arith.constant dense<0.000000e+00> : vector<128xf32>
    %58 = vector.multi_reduction <add>, %57, %cst_23 [1] : vector<128x16xf32> to vector<128xf32>
    %59 = vector.shape_cast %58 : vector<128xf32> to vector<128x1xf32>
    %cst_24 = arith.constant 1.600000e+01 : f32
    %60 = vector.broadcast %cst_24 : f32 to vector<128x1xf32>
    %61 = arith.divf %59, %60 : vector<128x1xf32>
    %62 = vector.broadcast %54 : vector<128x1xf32> to vector<128x16xf32>
    %63 = arith.subf %3, %62 : vector<128x16xf32>
    %cst_25 = arith.constant 9.99999974E-6 : f32
    %64 = vector.broadcast %cst_25 : f32 to vector<128x1xf32>
    %65 = arith.addf %61, %64 : vector<128x1xf32>
    %66 = math.rsqrt %65 : vector<128x1xf32>
    %67 = vector.broadcast %66 : vector<128x1xf32> to vector<128x16xf32>
    %68 = arith.mulf %63, %67 : vector<128x16xf32>
    %69 = vector.broadcast %49 : vector<1x16xf32> to vector<128x16xf32>
    %70 = arith.mulf %68, %69 : vector<128x16xf32>
    %71 = vector.broadcast %50 : vector<1x16xf32> to vector<128x16xf32>
    %72 = arith.addf %70, %71 : vector<128x16xf32>
    %73 = arith.truncf %72 : vector<128x16xf32> to vector<128x16xbf16>
    %c0_26 = arith.constant 0 : index
    %c0_27 = arith.constant 0 : index
    %74 = vector.load %arg7[%c0_26, %c0_27] : memref<16x32xbf16, #tpu.memory_space<vmem>>, vector<16x32xbf16>
    %cst_28 = arith.constant dense<0.000000e+00> : vector<128x32xf32>
    %75 = tpu.matmul %73, %74, %cst_28 {dimension_numbers = #tpu.dot_dimension_numbers<[1], [0], [0], [1], [0, 0, 1, 1], [], []>} : vector<128x16xbf16>, vector<16x32xbf16>, vector<128x32xf32> -> vector<128x32xf32>
    %76 = vector.broadcast %8 : vector<1x32xf32> to vector<128x32xf32>
    %77 = arith.addf %75, %76 : vector<128x32xf32>
    %78 = arith.truncf %47 : vector<128x32xf32> to vector<128x32xbf16>
    %c0_29 = arith.constant 0 : index
    %c0_30 = arith.constant 0 : index
    %79 = vector.load %arg8[%c0_29, %c0_30] : memref<32x32xbf16, #tpu.memory_space<vmem>>, vector<32x32xbf16>
    %cst_31 = arith.constant dense<0.000000e+00> : vector<128x32xf32>
    %80 = tpu.matmul %78, %79, %cst_31 {dimension_numbers = #tpu.dot_dimension_numbers<[1], [0], [0], [1], [0, 0, 1, 1], [], []>} : vector<128x32xbf16>, vector<32x32xbf16>, vector<128x32xf32> -> vector<128x32xf32>
    %81 = arith.truncf %77 : vector<128x32xf32> to vector<128x32xbf16>
    %c0_32 = arith.constant 0 : index
    %c0_33 = arith.constant 0 : index
    %82 = vector.load %arg9[%c0_32, %c0_33] : memref<32x32xbf16, #tpu.memory_space<vmem>>, vector<32x32xbf16>
    %cst_34 = arith.constant dense<0.000000e+00> : vector<128x32xf32>
    %83 = tpu.matmul %81, %82, %cst_34 {dimension_numbers = #tpu.dot_dimension_numbers<[1], [0], [0], [1], [0, 0, 1, 1], [], []>} : vector<128x32xbf16>, vector<32x32xbf16>, vector<128x32xf32> -> vector<128x32xf32>
    %84 = arith.addf %80, %83 : vector<128x32xf32>
    %85 = vector.broadcast %9 : vector<1x32xf32> to vector<128x32xf32>
    %86 = arith.addf %84, %85 : vector<128x32xf32>
    %87 = arith.truncf %86 : vector<128x32xf32> to vector<128x32xbf16>
    %c0_35 = arith.constant 0 : index
    %c0_36 = arith.constant 0 : index
    %88 = vector.load %arg10[%c0_35, %c0_36] : memref<32x96xbf16, #tpu.memory_space<vmem>>, vector<32x96xbf16>
    %cst_37 = arith.constant dense<0.000000e+00> : vector<128x96xf32>
    %89 = tpu.matmul %87, %88, %cst_37 {dimension_numbers = #tpu.dot_dimension_numbers<[1], [0], [0], [1], [0, 0, 1, 1], [], []>} : vector<128x32xbf16>, vector<32x96xbf16>, vector<128x96xf32> -> vector<128x96xf32>
    %c0_38 = arith.constant 0 : index
    %c0_39 = arith.constant 0 : index
    %90 = vector.load %arg11[%c0_38, %c0_39] : memref<1x96xf32, #tpu.memory_space<vmem>>, vector<1x96xf32>
    %91 = vector.broadcast %90 : vector<1x96xf32> to vector<128x96xf32>
    %92 = arith.addf %89, %91 : vector<128x96xf32>
    %93 = arith.truncf %92 : vector<128x96xf32> to vector<128x96xbf16>
    %94 = vector.extract_strided_slice %93 {offsets = [0, 0], sizes = [128, 32], strides = [1, 1]} : vector<128x96xbf16> to vector<128x32xbf16>
    %95 = vector.extract_strided_slice %93 {offsets = [0, 32], sizes = [128, 32], strides = [1, 1]} : vector<128x96xbf16> to vector<128x32xbf16>
    %96 = vector.extract_strided_slice %93 {offsets = [0, 64], sizes = [128, 32], strides = [1, 1]} : vector<128x96xbf16> to vector<128x32xbf16>
    %cst_40 = arith.constant dense<0.000000e+00> : vector<128x128xf32>
    %97 = tpu.matmul %94, %95, %cst_40 {dimension_numbers = #tpu.dot_dimension_numbers<[1], [1], [0], [0], [0, 0, 1, 0], [], []>} : vector<128x32xbf16>, vector<128x32xbf16>, vector<128x128xf32> -> vector<128x128xf32>
    %c0_41 = arith.constant 0 : index
    %c0_42 = arith.constant 0 : index
    %98 = vector.load %arg19[%c0_41, %c0_42] : memref<128x128xf32, #tpu.memory_space<vmem>>, vector<128x128xf32>
    %99 = arith.addf %97, %98 : vector<128x128xf32>
    %cst_43 = arith.constant -1.000000e+30 : f32
    %100 = vector.broadcast %cst_43 : f32 to vector<1x128xf32>
    %101 = arith.mulf %5, %100 : vector<1x128xf32>
    %102 = vector.broadcast %101 : vector<1x128xf32> to vector<128x128xf32>
    %103 = arith.addf %99, %102 : vector<128x128xf32>
    %cst_44 = arith.constant dense<0xFF800000> : vector<128xf32>
    %104 = vector.multi_reduction <maximumf>, %103, %cst_44 [1] : vector<128x128xf32> to vector<128xf32>
    %105 = vector.shape_cast %104 : vector<128xf32> to vector<128x1xf32>
    %106 = vector.broadcast %105 : vector<128x1xf32> to vector<128x128xf32>
    %107 = arith.subf %103, %106 : vector<128x128xf32>
    %108 = math.exp %107 : vector<128x128xf32>
    %cst_45 = arith.constant dense<0.000000e+00> : vector<128xf32>
    %109 = vector.multi_reduction <add>, %108, %cst_45 [1] : vector<128x128xf32> to vector<128xf32>
    %110 = vector.shape_cast %109 : vector<128xf32> to vector<128x1xf32>
    %111 = tpu.reciprocal %110 {approx = true} : vector<128x1xf32> -> vector<128x1xf32>
    %112 = vector.broadcast %111 : vector<128x1xf32> to vector<128x128xf32>
    %113 = arith.mulf %108, %112 : vector<128x128xf32>
    %114 = arith.truncf %113 : vector<128x128xf32> to vector<128x128xbf16>
    %cst_46 = arith.constant dense<0.000000e+00> : vector<128x32xf32>
    %115 = tpu.matmul %114, %96, %cst_46 {dimension_numbers = #tpu.dot_dimension_numbers<[1], [0], [0], [1], [0, 0, 1, 1], [], []>} : vector<128x128xbf16>, vector<128x32xbf16>, vector<128x32xf32> -> vector<128x32xf32>
    %116 = arith.truncf %115 : vector<128x32xf32> to vector<128x32xbf16>
    %c0_47 = arith.constant 0 : index
    %c0_48 = arith.constant 0 : index
    %117 = vector.load %arg12[%c0_47, %c0_48] : memref<32x32xbf16, #tpu.memory_space<vmem>>, vector<32x32xbf16>
    %cst_49 = arith.constant dense<0.000000e+00> : vector<128x32xf32>
    %118 = tpu.matmul %116, %117, %cst_49 {dimension_numbers = #tpu.dot_dimension_numbers<[1], [0], [0], [1], [0, 0, 1, 1], [], []>} : vector<128x32xbf16>, vector<32x32xbf16>, vector<128x32xf32> -> vector<128x32xf32>
    %119 = vector.broadcast %10 : vector<1x32xf32> to vector<128x32xf32>
    %120 = arith.addf %118, %119 : vector<128x32xf32>
    %121 = arith.addf %86, %120 : vector<128x32xf32>
    %cst_50 = arith.constant dense<0.000000e+00> : vector<128xf32>
    %122 = vector.multi_reduction <add>, %121, %cst_50 [1] : vector<128x32xf32> to vector<128xf32>
    %123 = vector.shape_cast %122 : vector<128xf32> to vector<128x1xf32>
    %cst_51 = arith.constant 3.200000e+01 : f32
    %124 = vector.broadcast %cst_51 : f32 to vector<128x1xf32>
    %125 = arith.divf %123, %124 : vector<128x1xf32>
    %126 = vector.broadcast %125 : vector<128x1xf32> to vector<128x32xf32>
    %127 = arith.subf %121, %126 : vector<128x32xf32>
    %128 = arith.mulf %127, %127 : vector<128x32xf32>
    %cst_52 = arith.constant dense<0.000000e+00> : vector<128xf32>
    %129 = vector.multi_reduction <add>, %128, %cst_52 [1] : vector<128x32xf32> to vector<128xf32>
    %130 = vector.shape_cast %129 : vector<128xf32> to vector<128x1xf32>
    %cst_53 = arith.constant 3.200000e+01 : f32
    %131 = vector.broadcast %cst_53 : f32 to vector<128x1xf32>
    %132 = arith.divf %130, %131 : vector<128x1xf32>
    %133 = vector.broadcast %125 : vector<128x1xf32> to vector<128x32xf32>
    %134 = arith.subf %121, %133 : vector<128x32xf32>
    %cst_54 = arith.constant 9.99999974E-6 : f32
    %135 = vector.broadcast %cst_54 : f32 to vector<128x1xf32>
    %136 = arith.addf %132, %135 : vector<128x1xf32>
    %137 = math.rsqrt %136 : vector<128x1xf32>
    %138 = vector.broadcast %137 : vector<128x1xf32> to vector<128x32xf32>
    %139 = arith.mulf %134, %138 : vector<128x32xf32>
    %140 = vector.broadcast %11 : vector<1x32xf32> to vector<128x32xf32>
    %141 = arith.mulf %139, %140 : vector<128x32xf32>
    %142 = vector.broadcast %12 : vector<1x32xf32> to vector<128x32xf32>
    %143 = arith.addf %141, %142 : vector<128x32xf32>
    %144 = arith.truncf %143 : vector<128x32xf32> to vector<128x32xbf16>
    %c0_55 = arith.constant 0 : index
    %c0_56 = arith.constant 0 : index
    %145 = vector.load %arg13[%c0_55, %c0_56] : memref<32x32xbf16, #tpu.memory_space<vmem>>, vector<32x32xbf16>
    %cst_57 = arith.constant dense<0.000000e+00> : vector<128x32xf32>
    %146 = tpu.matmul %144, %145, %cst_57 {dimension_numbers = #tpu.dot_dimension_numbers<[1], [0], [0], [1], [0, 0, 1, 1], [], []>} : vector<128x32xbf16>, vector<32x32xbf16>, vector<128x32xf32> -> vector<128x32xf32>
    %c0_58 = arith.constant 0 : index
    %c0_59 = arith.constant 0 : index
    %147 = vector.load %arg14[%c0_58, %c0_59] : memref<1x32xf32, #tpu.memory_space<vmem>>, vector<1x32xf32>
    %148 = vector.broadcast %147 : vector<1x32xf32> to vector<128x32xf32>
    %149 = arith.addf %146, %148 : vector<128x32xf32>
    %cst_60 = arith.constant 5.000000e-01 : f32
    %150 = vector.broadcast %cst_60 : f32 to vector<128x32xf32>
    %151 = arith.mulf %150, %149 : vector<128x32xf32>
    %cst_61 = arith.constant 0.707106769 : f32
    %152 = vector.broadcast %cst_61 : f32 to vector<128x32xf32>
    %153 = arith.mulf %149, %152 : vector<128x32xf32>
    %154 = math.erf %153 : vector<128x32xf32>
    %cst_62 = arith.constant 1.000000e+00 : f32
    %155 = vector.broadcast %cst_62 : f32 to vector<128x32xf32>
    %156 = arith.addf %155, %154 : vector<128x32xf32>
    %157 = arith.mulf %151, %156 : vector<128x32xf32>
    %158 = arith.truncf %157 : vector<128x32xf32> to vector<128x32xbf16>
    %c0_63 = arith.constant 0 : index
    %c0_64 = arith.constant 0 : index
    %159 = vector.load %arg15[%c0_63, %c0_64] : memref<32x32xbf16, #tpu.memory_space<vmem>>, vector<32x32xbf16>
    %cst_65 = arith.constant dense<0.000000e+00> : vector<128x32xf32>
    %160 = tpu.matmul %158, %159, %cst_65 {dimension_numbers = #tpu.dot_dimension_numbers<[1], [0], [0], [1], [0, 0, 1, 1], [], []>} : vector<128x32xbf16>, vector<32x32xbf16>, vector<128x32xf32> -> vector<128x32xf32>
    %161 = vector.broadcast %13 : vector<1x32xf32> to vector<128x32xf32>
    %162 = arith.addf %160, %161 : vector<128x32xf32>
    %163 = arith.addf %143, %162 : vector<128x32xf32>
    %cst_66 = arith.constant dense<0.000000e+00> : vector<128xf32>
    %164 = vector.multi_reduction <add>, %163, %cst_66 [1] : vector<128x32xf32> to vector<128xf32>
    %165 = vector.shape_cast %164 : vector<128xf32> to vector<128x1xf32>
    %cst_67 = arith.constant 3.200000e+01 : f32
    %166 = vector.broadcast %cst_67 : f32 to vector<128x1xf32>
    %167 = arith.divf %165, %166 : vector<128x1xf32>
    %168 = vector.broadcast %167 : vector<128x1xf32> to vector<128x32xf32>
    %169 = arith.subf %163, %168 : vector<128x32xf32>
    %170 = arith.mulf %169, %169 : vector<128x32xf32>
    %cst_68 = arith.constant dense<0.000000e+00> : vector<128xf32>
    %171 = vector.multi_reduction <add>, %170, %cst_68 [1] : vector<128x32xf32> to vector<128xf32>
    %172 = vector.shape_cast %171 : vector<128xf32> to vector<128x1xf32>
    %cst_69 = arith.constant 3.200000e+01 : f32
    %173 = vector.broadcast %cst_69 : f32 to vector<128x1xf32>
    %174 = arith.divf %172, %173 : vector<128x1xf32>
    %175 = vector.broadcast %167 : vector<128x1xf32> to vector<128x32xf32>
    %176 = arith.subf %163, %175 : vector<128x32xf32>
    %cst_70 = arith.constant 9.99999974E-6 : f32
    %177 = vector.broadcast %cst_70 : f32 to vector<128x1xf32>
    %178 = arith.addf %174, %177 : vector<128x1xf32>
    %179 = math.rsqrt %178 : vector<128x1xf32>
    %180 = vector.broadcast %179 : vector<128x1xf32> to vector<128x32xf32>
    %181 = arith.mulf %176, %180 : vector<128x32xf32>
    %182 = vector.broadcast %14 : vector<1x32xf32> to vector<128x32xf32>
    %183 = arith.mulf %181, %182 : vector<128x32xf32>
    %184 = vector.broadcast %15 : vector<1x32xf32> to vector<128x32xf32>
    %185 = arith.addf %183, %184 : vector<128x32xf32>
    %cst_71 = arith.constant dense<0.000000e+00> : vector<128xf32>
    %186 = vector.multi_reduction <add>, %185, %cst_71 [1] : vector<128x32xf32> to vector<128xf32>
    %187 = vector.shape_cast %186 : vector<128xf32> to vector<128x1xf32>
    %cst_72 = arith.constant 3.200000e+01 : f32
    %188 = vector.broadcast %cst_72 : f32 to vector<128x1xf32>
    %189 = arith.divf %187, %188 : vector<128x1xf32>
    %190 = vector.broadcast %189 : vector<128x1xf32> to vector<128x32xf32>
    %191 = arith.subf %185, %190 : vector<128x32xf32>
    %192 = arith.mulf %191, %191 : vector<128x32xf32>
    %cst_73 = arith.constant dense<0.000000e+00> : vector<128xf32>
    %193 = vector.multi_reduction <add>, %192, %cst_73 [1] : vector<128x32xf32> to vector<128xf32>
    %194 = vector.shape_cast %193 : vector<128xf32> to vector<128x1xf32>
    %cst_74 = arith.constant 3.200000e+01 : f32
    %195 = vector.broadcast %cst_74 : f32 to vector<128x1xf32>
    %196 = arith.divf %194, %195 : vector<128x1xf32>
    %197 = vector.broadcast %189 : vector<128x1xf32> to vector<128x32xf32>
    %198 = arith.subf %185, %197 : vector<128x32xf32>
    %cst_75 = arith.constant 9.99999974E-6 : f32
    %199 = vector.broadcast %cst_75 : f32 to vector<128x1xf32>
    %200 = arith.addf %196, %199 : vector<128x1xf32>
    %201 = math.rsqrt %200 : vector<128x1xf32>
    %202 = vector.broadcast %201 : vector<128x1xf32> to vector<128x32xf32>
    %203 = arith.mulf %198, %202 : vector<128x32xf32>
    %204 = vector.broadcast %16 : vector<1x32xf32> to vector<128x32xf32>
    %205 = arith.mulf %203, %204 : vector<128x32xf32>
    %206 = vector.broadcast %17 : vector<1x32xf32> to vector<128x32xf32>
    %207 = arith.addf %205, %206 : vector<128x32xf32>
    %c0_76 = arith.constant 0 : index
    %c0_77 = arith.constant 0 : index
    %208 = vector.load %arg17[%c0_76, %c0_77] : memref<2x32xbf16, #tpu.memory_space<vmem>>, vector<2x32xbf16>
    %209 = arith.truncf %207 : vector<128x32xf32> to vector<128x32xbf16>
    %cst_78 = arith.constant dense<0.000000e+00> : vector<2x128xf32>
    %210 = tpu.matmul %208, %209, %cst_78 {dimension_numbers = #tpu.dot_dimension_numbers<[1], [1], [0], [0], [0, 0, 1, 0], [], []>} : vector<2x32xbf16>, vector<128x32xbf16>, vector<2x128xf32> -> vector<2x128xf32>
    %c0_79 = arith.constant 0 : index
    %c0_80 = arith.constant 0 : index
    %211 = vector.load %arg18[%c0_79, %c0_80] : memref<2x1xf32, #tpu.memory_space<vmem>>, vector<2x1xf32>
    %212 = vector.broadcast %211 : vector<2x1xf32> to vector<2x128xf32>
    %213 = arith.addf %210, %212 : vector<2x128xf32>
    %cst_81 = arith.constant 5.000000e-01 : f32
    %214 = vector.broadcast %cst_81 : f32 to vector<1x128xf32>
    %215 = arith.cmpf ogt, %5, %214 : vector<1x128xf32>
    %216 = vector.extract_strided_slice %213 {offsets = [0, 0], sizes = [1, 128], strides = [1, 1]} : vector<2x128xf32> to vector<1x128xf32>
    %cst_82 = arith.constant 0xFF800000 : f32
    %217 = vector.broadcast %cst_82 : f32 to vector<1x128xf32>
    %218 = arith.select %215, %217, %216 : vector<1x128xi1>, vector<1x128xf32>
    %c0_83 = arith.constant 0 : index
    %c0_84 = arith.constant 0 : index
    %c0_85 = arith.constant 0 : index
    %219 = vector.load %arg20[%c0_83, %c0_84, %c0_85] : memref<1x1x128xf32, #tpu.memory_space<vmem>>, vector<1x1x128xf32>
    %220 = vector.shape_cast %219 : vector<1x1x128xf32> to vector<1x128xf32>
    %221 = vector.shape_cast %218 : vector<1x128xf32> to vector<1x1x128xf32>
    tpu.vector_store %arg20[%c0_83, %c0_84, %c0_85], %221 {strides = array<i32>} : memref<1x1x128xf32, #tpu.memory_space<vmem>>, vector<1x1x128xf32>,
    %222 = vector.extract_strided_slice %213 {offsets = [1, 0], sizes = [1, 128], strides = [1, 1]} : vector<2x128xf32> to vector<1x128xf32>
    %cst_86 = arith.constant 0xFF800000 : f32
    %223 = vector.broadcast %cst_86 : f32 to vector<1x128xf32>
    %224 = arith.select %215, %223, %222 : vector<1x128xi1>, vector<1x128xf32>
    %c0_87 = arith.constant 0 : index
    %c0_88 = arith.constant 0 : index
    %c0_89 = arith.constant 0 : index
    %225 = vector.load %arg21[%c0_87, %c0_88, %c0_89] : memref<1x1x128xf32, #tpu.memory_space<vmem>>, vector<1x1x128xf32>
    %226 = vector.shape_cast %225 : vector<1x1x128xf32> to vector<1x128xf32>
    %227 = vector.shape_cast %224 : vector<1x128xf32> to vector<1x1x128xf32>
    tpu.vector_store %arg21[%c0_87, %c0_88, %c0_89], %227 {strides = array<i32>} : memref<1x1x128xf32, #tpu.memory_space<vmem>>, vector<1x1x128xf32>,
    return
  }
  func.func @transform_0(%arg0: i32) -> (i32, i32, i32) {
    %c0_i32 = arith.constant 0 : i32
    %c0_i32_0 = arith.constant 0 : i32
    %c0_i32_1 = arith.constant 0 : i32
    return %arg0, %c0_i32, %c0_i32_0 : i32, i32, i32
  }
  func.func @transform_1(%arg0: i32) -> (i32, i32, i32) {
    %c0_i32 = arith.constant 0 : i32
    %c0_i32_0 = arith.constant 0 : i32
    %c0_i32_1 = arith.constant 0 : i32
    return %arg0, %c0_i32, %c0_i32_0 : i32, i32, i32
  }
  func.func @transform_2(%arg0: i32) -> (i32, i32, i32) {
    %c0_i32 = arith.constant 0 : i32
    %c0_i32_0 = arith.constant 0 : i32
    %c0_i32_1 = arith.constant 0 : i32
    return %arg0, %c0_i32, %c0_i32_0 : i32, i32, i32
  }
  func.func @transform_3(%arg0: i32) -> (i32, i32) {
    %c0_i32 = arith.constant 0 : i32
    %c0_i32_0 = arith.constant 0 : i32
    %c0_i32_1 = arith.constant 0 : i32
    return %c0_i32, %c0_i32_0 : i32, i32
  }
  func.func @transform_4(%arg0: i32) -> (i32, i32) {
    %c0_i32 = arith.constant 0 : i32
    %c0_i32_0 = arith.constant 0 : i32
    %c0_i32_1 = arith.constant 0 : i32
    return %c0_i32, %c0_i32_0 : i32, i32
  }
  func.func @transform_5(%arg0: i32) -> (i32, i32) {
    %c0_i32 = arith.constant 0 : i32
    %c0_i32_0 = arith.constant 0 : i32
    %c0_i32_1 = arith.constant 0 : i32
    return %c0_i32, %c0_i32_0 : i32, i32
  }
  func.func @transform_6(%arg0: i32) -> (i32, i32) {
    %c0_i32 = arith.constant 0 : i32
    %c0_i32_0 = arith.constant 0 : i32
    %c0_i32_1 = arith.constant 0 : i32
    return %c0_i32, %c0_i32_0 : i32, i32
  }
  func.func @transform_7(%arg0: i32) -> (i32, i32) {
    %c0_i32 = arith.constant 0 : i32
    %c0_i32_0 = arith.constant 0 : i32
    %c0_i32_1 = arith.constant 0 : i32
    return %c0_i32, %c0_i32_0 : i32, i32
  }
  func.func @transform_8(%arg0: i32) -> (i32, i32) {
    %c0_i32 = arith.constant 0 : i32
    %c0_i32_0 = arith.constant 0 : i32
    %c0_i32_1 = arith.constant 0 : i32
    return %c0_i32, %c0_i32_0 : i32, i32
  }
  func.func @transform_9(%arg0: i32) -> (i32, i32) {
    %c0_i32 = arith.constant 0 : i32
    %c0_i32_0 = arith.constant 0 : i32
    %c0_i32_1 = arith.constant 0 : i32
    return %c0_i32, %c0_i32_0 : i32, i32
  }
  func.func @transform_10(%arg0: i32) -> (i32, i32) {
    %c0_i32 = arith.constant 0 : i32
    %c0_i32_0 = arith.constant 0 : i32
    %c0_i32_1 = arith.constant 0 : i32
    return %c0_i32, %c0_i32_0 : i32, i32
  }
  func.func @transform_11(%arg0: i32) -> (i32, i32) {
    %c0_i32 = arith.constant 0 : i32
    %c0_i32_0 = arith.constant 0 : i32
    %c0_i32_1 = arith.constant 0 : i32
    return %c0_i32, %c0_i32_0 : i32, i32
  }
  func.func @transform_12(%arg0: i32) -> (i32, i32) {
    %c0_i32 = arith.constant 0 : i32
    %c0_i32_0 = arith.constant 0 : i32
    %c0_i32_1 = arith.constant 0 : i32
    return %c0_i32, %c0_i32_0 : i32, i32
  }
  func.func @transform_13(%arg0: i32) -> (i32, i32) {
    %c0_i32 = arith.constant 0 : i32
    %c0_i32_0 = arith.constant 0 : i32
    %c0_i32_1 = arith.constant 0 : i32
    return %c0_i32, %c0_i32_0 : i32, i32
  }
  func.func @transform_14(%arg0: i32) -> (i32, i32) {
    %c0_i32 = arith.constant 0 : i32
    %c0_i32_0 = arith.constant 0 : i32
    %c0_i32_1 = arith.constant 0 : i32
    return %c0_i32, %c0_i32_0 : i32, i32
  }
  func.func @transform_15(%arg0: i32) -> (i32, i32) {
    %c0_i32 = arith.constant 0 : i32
    %c0_i32_0 = arith.constant 0 : i32
    %c0_i32_1 = arith.constant 0 : i32
    return %c0_i32, %c0_i32_0 : i32, i32
  }
  func.func @transform_16(%arg0: i32) -> (i32, i32) {
    %c0_i32 = arith.constant 0 : i32
    %c0_i32_0 = arith.constant 0 : i32
    %c0_i32_1 = arith.constant 0 : i32
    return %c0_i32, %c0_i32_0 : i32, i32
  }
  func.func @transform_17(%arg0: i32) -> (i32, i32) {
    %c0_i32 = arith.constant 0 : i32
    %c0_i32_0 = arith.constant 0 : i32
    %c0_i32_1 = arith.constant 0 : i32
    return %c0_i32, %c0_i32_0 : i32, i32
  }
  func.func @transform_18(%arg0: i32) -> (i32, i32) {
    %c0_i32 = arith.constant 0 : i32
    %c0_i32_0 = arith.constant 0 : i32
    %c0_i32_1 = arith.constant 0 : i32
    return %c0_i32, %c0_i32_0 : i32, i32
  }
  func.func @transform_19(%arg0: i32) -> (i32, i32, i32) {
    %c0_i32 = arith.constant 0 : i32
    %c0_i32_0 = arith.constant 0 : i32
    %c0_i32_1 = arith.constant 0 : i32
    return %arg0, %c0_i32, %c0_i32_0 : i32, i32, i32
  }
  func.func @transform_20(%arg0: i32) -> (i32, i32, i32) {
    %c0_i32 = arith.constant 0 : i32
    %c0_i32_0 = arith.constant 0 : i32
    %c0_i32_1 = arith.constant 0 : i32
    return %arg0, %c0_i32, %c0_i32_0 : i32, i32, i32
  }
}

</mosaic_0001>

<bundles_post_ra>
// kernel: tpu_custom_call.1
= control target key start
LH: loop header
LB: loop body
LE: loop exit
PB: predicated region body
PF: predicated region fallthrough
CT: control target
= control target key end

     0   :  { %s6918_s0 = inlined_call_operand.vmem [shape: f32[2,128,16], index: 0, kind: input, shape index: {}]   ;;  %s6919_s1 = inlined_call_operand.vmem [shape: f32[2,128,16], index: 1, kind: input, shape index: {}]   ;;  %s6920_s2 = inlined_call_operand.vmem [shape: f32[2,1,128], index: 2, kind: input, shape index: {}]   ;;  %s6921_s3 = inlined_call_operand.vmem [shape: f32[2,16], index: 3, kind: input, shape index: {}]   ;;  %s6922_s4 = inlined_call_operand.vmem [shape: bf16[16,32], index: 4, kind: input, shape index: {}]   ;;  %s6923_s5 = inlined_call_operand.vmem [shape: f32[2,16], index: 5, kind: input, shape index: {}]   ;;  %s6924_s6 = inlined_call_operand.vmem [shape: bf16[16,32], index: 6, kind: input, shape index: {}]   ;;  %s6925_s7 = inlined_call_operand.vmem [shape: bf16[32,32], index: 7, kind: input, shape index: {}]   ;;  %s6926_s8 = inlined_call_operand.vmem [shape: bf16[32,32], index: 8, kind: input, shape index: {}]   ;;  %s6927_s9 = inlined_call_operand.vmem [shape: bf16[32,96], index: 9, kind: input, shape index: {}]   ;;  %s6928_s10 = inlined_call_operand.vmem [shape: f32[1,96], index: 10, kind: input, shape index: {}]   ;;  %s6929_s11 = inlined_call_operand.vmem [shape: bf16[32,32], index: 11, kind: input, shape index: {}]   ;;  %s6930_s12 = inlined_call_operand.vmem [shape: bf16[32,32], index: 12, kind: input, shape index: {}]   ;;  %s6931_s13 = inlined_call_operand.vmem [shape: f32[1,32], index: 13, kind: input, shape index: {}]   ;;  %s6932_s14 = inlined_call_operand.vmem [shape: bf16[32,32], index: 14, kind: input, shape index: {}]   ;;  %s6933_s15 = inlined_call_operand.vmem [shape: f32[11,32], index: 15, kind: input, shape index: {}]   ;;  %s6934_s16 = inlined_call_operand.vmem [shape: bf16[2,32], index: 16, kind: input, shape index: {}]   ;;  %s6935_s17 = inlined_call_operand.vmem [shape: f32[2,1], index: 17, kind: input, shape index: {}]   ;;  %s6936_s18 = inlined_call_operand.vmem [shape: f32[128,128], index: 18, kind: input, shape index: {}]   ;;  %s6937_s19 = inlined_call_operand.hbm [shape: f32[2,1,128], index: 19, kind: output, shape index: {0}]   ;;  %s6938_s20 = inlined_call_operand.hbm [shape: f32[2,1,128], index: 20, kind: output, shape index: {1}]  }
   0x1   :  { %6943 = sst [smem:[#allocation9_spill]] %s6918_s0 }
   0x2   :  { %6944 = sst [smem:[#allocation10_spill]] %s6919_s1 }
   0x3   :  { %6945 = sst [smem:[#allocation11_spill]] %s6920_s2 }
   0x4   :  { %6946 = sst [smem:[#allocation12_spill]] %s6921_s3 }
   0x5   :  { %6947 = sst [smem:[#allocation13_spill]] %s6922_s4 }
   0x6   :  { %6948 = sst [smem:[#allocation14_spill]] %s6923_s5 }
   0x7   :  { %6949 = sst [smem:[#allocation15_spill]] %s6924_s6 }
   0x8   :  { %6950 = sst [smem:[#allocation16_spill]] %s6925_s7 }
   0x9   :  { %6951 = sst [smem:[#allocation17_spill]] %s6926_s8 }
   0xa   :  { %6952 = sst [smem:[#allocation18_spill]] %s6927_s9 }
   0xb   :  { %6953 = sst [smem:[#allocation19_spill]] %s6928_s10 }
   0xc   :  { %26 = vsyncpa [#allocation3], 0 }
   0xd   :  { %28 = vsyncpa [#allocation3 + $0x1], 0 }
   0xe   :  { %29 = vsyncpa [#allocation5], 0 }
   0xf   :  { %31 = vsyncpa [#allocation5 + $0x1], 0  ;;  %s5006_s1 = smov 0   ;;  %s5008_s22 = smov 0  }
  0x10   :  { %s5010_s23 = smov 0   ;;  %s5012_s24 = smov 0  }
  0x11 LB: > { %s5027_s2 = sadd.s32 4294967295, %s4891_s24   ;;  %s3986_s25 = sadd.s32 4294967294, %s4891_s24   ;;  %s4891_s24 = sphi %s5012_s24, %s6975_s24   ;;  %s4887_s23 = sphi %s5010_s23, %s6974_s23   ;;  %s4883_s22 = sphi %s5008_s22, %s6973_s22   ;;  %s4879_s1 = sphi %s5006_s1, %s6972_s1  }
  0x12   : > { %s5031_s3 = sadd.s32 1, %s4891_s24   ;;  %s458_s26 = sadd.s32 1, %s4887_s23 }
  0x13   : > { %s455_s27 = ssub.s32 %s4891_s24, %s5031_s3  ;;  %p468_p0 = scmp.ne.s32.totalorder %s4887_s23, %s4883_s22 }
  0x14   : > { %p456_p1 = scmp.eq.s32.totalorder %s455_s27, 0  ;;  %p469_p2 = scmp.eq.s32.totalorder %s5027_s2, 1 }
  0x15   : > { %p474_p3 = scmp.ne.s32.totalorder %s4883_s22, %s4879_s1  ;;  %p475_p4 = scmp.eq.s32.totalorder %s3986_s25, 1 }
  0x16   : > { %s5042_s28 = scalar_select %p456_p1, %s4887_s23, %s458_s26  }
  0x17   : > { %p5044_p5 = por %p469_p2, %p468_p0  ;;  %p5048_p6 = por %p475_p4, %p474_p3 }
  0x18   : > { %6954 = sst [smem:[#allocation8_spill]] %s5042_s28  ;;  %p3989_p7 = scmp.ge.s32.totalorder %s4891_s24, 1 }
  0x19   : > { %p589_p8 = scmp.lt.s32.totalorder %s4891_s24, 3 }
  0x1b   : > { %p590_p9 = pnand %p3989_p7, %p589_p8 }
  0x1c   : > { %p658_p10 = scmp.lt.s32.totalorder (!%p590_p9), %s5027_s2, 1  ;;  %v918_v0 = vlaneseq (!%p590_p9)  ;;  %vm708_vm0 = vcmask (!%p590_p9), 130048   ;;  %s6957_s26 = sld [smem:[#allocation10_spill]] (!%p590_p9)  ;;  %v706_v7 = vld [vmem:[%s6933_s15 + $0x8] sm:$0x7] (!%p590_p9)  ;;  %vm1525_vm1 = vcmask (!%p590_p9), 261120  }
  0x1d   : > { %593 = sbr.rel (%p590_p9) target bundleno = 3967 (0xf7f), region = 96  ;;  %s6958_s25 = sld [smem:[#allocation9_spill]] (!%p590_p9)  ;;  %vm4896_vm2 = vmmov (!%p590_p9), 0  }
  0x1e   : > { %v5059_v1 = vshrl.u32 (!%p590_p9), %v918_v0, 7  ;;  %s6959_s6 = sld [smem:[#allocation15_spill]] (!%p590_p9)  ;;  %s6960_s21 = sld [smem:[#allocation13_spill]] (!%p590_p9) }
  0x1f   : > { %s6961_s8 = sld [smem:[#allocation17_spill]] (!%p590_p9)  ;;  %s6962_s5 = sld [smem:[#allocation14_spill]] (!%p590_p9) }
  0x20   : > { %v5072_v3 = vsub.s32 (!%p590_p9), 1, %v5059_v1  ;;  %v1782_v4 = vsub.s32 (!%p590_p9), 2, %v5059_v1  ;;  %s6964_s7 = sld [smem:[#allocation16_spill]] (!%p590_p9)  ;;  %s6965_s9 = sld [smem:[#allocation18_spill]] (!%p590_p9) }
  0x21   : > { %s6966_s10 = sld [smem:[#allocation19_spill]] (!%p590_p9) }
  0x22   : > { %v5087_v9 = vrot.slane (!%p590_p9), %v706_v7, %v5072_v3  ;;  %v5091_v10 = vrot.slane (!%p590_p9), %v706_v7, %v1782_v4 }
  0x24   : > { %s5056_s30 = scalar_select %p658_p10, %s5027_s2, 1 }
  0x26   : > { %s4087_s0 = sshll.u32 %s5056_s30, 7 }
  0x27   : > { %s5066_s27 = scalar_lea.vmem %s6957_s26, %s4087_s0  ;;  %s5160_s28 = scalar_lea.vmem %s6958_s25, %s4087_s0 }
  0x28   : > { %v5069_v2 = vld [vmem:[%s5066_s27] sm:$0xff]  ;;  %v5076_v5 = vld [vmem:[%s5066_s27 + $0x10] sm:$0xff]  ;;  %v5079_v6 = vld [vmem:[%s5066_s27 + $0x8] sm:$0xff]  ;;  %s6963_s25 = sld [smem:[#allocation12_spill]]  ;;  %s4899_s0 = smov [#allocation2]  }
  0x29   : > { %v1100_v8 = vsel %vm708_vm0, %v5069_v2, 0.0  ;;  %v5094_v11 = vld [vmem:[%s5066_s27 + $0x18] sm:$0xff]  ;;  %v1106_v12 = vsel %vm708_vm0, %v5076_v5, 0.0  ;;  %v1103_v13 = vsel %vm708_vm0, %v5079_v6, 0.0  ;;  %v5101_v14 = vld [vmem:[%s5066_s27 + $0x20] sm:$0xff]  ;;  %v5106_v16 = vld [vmem:[%s5066_s27 + $0x28] sm:$0xff] }
  0x2a   : > { %1101 = vadd.xlane.f32.xlu0 %v1100_v8  ;;  %1107 = vadd.xlane.f32.xlu1 %v1106_v12  ;;  %v1109_v15 = vsel %vm708_vm0, %v5094_v11, 0.0  ;;  %v1112_v17 = vsel %vm708_vm0, %v5101_v14, 0.0  ;;  %v5111_v18 = vld [vmem:[%s5066_s27 + $0x30] sm:$0xff]  ;;  %v5114_v19 = vld [vmem:[%s5066_s27 + $0x38] sm:$0xff]  ;;  %v1115_v20 = vsel %vm708_vm0, %v5106_v16, 0.0  ;;  %v5119_v21 = vld [vmem:[%s5066_s27 + $0x40] sm:$0xff] }
  0x2b   : > { %v5122_v22 = vld [vmem:[%s5066_s27 + $0x48] sm:$0xff]  ;;  %v1118_v23 = vsel %vm708_vm0, %v5111_v18, 0.0  ;;  %v1121_v24 = vsel %vm708_vm0, %v5114_v19, 0.0  ;;  %v1124_v25 = vsel %vm708_vm0, %v5119_v21, 0.0  ;;  %v5133_v27 = vld [vmem:[%s5066_s27 + $0x50] sm:$0xff]  ;;  %v5136_v28 = vld [vmem:[%s5066_s27 + $0x58] sm:$0xff] }
  0x2c   : > { %v1127_v26 = vsel %vm708_vm0, %v5122_v22, 0.0  ;;  %v1130_v29 = vsel %vm708_vm0, %v5133_v27, 0.0  ;;  %v5141_v30 = vld [vmem:[%s5066_s27 + $0x60] sm:$0xff]  ;;  %v1133_v31 = vsel %vm708_vm0, %v5136_v28, 0.0  ;;  %v5146_v32 = vld [vmem:[%s5066_s27 + $0x68] sm:$0xff]  ;;  %v5151_v34 = vld [vmem:[%s5066_s27 + $0x70] sm:$0xff] }
  0x2d   : > { %v1136_v33 = vsel %vm708_vm0, %v5141_v30, 0.0  ;;  %v1139_v35 = vsel %vm708_vm0, %v5146_v32, 0.0  ;;  %v5163_v36 = vld [vmem:[%s5066_s27 + $0x78] sm:$0xff]  ;;  %v1142_v37 = vsel %vm708_vm0, %v5151_v34, 0.0  ;;  %v5168_v38 = vld [vmem:[%s5160_s28] sm:$0xff]  ;;  %v5173_v40 = vld [vmem:[%s5160_s28 + $0x8] sm:$0xff] }
  0x2e   : > { %1104 = vadd.xlane.f32.xlu0 %v1103_v13  ;;  %1110 = vadd.xlane.f32.xlu1 %v1109_v15  ;;  %v1145_v39 = vsel %vm708_vm0, %v5163_v36, 0.0  ;;  %v709_v41 = vsel %vm708_vm0, %v5168_v38, 0.0  ;;  %v5178_v42 = vld [vmem:[%s5160_s28 + $0x10] sm:$0xff]  ;;  %v712_v43 = vsel %vm708_vm0, %v5173_v40, 0.0  ;;  %v5183_v44 = vld [vmem:[%s5160_s28 + $0x18] sm:$0xff]  ;;  %v5188_v46 = vld [vmem:[%s5160_s28 + $0x20] sm:$0xff] }
  0x2f   : > { %v715_v45 = vsel %vm708_vm0, %v5178_v42, 0.0  ;;  %v718_v47 = vsel %vm708_vm0, %v5183_v44, 0.0  ;;  %v5193_v48 = vld [vmem:[%s5160_s28 + $0x28] sm:$0xff]  ;;  %v721_v49 = vsel %vm708_vm0, %v5188_v46, 0.0  ;;  %v5198_v50 = vld [vmem:[%s5160_s28 + $0x30] sm:$0xff]  ;;  %v5203_v52 = vld [vmem:[%s5160_s28 + $0x38] sm:$0xff] }
  0x30   : > { %v724_v51 = vsel %vm708_vm0, %v5193_v48, 0.0  ;;  %v727_v53 = vsel %vm708_vm0, %v5198_v50, 0.0  ;;  %v5208_v54 = vld [vmem:[%s5160_s28 + $0x40] sm:$0xff]  ;;  %v730_v55 = vsel %vm708_vm0, %v5203_v52, 0.0  ;;  %v5213_v56 = vld [vmem:[%s5160_s28 + $0x48] sm:$0xff]  ;;  %v5218_v58 = vld [vmem:[%s5160_s28 + $0x50] sm:$0xff] }
  0x31   : > { %v733_v57 = vsel %vm708_vm0, %v5208_v54, 0.0  ;;  %v736_v59 = vsel %vm708_vm0, %v5213_v56, 0.0  ;;  %v5223_v60 = vld [vmem:[%s5160_s28 + $0x58] sm:$0xff]  ;;  %v739_v61 = vsel %vm708_vm0, %v5218_v58, 0.0  ;;  %v5228_v62 = vld [vmem:[%s5160_s28 + $0x60] sm:$0xff]  ;;  %v5233_v0 = vld [vmem:[%s5160_s28 + $0x68] sm:$0xff] }
  0x32   : > { %1113 = vadd.xlane.f32.xlu0 %v1112_v17  ;;  %1116 = vadd.xlane.f32.xlu1 %v1115_v20  ;;  %v742_v63 = vsel %vm708_vm0, %v5223_v60, 0.0  ;;  %v745_v7 = vsel %vm708_vm0, %v5228_v62, 0.0  ;;  %v5238_v8 = vld [vmem:[%s5160_s28 + $0x70] sm:$0xff]  ;;  %v748_v12 = vsel %vm708_vm0, %v5233_v0, 0.0  ;;  %v5243_v13 = vld [vmem:[%s5160_s28 + $0x78] sm:$0xff]  ;;  %s6967_s27 = sld [smem:[#allocation11_spill]] }
  0x33   : > { %v751_v15 = vsel %vm708_vm0, %v5238_v8, 0.0  ;;  %v754_v17 = vsel %vm708_vm0, %v5243_v13, 0.0  ;;  %s6823_s28 = sand.u32 1, %s4883_s22  }
  0x36   : > { %1119 = vadd.xlane.f32.xlu0 %v1118_v23  ;;  %1122 = vadd.xlane.f32.xlu1 %v1121_v24 }
  0x38   : > { %s5760_s26 = scalar_lea.vmem %s6967_s27, %s5056_s30  ;;  %s6968_s27 = smov 64  }
  0x3a   : > { %1125 = vadd.xlane.f32.xlu0 %v1124_v25  ;;  %1128 = vadd.xlane.f32.xlu1 %v1127_v26 }
  0x3e   : > { %1131 = vadd.xlane.f32.xlu0 %v1130_v29  ;;  %1134 = vadd.xlane.f32.xlu1 %v1133_v31 }
  0x42   : > { %1137 = vadd.xlane.f32.xlu0 %v1136_v33  ;;  %1140 = vadd.xlane.f32.xlu1 %v1139_v35 }
  0x46   : > { %1143 = vadd.xlane.f32.xlu0 %v1142_v37  ;;  %1146 = vadd.xlane.f32.xlu1 %v1145_v39 }
  0x4a   : > { %710 = vadd.xlane.f32.xlu0 %v709_v41  ;;  %713 = vadd.xlane.f32.xlu1 %v712_v43 }
  0x4e   : > { %716 = vadd.xlane.f32.xlu0 %v715_v45  ;;  %719 = vadd.xlane.f32.xlu1 %v718_v47 }
  0x52   : > { %722 = vadd.xlane.f32.xlu0 %v721_v49  ;;  %725 = vadd.xlane.f32.xlu1 %v724_v51 }
  0x56   : > { %728 = vadd.xlane.f32.xlu0 %v727_v53  ;;  %731 = vadd.xlane.f32.xlu1 %v730_v55 }
  0x5a   : > { %734 = vadd.xlane.f32.xlu0 %v733_v57  ;;  %737 = vadd.xlane.f32.xlu1 %v736_v59 }
  0x5e   : > { %740 = vadd.xlane.f32.xlu0 %v739_v61  ;;  %743 = vadd.xlane.f32.xlu1 %v742_v63 }
  0x62   : > { %746 = vadd.xlane.f32.xlu0 %v745_v7  ;;  %749 = vadd.xlane.f32.xlu1 %v748_v12 }
  0x66   : > { %752 = vadd.xlane.f32.xlu0 %v751_v15  ;;  %755 = vadd.xlane.f32.xlu1 %v754_v17 }
  0xb7   : > { %v1102_v20 = vpop.xlane.xlu0 %1101  ;;  %v1108_v24 = vpop.xlane.xlu1 %1107 }
  0xb8   : > { %v1148_v23 = vmul.f32 0.0625, %v1102_v20  ;;  %v1150_v26 = vmul.f32 0.0625, %v1108_v24 }
  0xba   : > { %v5250_v25 = vsub.f32 %v5069_v2, %v1148_v23  ;;  %v5253_v31 = vsub.f32 %v5076_v5, %v1150_v26 }
  0xbb   : > { %v1105_v29 = vpop.xlane.xlu0 %1104  ;;  %v1111_v37 = vpop.xlane.xlu1 %1110 }
  0xbc   : > { %v1149_v33 = vmul.f32 0.0625, %v1105_v29  ;;  %v1180_v35 = vmul.f32 %v5250_v25, %v5250_v25  ;;  %v1151_v41 = vmul.f32 0.0625, %v1111_v37  ;;  %v1182_v2 = vmul.f32 %v5253_v31, %v5253_v31 }
  0xbe   : > { %v5258_v39 = vsub.f32 %v5079_v6, %v1149_v33  ;;  %v1196_v43 = vsel %vm708_vm0, %v1180_v35, 0.0  ;;  %v5264_v47 = vsub.f32 %v5094_v11, %v1151_v41  ;;  %v1202_v51 = vsel %vm708_vm0, %v1182_v2, 0.0 }
  0xbf   : > { %v1114_v45 = vpop.xlane.xlu0 %1113  ;;  %1197 = vadd.xlane.f32.xlu0 %v1196_v43  ;;  %v1117_v53 = vpop.xlane.xlu1 %1116 }
  0xc0   : > { %v1152_v5 = vmul.f32 0.0625, %v1114_v45  ;;  %v1181_v49 = vmul.f32 %v5258_v39, %v5258_v39  ;;  %v1153_v55 = vmul.f32 0.0625, %v1117_v53  ;;  %v1183_v59 = vmul.f32 %v5264_v47, %v5264_v47 }
  0xc2   : > { %v5270_v6 = vsub.f32 %v5101_v14, %v1152_v5  ;;  %v1199_v57 = vsel %vm708_vm0, %v1181_v49, 0.0  ;;  %v5276_v11 = vsub.f32 %v5106_v16, %v1153_v55  ;;  %v1205_v7 = vsel %vm708_vm0, %v1183_v59, 0.0 }
  0xc3   : > { %v1120_v61 = vpop.xlane.xlu0 %1119  ;;  %1200 = vadd.xlane.f32.xlu1 %v1199_v57  ;;  %1203 = vadd.xlane.f32.xlu0 %v1202_v51  ;;  %v1123_v14 = vpop.xlane.xlu1 %1122 }
  0xc4   : > { %v1154_v63 = vmul.f32 0.0625, %v1120_v61  ;;  %v1184_v12 = vmul.f32 %v5270_v6, %v5270_v6  ;;  %v1155_v17 = vmul.f32 0.0625, %v1123_v14  ;;  %v1185_v23 = vmul.f32 %v5276_v11, %v5276_v11 }
  0xc6   : > { %v5282_v15 = vsub.f32 %v5111_v18, %v1154_v63  ;;  %v1208_v20 = vsel %vm708_vm0, %v1184_v12, 0.0  ;;  %v5288_v16 = vsub.f32 %v5114_v19, %v1155_v17  ;;  %v1211_v29 = vsel %vm708_vm0, %v1185_v23, 0.0 }
  0xc7   : > { %v1126_v24 = vpop.xlane.xlu0 %1125  ;;  %1206 = vadd.xlane.f32.xlu1 %v1205_v7  ;;  %1209 = vadd.xlane.f32.xlu0 %v1208_v20  ;;  %v1129_v18 = vpop.xlane.xlu1 %1128 }
  0xc8   : > { %v1156_v26 = vmul.f32 0.0625, %v1126_v24  ;;  %v1186_v33 = vmul.f32 %v5282_v15, %v5282_v15  ;;  %v1157_v37 = vmul.f32 0.0625, %v1129_v18  ;;  %v1187_v43 = vmul.f32 %v5288_v16, %v5288_v16 }
  0xca   : > { %v5294_v35 = vsub.f32 %v5119_v21, %v1156_v26  ;;  %v1214_v41 = vsel %vm708_vm0, %v1186_v33, 0.0  ;;  %v5300_v19 = vsub.f32 %v5122_v22, %v1157_v37  ;;  %v1217_v5 = vsel %vm708_vm0, %v1187_v43, 0.0 }
  0xcb   : > { %v1132_v2 = vpop.xlane.xlu0 %1131  ;;  %1212 = vadd.xlane.f32.xlu1 %v1211_v29  ;;  %1215 = vadd.xlane.f32.xlu0 %v1214_v41  ;;  %v1135_v21 = vpop.xlane.xlu1 %1134 }
  0xcc   : > { %v1158_v45 = vmul.f32 0.0625, %v1132_v2  ;;  %v1188_v49 = vmul.f32 %v5294_v35, %v5294_v35  ;;  %v1159_v53 = vmul.f32 0.0625, %v1135_v21  ;;  %v1189_v57 = vmul.f32 %v5300_v19, %v5300_v19 }
  0xce   : > { %v5306_v51 = vsub.f32 %v5133_v27, %v1158_v45  ;;  %v1220_v55 = vsel %vm708_vm0, %v1188_v49, 0.0  ;;  %v5312_v22 = vsub.f32 %v5136_v28, %v1159_v53  ;;  %v1223_v63 = vsel %vm708_vm0, %v1189_v57, 0.0 }
  0xcf   : > { %v1138_v59 = vpop.xlane.xlu0 %1137  ;;  %1218 = vadd.xlane.f32.xlu1 %v1217_v5  ;;  %1221 = vadd.xlane.f32.xlu0 %v1220_v55  ;;  %v1141_v27 = vpop.xlane.xlu1 %1140 }
  0xd0   : > { %v1160_v61 = vmul.f32 0.0625, %v1138_v59  ;;  %v1190_v7 = vmul.f32 %v5306_v51, %v5306_v51  ;;  %v1161_v14 = vmul.f32 0.0625, %v1141_v27  ;;  %v1191_v20 = vmul.f32 %v5312_v22, %v5312_v22 }
  0xd2   : > { %v5318_v12 = vsub.f32 %v5141_v30, %v1160_v61  ;;  %v1226_v17 = vsel %vm708_vm0, %v1190_v7, 0.0  ;;  %v5324_v28 = vsub.f32 %v5146_v32, %v1161_v14  ;;  %v1229_v26 = vsel %vm708_vm0, %v1191_v20, 0.0 }
  0xd3   : > { %v1144_v23 = vpop.xlane.xlu0 %1143  ;;  %1224 = vadd.xlane.f32.xlu1 %v1223_v63  ;;  %1227 = vadd.xlane.f32.xlu0 %v1226_v17  ;;  %v1147_v30 = vpop.xlane.xlu1 %1146 }
  0xd4   : > { %v1162_v24 = vmul.f32 0.0625, %v1144_v23  ;;  %v1192_v29 = vmul.f32 %v5318_v12, %v5318_v12  ;;  %v1163_v18 = vmul.f32 0.0625, %v1147_v30  ;;  %v1193_v41 = vmul.f32 %v5324_v28, %v5324_v28 }
  0xd6   : > { %v5330_v33 = vsub.f32 %v5151_v34, %v1162_v24  ;;  %v1232_v37 = vsel %vm708_vm0, %v1192_v29, 0.0  ;;  %v5336_v43 = vsub.f32 %v5163_v36, %v1163_v18  ;;  %v1235_v45 = vsel %vm708_vm0, %v1193_v41, 0.0 }
  0xd7   : > { %1230 = vadd.xlane.f32.xlu1 %v1229_v26  ;;  %1233 = vadd.xlane.f32.xlu0 %v1232_v37  ;;  %v711_v32 = vpop.xlane.xlu0 %710  ;;  %v714_v34 = vpop.xlane.xlu1 %713 }
  0xd8   : > { %v758_v2 = vmul.f32 0.0625, %v711_v32  ;;  %v1194_v5 = vmul.f32 %v5330_v33, %v5330_v33  ;;  %v759_v21 = vmul.f32 0.0625, %v714_v34  ;;  %v1195_v55 = vmul.f32 %v5336_v43, %v5336_v43 }
  0xda   : > { %v5342_v49 = vsub.f32 %v5168_v38, %v758_v2  ;;  %v1238_v53 = vsel %vm708_vm0, %v1194_v5, 0.0  ;;  %v5348_v57 = vsub.f32 %v5173_v40, %v759_v21  ;;  %v1241_v61 = vsel %vm708_vm0, %v1195_v55, 0.0  ;;  %v4523_v55 = vld [vmem:[%s6959_s6] sm:$0xff]  }
  0xdb   : > { %1236 = vadd.xlane.f32.xlu1 %v1235_v45  ;;  %1239 = vadd.xlane.f32.xlu0 %v1238_v53  ;;  %v717_v36 = vpop.xlane.xlu0 %716  ;;  %v720_v38 = vpop.xlane.xlu1 %719 }
  0xdc   : > { %v760_v59 = vmul.f32 0.0625, %v717_v36  ;;  %v790_v63 = vmul.f32 %v5342_v49, %v5342_v49  ;;  %v761_v27 = vmul.f32 0.0625, %v720_v38  ;;  %v791_v17 = vmul.f32 %v5348_v57, %v5348_v57  ;;  %4226 = vmatprep.subr.bf16.mxu1 %v4523_v55 }
  0xdd   : > { %4227 = vmatpush3.bf16.msra.mxu1 %v4523_v55 }
  0xde   : > { %v5354_v7 = vsub.f32 %v5178_v42, %v760_v59  ;;  %v806_v14 = vsel %vm708_vm0, %v790_v63, 0.0  ;;  %v5360_v20 = vsub.f32 %v5183_v44, %v761_v27  ;;  %v809_v24 = vsel %vm708_vm0, %v791_v17, 0.0 }
  0xdf   : > { %1242 = vadd.xlane.f32.xlu1 %v1241_v61  ;;  %807 = vadd.xlane.f32.xlu0 %v806_v14  ;;  %v723_v40 = vpop.xlane.xlu0 %722  ;;  %v726_v42 = vpop.xlane.xlu1 %725 }
  0xe0   : > { %v762_v23 = vmul.f32 0.0625, %v723_v40  ;;  %v792_v26 = vmul.f32 %v5354_v7, %v5354_v7  ;;  %v763_v30 = vmul.f32 0.0625, %v726_v42  ;;  %v793_v37 = vmul.f32 %v5360_v20, %v5360_v20 }
  0xe2   : > { %v5366_v29 = vsub.f32 %v5188_v46, %v762_v23  ;;  %v812_v18 = vsel %vm708_vm0, %v792_v26, 0.0  ;;  %v5372_v41 = vsub.f32 %v5193_v48, %v763_v30  ;;  %v815_v2 = vsel %vm708_vm0, %v793_v37, 0.0 }
  0xe3   : > { %810 = vadd.xlane.f32.xlu1 %v809_v24  ;;  %813 = vadd.xlane.f32.xlu0 %v812_v18  ;;  %v729_v44 = vpop.xlane.xlu0 %728  ;;  %v732_v46 = vpop.xlane.xlu1 %731 }
  0xe4   : > { %v764_v32 = vmul.f32 0.0625, %v729_v44  ;;  %v794_v45 = vmul.f32 %v5366_v29, %v5366_v29  ;;  %v765_v34 = vmul.f32 0.0625, %v732_v46  ;;  %v795_v53 = vmul.f32 %v5372_v41, %v5372_v41 }
  0xe6   : > { %v5378_v5 = vsub.f32 %v5198_v50, %v764_v32  ;;  %v818_v21 = vsel %vm708_vm0, %v794_v45, 0.0  ;;  %v5387_v36 = vsub.f32 %v5203_v52, %v765_v34  ;;  %v821_v50 = vsel %vm708_vm0, %v795_v53, 0.0 }
  0xe7   : > { %816 = vadd.xlane.f32.xlu1 %v815_v2  ;;  %819 = vadd.xlane.f32.xlu0 %v818_v21  ;;  %v735_v48 = vpop.xlane.xlu0 %734  ;;  %v738_v63 = vpop.xlane.xlu1 %737 }
  0xe8   : > { %v766_v59 = vmul.f32 0.0625, %v735_v48  ;;  %v796_v61 = vmul.f32 %v5378_v5, %v5378_v5  ;;  %v767_v27 = vmul.f32 0.0625, %v738_v63  ;;  %v797_v17 = vmul.f32 %v5387_v36, %v5387_v36 }
  0xea   : > { %v5393_v38 = vsub.f32 %v5208_v54, %v766_v59  ;;  %v824_v14 = vsel %vm708_vm0, %v796_v61, 0.0  ;;  %v5399_v40 = vsub.f32 %v5213_v56, %v767_v27  ;;  %v827_v24 = vsel %vm708_vm0, %v797_v17, 0.0 }
  0xeb   : > { %822 = vadd.xlane.f32.xlu1 %v821_v50  ;;  %825 = vadd.xlane.f32.xlu0 %v824_v14  ;;  %v741_v52 = vpop.xlane.xlu0 %740  ;;  %v744_v26 = vpop.xlane.xlu1 %743 }
  0xec   : > { %v768_v23 = vmul.f32 0.0625, %v741_v52  ;;  %v798_v54 = vmul.f32 %v5393_v38, %v5393_v38  ;;  %v769_v30 = vmul.f32 0.0625, %v744_v26  ;;  %v799_v37 = vmul.f32 %v5399_v40, %v5399_v40 }
  0xee   : > { %v5405_v42 = vsub.f32 %v5218_v58, %v768_v23  ;;  %v830_v18 = vsel %vm708_vm0, %v798_v54, 0.0  ;;  %v5411_v44 = vsub.f32 %v5223_v60, %v769_v30  ;;  %v833_v2 = vsel %vm708_vm0, %v799_v37, 0.0  ;;  %v5450_v54 = vld [vmem:[%s6961_s8] sm:$0xff]  }
  0xef   : > { %828 = vadd.xlane.f32.xlu1 %v827_v24  ;;  %831 = vadd.xlane.f32.xlu0 %v830_v18  ;;  %v747_v56 = vpop.xlane.xlu0 %746  ;;  %v750_v58 = vpop.xlane.xlu1 %749 }
  0xf0   : > { %v770_v32 = vmul.f32 0.0625, %v747_v56  ;;  %v800_v45 = vmul.f32 %v5405_v42, %v5405_v42  ;;  %v771_v34 = vmul.f32 0.0625, %v750_v58  ;;  %v801_v53 = vmul.f32 %v5411_v44, %v5411_v44 }
  0xf2   : > { %v5417_v46 = vsub.f32 %v5228_v62, %v770_v32  ;;  %v836_v21 = vsel %vm708_vm0, %v800_v45, 0.0  ;;  %v5423_v48 = vsub.f32 %v5233_v0, %v771_v34  ;;  %v839_v59 = vsel %vm708_vm0, %v801_v53, 0.0 }
  0xf3   : > { %834 = vadd.xlane.f32.xlu1 %v833_v2  ;;  %837 = vadd.xlane.f32.xlu0 %v836_v21  ;;  %v753_v60 = vpop.xlane.xlu0 %752  ;;  %v756_v62 = vpop.xlane.xlu1 %755 }
  0xf4   : > { %v772_v55 = vmul.f32 0.0625, %v753_v60  ;;  %v802_v50 = vmul.f32 %v5417_v46, %v5417_v46  ;;  %v773_v63 = vmul.f32 0.0625, %v756_v62  ;;  %v803_v14 = vmul.f32 %v5423_v48, %v5423_v48 }
  0xf6   : > { %v5429_v61 = vsub.f32 %v5238_v8, %v772_v55  ;;  %v842_v27 = vsel %vm708_vm0, %v802_v50, 0.0  ;;  %v5435_v0 = vsub.f32 %v5243_v13, %v773_v63  ;;  %v845_v17 = vsel %vm708_vm0, %v803_v14, 0.0  ;;  %v4524_v13 = vld [vmem:[%s6960_s21] sm:$0xff]   ;;  %s4893_s21 = smov 96  }
  0xf7   : > { %840 = vadd.xlane.f32.xlu1 %v839_v59  ;;  %843 = vadd.xlane.f32.xlu0 %v842_v27  ;;  %v5454_v50 = vsub.s32 0, %v5059_v1  ;;  %v1099_v27 = vld [vmem:[%s6962_s5] sm:$0x3] }
  0xf8   : > { %v804_v52 = vmul.f32 %v5429_v61, %v5429_v61  ;;  %v805_v8 = vmul.f32 %v5435_v0, %v5435_v0  ;;  %4208 = vmatprep.subr.bf16.mxu0 %v4524_v13 }
  0xf9   : > { %4209 = vmatpush3.bf16.msra.mxu0 %v4524_v13 }
  0xfa   : > { %v848_v23 = vsel %vm708_vm0, %v804_v52, 0.0  ;;  %v851_v24 = vsel %vm708_vm0, %v805_v8, 0.0  ;;  %4244 = vmatprep.subr.bf16.mxu0 %v5450_v54 }
  0xfb   : > { %846 = vadd.xlane.f32.xlu1 %v845_v17  ;;  %849 = vadd.xlane.f32.xlu0 %v848_v23 }
  0xff   : > { %852 = vadd.xlane.f32.xlu1 %v851_v24  ;;  %v5460_v24 = vrot.slane %v1099_v27, %v5454_v50 }
 0x14c   : > { %v1198_v26 = vpop.xlane.xlu0 %1197 }
 0x14d   : > { %v1244_v30 = vmul.f32 0.0625, %v1198_v26 }
 0x14f   : > { %v1260_v18 = vadd.f32 1e-05, %v1244_v30 }
 0x150   : > { %v1201_v37 = vpop.xlane.xlu1 %1200  ;;  %v1204_v56 = vpop.xlane.xlu0 %1203 }
 0x151   : > { %4537 = vrsqrt.f32 %v1260_v18  ;;  %v1245_v32 = vmul.f32 0.0625, %v1201_v37  ;;  %v1246_v2 = vmul.f32 0.0625, %v1204_v56 }
 0x153   : > { %v1261_v45 = vadd.f32 1e-05, %v1245_v32  ;;  %v1262_v58 = vadd.f32 1e-05, %v1246_v2 }
 0x154   : > { %v1207_v34 = vpop.xlane.xlu1 %1206  ;;  %v1210_v21 = vpop.xlane.xlu0 %1209 }
 0x155   : > { %4539 = vrsqrt.f32 %v1261_v45  ;;  %v1247_v53 = vmul.f32 0.0625, %v1207_v34  ;;  %v1248_v60 = vmul.f32 0.0625, %v1210_v21 }
 0x156   : > { %4541 = vrsqrt.f32 %v1262_v58  ;;  %v5464_v58 = vrot.slane %v1099_v27, %v5072_v3 }
 0x157   : > { %v1263_v55 = vadd.f32 1e-05, %v1247_v53  ;;  %v1264_v59 = vadd.f32 1e-05, %v1248_v60 }
 0x158   : > { %v1213_v62 = vpop.xlane.xlu1 %1212  ;;  %v1216_v63 = vpop.xlane.xlu0 %1215 }
 0x159   : > { %4543 = vrsqrt.f32 %v1263_v55  ;;  %v1249_v14 = vmul.f32 0.0625, %v1213_v62  ;;  %v1250_v17 = vmul.f32 0.0625, %v1216_v63 }
 0x15a   : > { %4545 = vrsqrt.f32 %v1264_v59 }
 0x15b   : > { %v4538_v52 = vpop.eup %4537  ;;  %v1265_v23 = vadd.f32 1e-05, %v1249_v14  ;;  %v1266_v8 = vadd.f32 1e-05, %v1250_v17 }
 0x15c   : > { %v1219_v13 = vpop.xlane.xlu1 %1218  ;;  %v1222_v26 = vpop.xlane.xlu0 %1221  ;;  %v1292_v30 = vmul.f32 %v4538_v52, %v5250_v25 }
 0x15d   : > { %4547 = vrsqrt.f32 %v1265_v23  ;;  %v1251_v18 = vmul.f32 0.0625, %v1219_v13  ;;  %v1252_v37 = vmul.f32 0.0625, %v1222_v26 }
 0x15e   : > { %4549 = vrsqrt.f32 %v1266_v8  ;;  %v1312_v60 = vmul.f32 %v5460_v24, %v1292_v30 }
 0x15f   : > { %v4540_v56 = vpop.eup %4539  ;;  %v1267_v32 = vadd.f32 1e-05, %v1251_v18  ;;  %v1268_v2 = vadd.f32 1e-05, %v1252_v37 }
 0x160   : > { %v4542_v45 = vpop.eup %4541  ;;  %v1225_v34 = vpop.xlane.xlu1 %1224  ;;  %v1293_v53 = vmul.f32 %v4540_v56, %v5258_v39  ;;  %v1332_v8 = vadd.f32 %v5464_v58, %v1312_v60 }
 0x161   : > { %v1228_v21 = vpop.xlane.xlu0 %1227  ;;  %4551 = vrsqrt.f32 %v1267_v32  ;;  %v1253_v55 = vmul.f32 0.0625, %v1225_v34  ;;  %v1294_v59 = vmul.f32 %v4542_v45, %v5253_v31 }
 0x162   : > { %v1254_v25 = vmul.f32 0.0625, %v1228_v21  ;;  %4553 = vrsqrt.f32 %v1268_v2  ;;  %v1313_v62 = vmul.f32 %v5460_v24, %v1293_v53 }
 0x163   : > { %v4544_v63 = vpop.eup %4543  ;;  %v1269_v14 = vadd.f32 1e-05, %v1253_v55  ;;  %v1314_v26 = vmul.f32 %v5460_v24, %v1294_v59 }
 0x164   : > { %v1270_v17 = vadd.f32 1e-05, %v1254_v25  ;;  %v4546_v52 = vpop.eup %4545  ;;  %v1231_v27 = vpop.xlane.xlu1 %1230  ;;  %v1333_v39 = vadd.f32 %v5464_v58, %v1313_v62  ;;  %v1295_v13 = vmul.f32 %v4544_v63, %v5264_v47 }
 0x165   : > { %v1234_v23 = vpop.xlane.xlu0 %1233  ;;  %4555 = vrsqrt.f32 %v1269_v14  ;;  %v1255_v30 = vmul.f32 0.0625, %v1231_v27  ;;  %v1296_v56 = vmul.f32 %v4546_v52, %v5270_v6  ;;  %v1334_v47 = vadd.f32 %v5464_v58, %v1314_v26 }
 0x166   : > { %v1256_v31 = vmul.f32 0.0625, %v1234_v23  ;;  %4557 = vrsqrt.f32 %v1270_v17  ;;  %v1348_v18 = vpack.c.bf16 %v1333_v39, %v1332_v8  ;;  %v1315_v37 = vmul.f32 %v5460_v24, %v1295_v13 }
 0x167   : > { %v4548_v32 = vpop.eup %4547  ;;  %v1271_v2 = vadd.f32 1e-05, %v1255_v30  ;;  %v1316_v25 = vmul.f32 %v5460_v24, %v1296_v56 }
 0x168   : > { %v1272_v45 = vadd.f32 1e-05, %v1256_v31  ;;  %v4550_v34 = vpop.eup %4549  ;;  %v1237_v21 = vpop.xlane.xlu1 %1236  ;;  %4228 = vmatprep.mubr.msk.bf16.mxu1 %vm708_vm0, %v1348_v18  ;;  %v1335_v60 = vadd.f32 %v5464_v58, %v1315_v37  ;;  %v1297_v55 = vmul.f32 %v4548_v32, %v5276_v11 }
 0x169   : > { %v1240_v53 = vpop.xlane.xlu0 %1239  ;;  %4559 = vrsqrt.f32 %v1271_v2  ;;  %v1257_v59 = vmul.f32 0.0625, %v1237_v21  ;;  %v1298_v6 = vmul.f32 %v4550_v34, %v5282_v15  ;;  %v1336_v11 = vadd.f32 %v5464_v58, %v1316_v25 }
 0x16a   : > { %v1258_v62 = vmul.f32 0.0625, %v1240_v53  ;;  %4561 = vrsqrt.f32 %v1272_v45  ;;  %v1349_v63 = vpack.c.bf16 %v1335_v60, %v1334_v47  ;;  %v1317_v14 = vmul.f32 %v5460_v24, %v1297_v55 }
 0x16b   : > { %v4552_v17 = vpop.eup %4551  ;;  %v1273_v52 = vadd.f32 1e-05, %v1257_v59  ;;  %v1318_v15 = vmul.f32 %v5460_v24, %v1298_v6 }
 0x16c   : > { %v1274_v27 = vadd.f32 1e-05, %v1258_v62  ;;  %v4554_v23 = vpop.eup %4553  ;;  %v1243_v8 = vpop.xlane.xlu1 %1242  ;;  %4229 = vmatmul.mubr.msk.bf16.vlgmr.msra.gmra.mrb[0].mxu1 %vm708_vm0, %v1349_v63  ;;  %v1337_v13 = vadd.f32 %v5464_v58, %v1317_v14  ;;  %v1299_v26 = vmul.f32 %v4552_v17, %v5288_v16 }
 0x16d   : > { %v808_v39 = vpop.xlane.xlu0 %807  ;;  %4563 = vrsqrt.f32 %v1273_v52  ;;  %v1259_v30 = vmul.f32 0.0625, %v1243_v8  ;;  %v1300_v56 = vmul.f32 %v4554_v23, %v5294_v35  ;;  %v1338_v16 = vadd.f32 %v5464_v58, %v1318_v15 }
 0x16e   : > { %v854_v31 = vmul.f32 0.0625, %v808_v39  ;;  %4565 = vrsqrt.f32 %v1274_v27  ;;  %v1350_v18 = vpack.c.bf16 %v1337_v13, %v1336_v11  ;;  %v1319_v37 = vmul.f32 %v5460_v24, %v1299_v26 }
 0x16f   : > { %v4556_v32 = vpop.eup %4555  ;;  %v1275_v2 = vadd.f32 1e-05, %v1259_v30  ;;  %v1320_v55 = vmul.f32 %v5460_v24, %v1300_v56 }
 0x170   : > { %v870_v45 = vadd.f32 1e-05, %v854_v31  ;;  %v4558_v34 = vpop.eup %4557  ;;  %v811_v21 = vpop.xlane.xlu1 %810  ;;  %4232 = vmatprep.mubr.msk.bf16.mxu1 %vm708_vm0, %v1350_v18  ;;  %v1339_v47 = vadd.f32 %v5464_v58, %v1319_v37  ;;  %v1301_v60 = vmul.f32 %v4556_v32, %v5300_v19  ;;  %v707_v32 = vld [vmem:[%s6963_s25] sm:$0x3]  ;;  %s6939_s25 = smov 64  }
 0x171   : > { %v814_v53 = vpop.xlane.xlu0 %813  ;;  %4567 = vrsqrt.f32 %v1275_v2  ;;  %v855_v25 = vmul.f32 0.0625, %v811_v21  ;;  %v1302_v35 = vmul.f32 %v4558_v34, %v5306_v51  ;;  %v1340_v19 = vadd.f32 %v5464_v58, %v1320_v55 }
 0x172   : > { %v856_v59 = vmul.f32 0.0625, %v814_v53  ;;  %4569 = vrsqrt.f32 %v870_v45  ;;  %v1351_v62 = vpack.c.bf16 %v1339_v47, %v1338_v16  ;;  %v1321_v6 = vmul.f32 %v5460_v24, %v1301_v60 }
 0x173   : > { %v4560_v63 = vpop.eup %4559  ;;  %v871_v14 = vadd.f32 1e-05, %v855_v25  ;;  %v1322_v51 = vmul.f32 %v5460_v24, %v1302_v35 }
 0x174   : > { %v872_v17 = vadd.f32 1e-05, %v856_v59  ;;  %v4562_v52 = vpop.eup %4561  ;;  %v817_v27 = vpop.xlane.xlu1 %816  ;;  %4233 = vmatmul.mubr.msk.bf16.gmra.mrb[4].mxu1 %vm708_vm0, %v1351_v62  ;;  %v1341_v8 = vadd.f32 %v5464_v58, %v1321_v6  ;;  %v1303_v39 = vmul.f32 %v4560_v63, %v5312_v22  ;;  %v5515_v59 = vrot.slane %v707_v32, %v5454_v50 }
 0x175   : > { %v820_v23 = vpop.xlane.xlu0 %819  ;;  %4571 = vrsqrt.f32 %v871_v14  ;;  %v857_v11 = vmul.f32 0.0625, %v817_v27  ;;  %v1304_v30 = vmul.f32 %v4562_v52, %v5318_v12  ;;  %v1342_v45 = vadd.f32 %v5464_v58, %v1322_v51 }
 0x176   : > { %v858_v13 = vmul.f32 0.0625, %v820_v23  ;;  %4573 = vrsqrt.f32 %v872_v17  ;;  %v1352_v26 = vpack.c.bf16 %v1341_v8, %v1340_v19  ;;  %v1323_v15 = vmul.f32 %v5460_v24, %v1303_v39 }
 0x177   : > { %v4564_v31 = vpop.eup %4563  ;;  %v873_v18 = vadd.f32 1e-05, %v857_v11  ;;  %v1324_v12 = vmul.f32 %v5460_v24, %v1304_v30  ;;  %v5525_v11 = vrot.slane %v707_v32, %v5072_v3 }
 0x178   : > { %v874_v37 = vadd.f32 1e-05, %v858_v13  ;;  %v4566_v56 = vpop.eup %4565  ;;  %v823_v22 = vpop.xlane.xlu1 %822  ;;  %4236 = vmatprep.mubr.msk.bf16.mxu1 %vm708_vm0, %v1352_v26  ;;  %v1343_v34 = vadd.f32 %v5464_v58, %v1323_v15  ;;  %v1305_v21 = vmul.f32 %v4564_v31, %v5324_v28 }
 0x179   : > { %v826_v2 = vpop.xlane.xlu0 %825  ;;  %4575 = vrsqrt.f32 %v873_v18  ;;  %v859_v53 = vmul.f32 0.0625, %v823_v22  ;;  %v1306_v47 = vmul.f32 %v4566_v56, %v5330_v33  ;;  %v1344_v14 = vadd.f32 %v5464_v58, %v1324_v12 }
 0x17a   : > { %v860_v16 = vmul.f32 0.0625, %v826_v2  ;;  %4577 = vrsqrt.f32 %v874_v37  ;;  %v1353_v60 = vpack.c.bf16 %v1343_v34, %v1342_v45  ;;  %v1325_v55 = vmul.f32 %v5460_v24, %v1305_v21 }
 0x17b   : > { %v4568_v25 = vpop.eup %4567  ;;  %v875_v35 = vadd.f32 1e-05, %v859_v53  ;;  %v1326_v52 = vmul.f32 %v5460_v24, %v1306_v47 }
 0x17c   : > { %v876_v62 = vadd.f32 1e-05, %v860_v16  ;;  %v4570_v6 = vpop.eup %4569  ;;  %v829_v63 = vpop.xlane.xlu1 %828  ;;  %4237 = vmatmul.mubr.msk.bf16.gmra.mrb[8].mxu1 %vm708_vm0, %v1353_v60  ;;  %v1345_v17 = vadd.f32 %v5464_v58, %v1325_v55  ;;  %v1307_v33 = vmul.f32 %v4568_v25, %v5336_v43 }
 0x17d   : > { %v832_v28 = vpop.xlane.xlu0 %831  ;;  %4579 = vrsqrt.f32 %v875_v35  ;;  %v861_v27 = vmul.f32 0.0625, %v829_v63  ;;  %v902_v39 = vmul.f32 %v4570_v6, %v5342_v49  ;;  %v1346_v31 = vadd.f32 %v5464_v58, %v1326_v52 }
 0x17e   : > { %v862_v23 = vmul.f32 0.0625, %v832_v28  ;;  %4581 = vrsqrt.f32 %v876_v62  ;;  %v1354_v19 = vpack.c.bf16 %v1345_v17, %v1344_v14  ;;  %v1327_v8 = vmul.f32 %v5460_v24, %v1307_v33 }
 0x17f   : > { %v4572_v51 = vpop.eup %4571  ;;  %v877_v13 = vadd.f32 1e-05, %v861_v27  ;;  %v922_v24 = vmul.f32 %v5515_v59, %v902_v39 }
 0x180   : > { %v878_v26 = vadd.f32 1e-05, %v862_v23  ;;  %v4574_v15 = vpop.eup %4573  ;;  %v835_v30 = vpop.xlane.xlu1 %834  ;;  %4240 = vmatprep.mubr.msk.bf16.mxu1 %vm708_vm0, %v1354_v19  ;;  %v1347_v18 = vadd.f32 %v5464_v58, %v1327_v8  ;;  %v903_v37 = vmul.f32 %v4572_v51, %v5348_v57 }
 0x181   : > { %v838_v43 = vpop.xlane.xlu0 %837  ;;  %4583 = vrsqrt.f32 %v877_v13  ;;  %v863_v49 = vmul.f32 0.0625, %v835_v30  ;;  %v904_v32 = vmul.f32 %v4574_v15, %v5354_v7  ;;  %v942_v57 = vadd.f32 %v5525_v11, %v922_v24  ;;  %v4526_v13 = vld [vmem:[%s6961_s8 + $0x8] sm:$0xff]   ;;  %s651_s8 = scalar_lea.vmem [#allocation2], %s6823_s28 }
 0x182   : > { %v864_v56 = vmul.f32 0.0625, %v838_v43  ;;  %4585 = vrsqrt.f32 %v878_v26  ;;  %v1355_v22 = vpack.c.bf16 %v1347_v18, %v1346_v31  ;;  %v923_v2 = vmul.f32 %v5515_v59, %v903_v37 }
 0x183   : > { %v4576_v45 = vpop.eup %4575  ;;  %v879_v34 = vadd.f32 1e-05, %v863_v49  ;;  %v924_v7 = vmul.f32 %v5515_v59, %v904_v32 }
 0x184   : > { %v880_v21 = vadd.f32 1e-05, %v864_v56  ;;  %v4578_v12 = vpop.eup %4577  ;;  %v841_v53 = vpop.xlane.xlu1 %840  ;;  %4241 = vmatmul.mubr.msk.bf16.gmra.mrb[12].mxu1 %vm708_vm0, %v1355_v22  ;;  %v943_v16 = vadd.f32 %v5525_v11, %v923_v2  ;;  %v905_v47 = vmul.f32 %v4576_v45, %v5360_v20 }
 0x185   : > { %v844_v58 = vpop.xlane.xlu0 %843  ;;  %4587 = vrsqrt.f32 %v879_v34  ;;  %v865_v60 = vmul.f32 0.0625, %v841_v53  ;;  %v906_v62 = vmul.f32 %v4578_v12, %v5366_v29  ;;  %v944_v20 = vadd.f32 %v5525_v11, %v924_v7 }
 0x186   : > { %v866_v55 = vmul.f32 0.0625, %v844_v58  ;;  %4589 = vrsqrt.f32 %v880_v21  ;;  %v958_v25 = vpack.c.bf16 %v943_v16, %v942_v57  ;;  %v925_v35 = vmul.f32 %v5515_v59, %v905_v47 }
 0x187   : > { %v4580_v6 = vpop.eup %4579  ;;  %v881_v63 = vadd.f32 1e-05, %v865_v60  ;;  %v926_v23 = vmul.f32 %v5515_v59, %v906_v62 }
 0x188   : > { %v882_v28 = vadd.f32 1e-05, %v866_v55  ;;  %v4582_v14 = vpop.eup %4581  ;;  %v847_v17 = vpop.xlane.xlu1 %846  ;;  %4210 = vmatprep.mubr.msk.bf16.mxu0 %vm708_vm0, %v958_v25  ;;  %v945_v52 = vadd.f32 %v5525_v11, %v925_v35  ;;  %v907_v27 = vmul.f32 %v4580_v6, %v5372_v41 }
 0x189   : > { %v850_v33 = vpop.xlane.xlu0 %849  ;;  %4591 = vrsqrt.f32 %v881_v63  ;;  %v867_v19 = vmul.f32 0.0625, %v847_v17  ;;  %v908_v29 = vmul.f32 %v4582_v14, %v5378_v5  ;;  %v946_v31 = vadd.f32 %v5525_v11, %v926_v23 }
 0x18a   : > { %v868_v8 = vmul.f32 0.0625, %v850_v33  ;;  %4593 = vrsqrt.f32 %v882_v28  ;;  %v959_v39 = vpack.c.bf16 %v945_v52, %v944_v20  ;;  %v927_v51 = vmul.f32 %v5515_v59, %v907_v27 }
 0x18b   : > { %v4584_v26 = vpop.eup %4583  ;;  %v883_v15 = vadd.f32 1e-05, %v867_v19  ;;  %v928_v37 = vmul.f32 %v5515_v59, %v908_v29  ;;  %v4527_v29 = vld [vmem:[%s6964_s7] sm:$0xff]  }
 0x18c   : > { %v884_v30 = vadd.f32 1e-05, %v868_v8  ;;  %v4586_v43 = vpop.eup %4585  ;;  %v853_v41 = vpop.xlane.xlu1 %852  ;;  %4211 = vmatmul.mubr.msk.bf16.vlgmr.msra.gmra.mrb[0].mxu0 %vm708_vm0, %v959_v39  ;;  %v947_v18 = vadd.f32 %v5525_v11, %v927_v51  ;;  %v909_v5 = vmul.f32 %v4584_v26, %v5387_v36 }
 0x18d   : > { %4595 = vrsqrt.f32 %v883_v15  ;;  %v869_v24 = vmul.f32 0.0625, %v853_v41  ;;  %v910_v49 = vmul.f32 %v4586_v43, %v5393_v38  ;;  %4245 = vmatpush3.bf16.msra.mxu0 %v5450_v54  ;;  %v948_v36 = vadd.f32 %v5525_v11, %v928_v37  ;;  %v4528_v37 = vld [vmem:[%s6964_s7 + $0x8] sm:$0xff]   ;;  %s6941_s7 = sshll.u32 %s5027_s2, 4 }
 0x18e   : > { %4597 = vrsqrt.f32 %v884_v30  ;;  %v960_v56 = vpack.c.bf16 %v947_v18, %v946_v31  ;;  %v929_v32 = vmul.f32 %v5515_v59, %v909_v5  ;;  %4246 = vmatprep.subr.bf16.mxu0 %v4526_v13  ;;  %s6834_s5 = scalar_lea.hbm %s6937_s19, %s6941_s7 }
 0x18f   : > { %v4588_v22 = vpop.eup %4587  ;;  %v885_v2 = vadd.f32 1e-05, %v869_v24  ;;  %v930_v38 = vmul.f32 %v5515_v59, %v910_v49 }
 0x190   : > { %v4590_v45 = vpop.eup %4589  ;;  %4214 = vmatprep.mubr.msk.bf16.mxu0 %vm708_vm0, %v960_v56  ;;  %v949_v34 = vadd.f32 %v5525_v11, %v929_v32  ;;  %v911_v21 = vmul.f32 %v4588_v22, %v5399_v40 }
 0x191   : > { %4599 = vrsqrt.f32 %v885_v2  ;;  %v912_v54 = vmul.f32 %v4590_v45, %v5405_v42  ;;  %4247 = vmatpush3.bf16.msra.mxu0 %v4526_v13  ;;  %v950_v16 = vadd.f32 %v5525_v11, %v930_v38 }
 0x192   : > { %v961_v12 = vpack.c.bf16 %v949_v34, %v948_v36  ;;  %v931_v53 = vmul.f32 %v5515_v59, %v911_v21  ;;  %4264 = vmatprep.subr.bf16.mxu0 %v4527_v29 }
 0x193   : > { %v4592_v58 = vpop.eup %4591  ;;  %v932_v40 = vmul.f32 %v5515_v59, %v912_v54 }
 0x194   : > { %v4594_v57 = vpop.eup %4593  ;;  %4215 = vmatmul.mubr.msk.bf16.gmra.mrb[4].mxu0 %vm708_vm0, %v961_v12  ;;  %v951_v47 = vadd.f32 %v5525_v11, %v931_v53  ;;  %v913_v7 = vmul.f32 %v4592_v58, %v5411_v44 }
 0x195   : > { %v914_v60 = vmul.f32 %v4594_v57, %v5417_v46  ;;  %v952_v62 = vadd.f32 %v5525_v11, %v932_v40 }
 0x196   : > { %v962_v55 = vpack.c.bf16 %v951_v47, %v950_v16  ;;  %v933_v42 = vmul.f32 %v5515_v59, %v913_v7 }
 0x197   : > { %v4596_v25 = vpop.eup %4595  ;;  %v934_v28 = vmul.f32 %v5515_v59, %v914_v60 }
 0x198   : > { %v4598_v35 = vpop.eup %4597  ;;  %4218 = vmatprep.mubr.msk.bf16.mxu0 %vm708_vm0, %v962_v55  ;;  %v953_v6 = vadd.f32 %v5525_v11, %v933_v42  ;;  %v915_v63 = vmul.f32 %v4596_v25, %v5423_v48 }
 0x199   : > { %v916_v44 = vmul.f32 %v4598_v35, %v5429_v61  ;;  %v954_v33 = vadd.f32 %v5525_v11, %v934_v28 }
 0x19a   : > { %v963_v14 = vpack.c.bf16 %v953_v6, %v952_v62  ;;  %v935_v46 = vmul.f32 %v5515_v59, %v915_v63 }
 0x19b   : > { %v4600_v17 = vpop.eup %4599  ;;  %v936_v27 = vmul.f32 %v5515_v59, %v916_v44 }
 0x19c   : > { %4219 = vmatmul.mubr.msk.bf16.gmra.mrb[8].mxu0 %vm708_vm0, %v963_v14  ;;  %v955_v20 = vadd.f32 %v5525_v11, %v935_v46  ;;  %v917_v52 = vmul.f32 %v4600_v17, %v5435_v0  ;;  %v4529_v0 = vld [vmem:[%s6965_s9] sm:$0xff]  }
 0x19d   : > { %v956_v61 = vadd.f32 %v5525_v11, %v936_v27  ;;  %4284 = vmatprep.subr.bf16.mxu1 %v4529_v0 }
 0x19e   : > { %v964_v23 = vpack.c.bf16 %v955_v20, %v954_v33  ;;  %v937_v48 = vmul.f32 %v5515_v59, %v917_v52  ;;  %v4530_v59 = vld [vmem:[%s6965_s9 + $0x8] sm:$0xff]   ;;  %4285 = vmatpush3.bf16.msra.mxu1 %v4529_v0 }
 0x19f   : > { %4286 = vmatprep.subr.bf16.mxu1 %v4530_v59 }
 0x1a0   : > { %4222 = vmatprep.mubr.msk.bf16.mxu0 %vm708_vm0, %v964_v23  ;;  %v957_v19 = vadd.f32 %v5525_v11, %v937_v48  ;;  %v5602_v11 = vld [vmem:[%s6933_s15] sm:$0xff] }
 0x1a1   : > { %v1361_v39 = vrot.slane %v5602_v11, %v5072_v3  ;;  %v971_v63 = vrot.slane %v5602_v11, %v5454_v50 }
 0x1a2   : > { %v965_v8 = vpack.c.bf16 %v957_v19, %v956_v61  ;;  %4287 = vmatpush3.bf16.msra.mxu1 %v4530_v59 }
 0x1a4   : > { %4223 = vmatmul.mubr.msk.bf16.gmra.mrb[12].mxu0 %vm708_vm0, %v965_v8 }
 0x23f   : > { %v4230_v51 = vpop.f32.mrb[0].mxu1 }
 0x240   : > { %v1435_v13 = vadd.f32 %v4230_v51, %v1361_v39  ;;  %v1426_v26 = vpop.f32.mrb[1].mxu1 }
 0x241   : > { %v1427_v15 = vadd.f32 %v1426_v26, %v1361_v39  ;;  %v4231_v30 = vpop.f32.mrb[2].mxu1 }
 0x242   : > { %v1438_v43 = vadd.f32 %v4231_v30, %v1361_v39  ;;  %v1429_v41 = vpop.f32.mrb[3].mxu1 }
 0x243   : > { %v1430_v31 = vadd.f32 %v1429_v41, %v1361_v39 }
 0x244   : > { %v1502_v18 = vpack.c.bf16 %v1438_v43, %v1435_v13 }
 0x245   : > { %v1501_v5 = vpack.c.bf16 %v1430_v31, %v1427_v15 }
 0x247   : > { %v4234_v24 = vpop.f32.mrb[4].mxu1  ;;  %4248 = vmatprep.mubr.msk.bf16.mxu0 %vm1525_vm1, %v1501_v5 }
 0x248   : > { %v1451_v49 = vadd.f32 %v4234_v24, %v1361_v39  ;;  %v1442_v3 = vpop.f32.mrb[5].mxu1  ;;  %4249 = vmatmul.mubr.msk.bf16.vlgmr.msra.gmra.mrb[16].mxu0 %vm1525_vm1, %v1502_v18 }
 0x249   : > { %v1443_v56 = vadd.f32 %v1442_v3, %v1361_v39  ;;  %4265 = vmatpush3.bf16.msra.mxu0 %v4527_v29  ;;  %v4235_v32 = vpop.f32.mrb[6].mxu1 }
 0x24a   : > { %v1454_v22 = vadd.f32 %v4235_v32, %v1361_v39  ;;  %v1445_v2 = vpop.f32.mrb[7].mxu1  ;;  %4266 = vmatprep.subr.bf16.mxu0 %v4528_v37 }
 0x24b   : > { %v1446_v45 = vadd.f32 %v1445_v2, %v1361_v39 }
 0x24c   : > { %v1504_v36 = vpack.c.bf16 %v1454_v22, %v1451_v49 }
 0x24d   : > { %v1503_v34 = vpack.c.bf16 %v1446_v45, %v1443_v56  ;;  %4267 = vmatpush3.bf16.msra.mxu0 %v4528_v37 }
 0x24f   : > { %v4238_v21 = vpop.f32.mrb[8].mxu1  ;;  %4252 = vmatprep.mubr.msk.bf16.mxu0 %vm1525_vm1, %v1503_v34 }
 0x250   : > { %v1467_v38 = vadd.f32 %v4238_v21, %v1361_v39  ;;  %v1458_v54 = vpop.f32.mrb[9].mxu1  ;;  %4253 = vmatmul.mubr.msk.bf16.gmra.mrb[20].mxu0 %vm1525_vm1, %v1504_v36 }
 0x251   : > { %v1459_v12 = vadd.f32 %v1458_v54, %v1361_v39  ;;  %v4239_v53 = vpop.f32.mrb[10].mxu1 }
 0x252   : > { %v1470_v58 = vadd.f32 %v4239_v53, %v1361_v39  ;;  %v1461_v57 = vpop.f32.mrb[11].mxu1 }
 0x253   : > { %v1462_v16 = vadd.f32 %v1461_v57, %v1361_v39 }
 0x254   : > { %v1506_v47 = vpack.c.bf16 %v1470_v58, %v1467_v38 }
 0x255   : > { %v1505_v7 = vpack.c.bf16 %v1462_v16, %v1459_v12  ;;  %v1783_v12 = vrot.slane %v5602_v11, %v1782_v4 }
 0x257   : > { %v4242_v40 = vpop.f32.mrb[12].mxu1  ;;  %4256 = vmatprep.mubr.msk.bf16.mxu0 %vm1525_vm1, %v1505_v7 }
 0x258   : > { %v1483_v60 = vadd.f32 %v4242_v40, %v1361_v39  ;;  %v1474_v55 = vpop.f32.mrb[13].mxu1  ;;  %4257 = vmatmul.mubr.msk.bf16.gmra.mrb[24].mxu0 %vm1525_vm1, %v1506_v47 }
 0x259   : > { %v1475_v42 = vadd.f32 %v1474_v55, %v1361_v39  ;;  %v4243_v25 = vpop.f32.mrb[14].mxu1 }
 0x25a   : > { %v1486_v35 = vadd.f32 %v4243_v25, %v1361_v39  ;;  %v1477_v62 = vpop.f32.mrb[15].mxu1 }
 0x25b   : > { %v1478_v6 = vadd.f32 %v1477_v62, %v1361_v39 }
 0x25c   : > { %v1508_v28 = vpack.c.bf16 %v1486_v35, %v1483_v60 }
 0x25d   : > { %v1507_v44 = vpack.c.bf16 %v1478_v6, %v1475_v42 }
 0x25f   : > { %v4212_v14 = vpop.f32.mrb[0].mxu0  ;;  %4260 = vmatprep.mubr.msk.bf16.mxu0 %vm1525_vm1, %v1507_v44 }
 0x260   : > { %v1045_v46 = vadd.f32 %v4212_v14, %v971_v63  ;;  %v1036_v17 = vpop.f32.mrb[1].mxu0  ;;  %4261 = vmatmul.mubr.msk.bf16.gmra.mrb[28].mxu0 %vm1525_vm1, %v1508_v28 }
 0x261   : > { %v1037_v33 = vadd.f32 %v1036_v17, %v971_v63  ;;  %v4213_v20 = vpop.f32.mrb[2].mxu0 }
 0x262   : > { %v1048_v52 = vadd.f32 %v4213_v20, %v971_v63  ;;  %v1039_v27 = vpop.f32.mrb[3].mxu0 }
 0x263   : > { %v1040_v23 = vadd.f32 %v1039_v27, %v971_v63 }
 0x264   : > { %v1490_v48 = vpack.c.bf16 %v1048_v52, %v1045_v46 }
 0x265   : > { %v1489_v61 = vpack.c.bf16 %v1040_v23, %v1037_v33 }
 0x267   : > { %v4216_v19 = vpop.f32.mrb[4].mxu0  ;;  %4268 = vmatprep.mubr.msk.bf16.mxu0 %vm1525_vm1, %v1489_v61 }
 0x268   : > { %v1061_v8 = vadd.f32 %v4216_v19, %v971_v63  ;;  %v1052_v29 = vpop.f32.mrb[5].mxu0  ;;  %4269 = vmatmul.mubr.msk.bf16.vlgmr.msra.gmra.mrb[16].mxu0 %vm1525_vm1, %v1490_v48 }
 0x269   : > { %v1053_v0 = vadd.f32 %v1052_v29, %v971_v63  ;;  %v4217_v59 = vpop.f32.mrb[6].mxu0 }
 0x26a   : > { %v1064_v39 = vadd.f32 %v4217_v59, %v971_v63  ;;  %v1055_v51 = vpop.f32.mrb[7].mxu0 }
 0x26b   : > { %v1056_v13 = vadd.f32 %v1055_v51, %v971_v63 }
 0x26c   : > { %v1492_v26 = vpack.c.bf16 %v1064_v39, %v1061_v8 }
 0x26d   : > { %v1491_v15 = vpack.c.bf16 %v1056_v13, %v1053_v0 }
 0x26f   : > { %v4220_v30 = vpop.f32.mrb[8].mxu0  ;;  %4272 = vmatprep.mubr.msk.bf16.mxu0 %vm1525_vm1, %v1491_v15 }
 0x270   : > { %v1077_v43 = vadd.f32 %v4220_v30, %v971_v63  ;;  %v1068_v41 = vpop.f32.mrb[9].mxu0  ;;  %4273 = vmatmul.mubr.msk.bf16.gmra.mrb[20].mxu0 %vm1525_vm1, %v1492_v26 }
 0x271   : > { %v1069_v31 = vadd.f32 %v1068_v41, %v971_v63  ;;  %v4221_v18 = vpop.f32.mrb[10].mxu0  ;;  %v4032_v41 = vld [vmem:[%s6966_s10] ss:$0 sm:$0xff] }
 0x272   : > { %v1080_v5 = vadd.f32 %v4221_v18, %v971_v63  ;;  %v1071_v37 = vpop.f32.mrb[11].mxu0 }
 0x273   : > { %v1072_v24 = vadd.f32 %v1071_v37, %v971_v63 }
 0x274   : > { %v1494_v49 = vpack.c.bf16 %v1080_v5, %v1077_v43 }
 0x275   : > { %v1493_v3 = vpack.c.bf16 %v1072_v24, %v1069_v31 }
 0x277   : > { %v4224_v56 = vpop.f32.mrb[12].mxu0  ;;  %4276 = vmatprep.mubr.msk.bf16.mxu0 %vm1525_vm1, %v1493_v3 }
 0x278   : > { %v1093_v32 = vadd.f32 %v4224_v56, %v971_v63  ;;  %v1084_v22 = vpop.f32.mrb[13].mxu0  ;;  %4277 = vmatmul.mubr.msk.bf16.gmra.mrb[24].mxu0 %vm1525_vm1, %v1494_v49 }
 0x279   : > { %v1085_v2 = vadd.f32 %v1084_v22, %v971_v63  ;;  %v4225_v45 = vpop.f32.mrb[14].mxu0 }
 0x27a   : > { %v1096_v36 = vadd.f32 %v4225_v45, %v971_v63  ;;  %v1087_v34 = vpop.f32.mrb[15].mxu0 }
 0x27b   : > { %v1088_v21 = vadd.f32 %v1087_v34, %v971_v63 }
 0x27c   : > { %v1496_v38 = vpack.c.bf16 %v1096_v36, %v1093_v32 }
 0x27d   : > { %v1495_v54 = vpack.c.bf16 %v1088_v21, %v1085_v2 }
 0x27f   : > { %4280 = vmatprep.mubr.msk.bf16.mxu0 %vm1525_vm1, %v1495_v54 }
 0x280   : > { %4281 = vmatmul.mubr.msk.bf16.gmra.mrb[28].mxu0 %vm1525_vm1, %v1496_v38 }
 0x33b   : > { %v4270_v53 = vpop.f32.mrb[16].mxu0 }
 0x33c   : > { %v1717_v58 = vpop.f32.mrb[17].mxu0  ;;  %v5636_v60 = vadd.f32 %v4270_v53, %v1783_v12 }
 0x33d   : > { %v4271_v57 = vpop.f32.mrb[18].mxu0  ;;  %v5632_v7 = vadd.f32 %v1783_v12, %v1717_v58 }
 0x33e   : > { %v5630_v16 = vadd.f32 %v4271_v57, %v1783_v12  ;;  %v1720_v47 = vpop.f32.mrb[19].mxu0 }
 0x33f   : > { %v5634_v40 = vadd.f32 %v1783_v12, %v1720_v47 }
 0x340   : > { %v1801_v42 = vpack.c.bf16 %v5630_v16, %v5636_v60 }
 0x341   : > { %v1800_v55 = vpack.c.bf16 %v5634_v40, %v5632_v7 }
 0x343   : > { %v4274_v25 = vpop.f32.mrb[20].mxu0  ;;  %4288 = vmatprep.mubr.msk.bf16.mxu1 %vm1525_vm1, %v1800_v55 }
 0x344   : > { %v1733_v4 = vpop.f32.mrb[21].mxu0  ;;  %4289 = vmatmul.mubr.msk.bf16.vlgmr.msra.gmra.mrb[16].mxu1 %vm1525_vm1, %v1801_v42  ;;  %v5650_v28 = vadd.f32 %v4274_v25, %v1783_v12 }
 0x345   : > { %v4275_v11 = vpop.f32.mrb[22].mxu0  ;;  %v5646_v6 = vadd.f32 %v1783_v12, %v1733_v4 }
 0x346   : > { %v5644_v35 = vadd.f32 %v4275_v11, %v1783_v12  ;;  %v1736_v62 = vpop.f32.mrb[23].mxu0 }
 0x347   : > { %v5648_v63 = vadd.f32 %v1783_v12, %v1736_v62 }
 0x348   : > { %v1803_v14 = vpack.c.bf16 %v5644_v35, %v5650_v28 }
 0x349   : > { %v1802_v44 = vpack.c.bf16 %v5648_v63, %v5646_v6 }
 0x34b   : > { %v4278_v46 = vpop.f32.mrb[24].mxu0  ;;  %4292 = vmatprep.mubr.msk.bf16.mxu1 %vm1525_vm1, %v1802_v44 }
 0x34c   : > { %v1749_v17 = vpop.f32.mrb[25].mxu0  ;;  %4293 = vmatmul.mubr.msk.bf16.gmra.mrb[20].mxu1 %vm1525_vm1, %v1803_v14  ;;  %v5664_v48 = vadd.f32 %v4278_v46, %v1783_v12 }
 0x34d   : > { %v4279_v33 = vpop.f32.mrb[26].mxu0  ;;  %v5660_v27 = vadd.f32 %v1783_v12, %v1749_v17 }
 0x34e   : > { %v5658_v20 = vadd.f32 %v4279_v33, %v1783_v12  ;;  %v1752_v52 = vpop.f32.mrb[27].mxu0 }
 0x34f   : > { %v5662_v23 = vadd.f32 %v1783_v12, %v1752_v52 }
 0x350   : > { %v1805_v19 = vpack.c.bf16 %v5658_v20, %v5664_v48 }
 0x351   : > { %v1804_v61 = vpack.c.bf16 %v5662_v23, %v5660_v27 }
 0x353   : > { %v4282_v8 = vpop.f32.mrb[28].mxu0  ;;  %4296 = vmatprep.mubr.msk.bf16.mxu1 %vm1525_vm1, %v1804_v61 }
 0x354   : > { %v1765_v29 = vpop.f32.mrb[29].mxu0  ;;  %4297 = vmatmul.mubr.msk.bf16.gmra.mrb[24].mxu1 %vm1525_vm1, %v1805_v19  ;;  %v5678_v26 = vadd.f32 %v4282_v8, %v1783_v12 }
 0x355   : > { %v4283_v0 = vpop.f32.mrb[30].mxu0  ;;  %v5674_v51 = vadd.f32 %v1783_v12, %v1765_v29 }
 0x356   : > { %v5672_v59 = vadd.f32 %v4283_v0, %v1783_v12  ;;  %v1768_v39 = vpop.f32.mrb[31].mxu0 }
 0x357   : > { %v5676_v13 = vadd.f32 %v1783_v12, %v1768_v39 }
 0x358   : > { %v1807_v30 = vpack.c.bf16 %v5672_v59, %v5678_v26 }
 0x359   : > { %v1806_v15 = vpack.c.bf16 %v5676_v13, %v5674_v51 }
 0x35b   : > { %4300 = vmatprep.mubr.msk.bf16.mxu1 %vm1525_vm1, %v1806_v15 }
 0x35c   : > { %4301 = vmatmul.mubr.msk.bf16.gmra.mrb[28].mxu1 %vm1525_vm1, %v1807_v30 }
 0x417   : > { %v4290_v43 = vpop.f32.mrb[16].mxu1 }
 0x418   : > { %v1889_v31 = vpop.f32.mrb[17].mxu1  ;;  %v1898_v5 = vadd.f32 %v4290_v43, %v4032_v41 }
 0x419   : > { %v4291_v18 = vpop.f32.mrb[18].mxu1  ;;  %v1890_v49 = vadd.f32 %v4032_v41, %v1889_v31 }
 0x41a   : > { %v1901_v37 = vadd.f32 %v4291_v18, %v4032_v41  ;;  %v1892_v24 = vpop.f32.mrb[19].mxu1 }
 0x41b   : > { %v1893_v3 = vadd.f32 %v4032_v41, %v1892_v24 }
 0x41c   : > { %v5689_v56 = vpack.c.bf16 %v1901_v37, %v1898_v5 }
 0x41d   : > { %v1952_v32 = vpack.c.bf16 %v1893_v3, %v1890_v49 }
 0x41e   : > { %1986 = vrot.lane.b32.xlu1 %v5689_v56, %s4893_s21 }
 0x41f   : > { %1984 = vrot.lane.b32.xlu0 %v1952_v32, %s4893_s21  ;;  %v4294_v22 = vpop.f32.mrb[20].mxu1  ;;  %4320 = vmatprep.mubr.msk.bf16.mxu1 %vm1525_vm1, %v1952_v32 }
 0x420   : > { %v1905_v2 = vpop.f32.mrb[21].mxu1  ;;  %v1914_v36 = vadd.f32 %v4294_v22, %v4032_v41 }
 0x421   : > { %v4295_v45 = vpop.f32.mrb[22].mxu1  ;;  %v1906_v38 = vadd.f32 %v4032_v41, %v1905_v2 }
 0x422   : > { %v1917_v34 = vadd.f32 %v4295_v45, %v4032_v41  ;;  %v1908_v21 = vpop.f32.mrb[23].mxu1 }
 0x423   : > { %v1909_v54 = vadd.f32 %v4032_v41, %v1908_v21 }
 0x424   : > { %v5695_v12 = vpack.c.bf16 %v1917_v34, %v1914_v36 }
 0x425   : > { %v5697_v53 = vpack.c.bf16 %v1909_v54, %v1906_v38 }
 0x427   : > { %1988 = vrot.lane.b32.xlu1 %v5697_v53, %s4893_s21  ;;  %v4298_v58 = vpop.f32.mrb[24].mxu1 }
 0x428   : > { %v1921_v57 = vpop.f32.mrb[25].mxu1  ;;  %v1930_v55 = vadd.f32 %v4298_v58, %v4032_v41  ;;  %v1960_v58 = vld [vmem:[%s6936_s18] sm:$0xff] }
 0x429   : > { %v4299_v47 = vpop.f32.mrb[26].mxu1  ;;  %v1922_v4 = vadd.f32 %v4032_v41, %v1921_v57 }
 0x42a   : > { %v1933_v42 = vadd.f32 %v4299_v47, %v4032_v41  ;;  %v1924_v25 = vpop.f32.mrb[27].mxu1  ;;  %v1963_v47 = vld [vmem:[%s6936_s18 + $0x18] sm:$0xff] }
 0x42b   : > { %v1925_v11 = vadd.f32 %v4032_v41, %v1924_v25  ;;  %1990 = vrot.lane.b32.xlu1 %v5695_v12, %s4893_s21  ;;  %v1961_v25 = vld [vmem:[%s6936_s18 + $0x8] sm:$0xff] }
 0x42c   : > { %v5703_v62 = vpack.c.bf16 %v1933_v42, %v1930_v55 }
 0x42d   : > { %v5705_v44 = vpack.c.bf16 %v1925_v11, %v1922_v4 }
 0x42f   : > { %1994 = vrot.lane.b32.xlu1 %v5703_v62, %s4893_s21  ;;  %1992 = vrot.lane.b32.xlu0 %v5705_v44, %s4893_s21  ;;  %v4302_v14 = vpop.f32.mrb[28].mxu1 }
 0x430   : > { %v1937_v46 = vpop.f32.mrb[29].mxu1  ;;  %v1946_v33 = vadd.f32 %v4302_v14, %v4032_v41 }
 0x431   : > { %v4303_v17 = vpop.f32.mrb[30].mxu1  ;;  %v1938_v19 = vadd.f32 %v4032_v41, %v1937_v46 }
 0x432   : > { %v1949_v52 = vadd.f32 %v4303_v17, %v4032_v41  ;;  %v1940_v61 = vpop.f32.mrb[31].mxu1 }
 0x433   : > { %v1941_v8 = vadd.f32 %v4032_v41, %v1940_v61 }
 0x434   : > { %v5711_v29 = vpack.c.bf16 %v1949_v52, %v1946_v33 }
 0x435   : > { %v5713_v0 = vpack.c.bf16 %v1941_v8, %v1938_v19  ;;  %v1966_v19 = vld [vmem:[%s6936_s18 + $0x30] sm:$0xff] }
 0x436   : > { %1998 = vrot.lane.b32.xlu1 %v5711_v29, %s4893_s21 }
 0x437   : > { %1996 = vrot.lane.b32.xlu0 %v5713_v0, %s4893_s21  ;;  %s3853_s21 = scalar_lea.sflag [#allocation3], %s6823_s28 }
 0x43a   : > { %2322 = vrot.lane.b32.xlu1 %v5689_v56, %s6939_s25 }
 0x43b   : > { %2320 = vrot.lane.b32.xlu0 %v1952_v32, %s6939_s25 }
 0x43f   : > { %2324 = vrot.lane.b32.xlu0 %v5697_v53, %s6939_s25 }
 0x443   : > { %2326 = vrot.lane.b32.xlu0 %v5695_v12, %s6939_s25  ;;  %s3869_s25 = sshll.u32 %s651_s8, 4  ;;  %s6836_s25 = int_to_ptr.vmem [resolvable:$true] %s3869_s25 }
 0x444   : > { %s4797_s30 = scalar_lea.vmem %s6836_s25, 16 }
 0x445   : > { %p4798_p11 = scmp.ne.s32.totalorder %s6836_s25, %s4797_s30 }
 0x447   : > { %p4799_p12 = pnand %p4798_p11, %p5044_p5 }
 0x449   : > { %p4800_p13 = pneg %p4799_p12 }
 0x490   : > { %v1987_v30 = vpop.permute.xlu1 %1986 }
 0x491   : > { %v1985_v39 = vpop.permute.xlu0 %1984  ;;  %v2028_v41 = vsel %vm1525_vm1, %v1987_v30, 0 }
 0x492   : > { %4464 = vmatprep.subr.msk.bf16.mxu1 %vm1525_vm1, %v1985_v39  ;;  %v2025_v15 = vsel %vm1525_vm1, %v1985_v39, 0  ;;  %v1964_v39 = vld [vmem:[%s6936_s18 + $0x20] sm:$0xff] }
 0x493   : > { %4305 = vmatpush3.bf16.xpose.msra.mxu1 %v2025_v15 }
 0x494   : > { %4465 = vmatprep.subr.msk.bf16.mxu1 %vm1525_vm1, %v1987_v30  ;;  %v1967_v30 = vld [vmem:[%s6936_s18 + $0x38] sm:$0xff] }
 0x499   : > { %v1989_v43 = vpop.permute.xlu1 %1988 }
 0x49a   : > { %v2031_v18 = vsel %vm1525_vm1, %v1989_v43, 0 }
 0x49b   : > { %4307 = vmatpush3.bf16.xpose.msra.mxu1 %v2028_v41 }
 0x49c   : > { %4466 = vmatprep.subr.msk.bf16.mxu1 %vm1525_vm1, %v1989_v43 }
 0x49d   : > { %v1991_v31 = vpop.permute.xlu1 %1990 }
 0x49e   : > { %v2034_v3 = vsel %vm1525_vm1, %v1991_v31, 0 }
 0x4a1   : > { %v1995_v5 = vpop.permute.xlu1 %1994  ;;  %v1993_v37 = vpop.permute.xlu0 %1992 }
 0x4a2   : > { %v2037_v45 = vsel %vm1525_vm1, %v1993_v37, 0  ;;  %v2040_v34 = vsel %vm1525_vm1, %v1995_v5, 0 }
 0x4a3   : > { %4309 = vmatpush3.bf16.xpose.msra.mxu1 %v2031_v18 }
 0x4a4   : > { %4467 = vmatprep.subr.msk.bf16.mxu1 %vm1525_vm1, %v1991_v31  ;;  %v1965_v31 = vld [vmem:[%s6936_s18 + $0x28] sm:$0xff] }
 0x4a8   : > { %v1999_v24 = vpop.permute.xlu1 %1998 }
 0x4a9   : > { %v1997_v49 = vpop.permute.xlu0 %1996  ;;  %v2046_v38 = vsel %vm1525_vm1, %v1999_v24, 0 }
 0x4aa   : > { %v2043_v21 = vsel %vm1525_vm1, %v1997_v49, 0 }
 0x4ab   : > { %4311 = vmatpush3.bf16.xpose.msra.mxu1 %v2034_v3 }
 0x4ac   : > { %4468 = vmatprep.subr.msk.bf16.mxu1 %vm1525_vm1, %v1993_v37  ;;  %v2323_v22 = vpop.permute.xlu1 %2322 }
 0x4ad   : > { %v2321_v32 = vpop.permute.xlu0 %2320 }
 0x4ae   : > { %4336 = vmatprep.subr.bf16.mxu0 %v2321_v32 }
 0x4af   : > { %4337 = vmatpush3.bf16.msra.mxu0 %v2321_v32 }
 0x4b0   : > { %4338 = vmatprep.subr.bf16.mxu0 %v2323_v22 }
 0x4b1   : > { %v2325_v2 = vpop.permute.xlu0 %2324 }
 0x4b3   : > { %4313 = vmatpush3.bf16.xpose.msra.mxu1 %v2037_v45  ;;  %4339 = vmatpush3.bf16.msra.mxu0 %v2323_v22 }
 0x4b4   : > { %4469 = vmatprep.subr.msk.bf16.mxu1 %vm1525_vm1, %v1995_v5  ;;  %4340 = vmatprep.subr.bf16.mxu0 %v2325_v2 }
 0x4b5   : > { %v2327_v36 = vpop.permute.xlu0 %2326 }
 0x4b7   : > { %4341 = vmatpush3.bf16.msra.mxu0 %v2325_v2  ;;  %v1970_v2 = vld [vmem:[%s6936_s18 + $0x50] sm:$0xff] }
 0x4b8   : > { %4342 = vmatprep.subr.bf16.mxu0 %v2327_v36 }
 0x4bb   : > { %4315 = vmatpush3.bf16.xpose.msra.mxu1 %v2040_v34  ;;  %4343 = vmatpush3.bf16.msra.mxu0 %v2327_v36  ;;  %v1968_v36 = vld [vmem:[%s6936_s18 + $0x40] sm:$0xff] }
 0x4bc   : > { %4470 = vmatprep.subr.msk.bf16.mxu1 %vm1525_vm1, %v1997_v49 }
 0x4c3   : > { %4317 = vmatpush3.bf16.xpose.msra.mxu1 %v2043_v21  ;;  %v1971_v21 = vld [vmem:[%s6936_s18 + $0x58] sm:$0xff] }
 0x4c4   : > { %4471 = vmatprep.subr.msk.bf16.mxu1 %vm1525_vm1, %v1999_v24 }
 0x4cb   : > { %4319 = vmatpush3.bf16.xpose.msra.mxu1 %v2046_v38 }
 0x4d2   : > { %4321 = vmatmul.mubr.msk.bf16.vlgmr.msra.gmra.mrb[32].mxu1 %vm1525_vm1, %v5689_v56  ;;  %v704_v56 = vld [vmem:[%s5760_s26] sm:$0x1] }
 0x4d3   : > { %4324 = vmatprep.mubr.msk.bf16.mxu1 %vm1525_vm1, %v5697_v53  ;;  %v2145_v54 = vmul.f32 -1e+30, %v704_v56 }
 0x4d5   : > { %v5767_v53 = vrot.slane %v2145_v54, %v5454_v50  ;;  %v1969_v54 = vld [vmem:[%s6936_s18 + $0x48] sm:$0xff] }
 0x4da   : > { %4325 = vmatmul.mubr.msk.bf16.gmra.mrb[36].mxu1 %vm1525_vm1, %v5695_v12  ;;  %v1962_v12 = vld [vmem:[%s6936_s18 + $0x10] sm:$0xff] }
 0x4db   : > { %4328 = vmatprep.mubr.msk.bf16.mxu1 %vm1525_vm1, %v5705_v44 }
 0x4e2   : > { %4329 = vmatmul.mubr.msk.bf16.gmra.mrb[40].mxu1 %vm1525_vm1, %v5703_v62 }
 0x4e3   : > { %4332 = vmatprep.mubr.msk.bf16.mxu1 %vm1525_vm1, %v5713_v0 }
 0x4ea   : > { %4333 = vmatmul.mubr.msk.bf16.gmra.mrb[44].mxu1 %vm1525_vm1, %v5711_v29 }
 0x5a5   : > { %v4322_v57 = vpop.f32.mrb[32].mxu1 }
 0x5a6   : > { %v2091_v55 = vadd.f32 %v4322_v57, %v1962_v12  ;;  %v2082_v42 = vpop.f32.mrb[33].mxu1 }
 0x5a7   : > { %v2083_v4 = vadd.f32 %v2082_v42, %v1960_v58  ;;  %v4323_v11 = vpop.f32.mrb[34].mxu1 }
 0x5a8   : > { %v2094_v14 = vadd.f32 %v4323_v11, %v1963_v47  ;;  %v2085_v46 = vpop.f32.mrb[35].mxu1  ;;  %v5779_v17 = vadd.f32 %v5767_v53, %v2091_v55  ;;  %v1974_v11 = vld [vmem:[%s6936_s18 + $0x70] sm:$0xff] }
 0x5a9   : > { %v2086_v33 = vadd.f32 %v2085_v46, %v1961_v25  ;;  %v5782_v52 = vadd.f32 %v5767_v53, %v2083_v4  ;;  %v1972_v46 = vld [vmem:[%s6936_s18 + $0x60] sm:$0xff] }
 0x5aa   : > { %2172 = vmax.xlane.f32.xlu0 %v5779_v17  ;;  %v5786_v61 = vadd.f32 %v5767_v53, %v2094_v14 }
 0x5ab   : > { %v5792_v8 = vadd.f32 %v5767_v53, %v2086_v33 }
 0x5ad   : > { %v4326_v15 = vpop.f32.mrb[36].mxu1  ;;  %2170 = vmax.xlane.f32.xlu1 %v5792_v8 }
 0x5ae   : > { %v2107_v43 = vadd.f32 %v4326_v15, %v1966_v19  ;;  %v2098_v41 = vpop.f32.mrb[37].mxu1  ;;  %2168 = vmax.xlane.f32.xlu0 %v5782_v52  ;;  %v1975_v19 = vld [vmem:[%s6936_s18 + $0x78] sm:$0xff] }
 0x5af   : > { %v2099_v18 = vadd.f32 %v2098_v41, %v1964_v39  ;;  %v4327_v5 = vpop.f32.mrb[38].mxu1 }
 0x5b0   : > { %v2110_v37 = vadd.f32 %v4327_v5, %v1967_v30  ;;  %v2101_v24 = vpop.f32.mrb[39].mxu1  ;;  %v5806_v49 = vadd.f32 %v5767_v53, %v2107_v43  ;;  %v1973_v30 = vld [vmem:[%s6936_s18 + $0x68] sm:$0xff] }
 0x5b1   : > { %v2102_v3 = vadd.f32 %v2101_v24, %v1965_v31  ;;  %v5809_v32 = vadd.f32 %v5767_v53, %v2099_v18 }
 0x5b2   : > { %2174 = vmax.xlane.f32.xlu0 %v5786_v61  ;;  %v5813_v22 = vadd.f32 %v5767_v53, %v2110_v37 }
 0x5b3   : > { %v5819_v45 = vadd.f32 %v5767_v53, %v2102_v3 }
 0x5b4   : > { %2182 = vmax.xlane.f32.xlu1 %v5813_v22 }
 0x5b5   : > { %v4330_v34 = vpop.f32.mrb[40].mxu1 }
 0x5b6   : > { %v2123_v38 = vadd.f32 %v4330_v34, %v1970_v2  ;;  %v2114_v56 = vpop.f32.mrb[41].mxu1  ;;  %2180 = vmax.xlane.f32.xlu0 %v5806_v49 }
 0x5b7   : > { %v2115_v12 = vadd.f32 %v2114_v56, %v1968_v36  ;;  %v4331_v58 = vpop.f32.mrb[42].mxu1 }
 0x5b8   : > { %v2126_v57 = vadd.f32 %v4331_v58, %v1971_v21  ;;  %v2117_v47 = vpop.f32.mrb[43].mxu1  ;;  %2178 = vmax.xlane.f32.xlu1 %v5819_v45  ;;  %v5834_v55 = vadd.f32 %v5767_v53, %v2123_v38 }
 0x5b9   : > { %v2118_v42 = vadd.f32 %v2117_v47, %v1969_v54  ;;  %v5837_v25 = vadd.f32 %v5767_v53, %v2115_v12 }
 0x5ba   : > { %2176 = vmax.xlane.f32.xlu0 %v5809_v32  ;;  %v5841_v4 = vadd.f32 %v5767_v53, %v2126_v57 }
 0x5bb   : > { %v5847_v14 = vadd.f32 %v5767_v53, %v2118_v42 }
 0x5bc   : > { %2190 = vmax.xlane.f32.xlu1 %v5841_v4 }
 0x5bd   : > { %v4334_v33 = vpop.f32.mrb[44].mxu1 }
 0x5be   : > { %v2139_v39 = vadd.f32 %v4334_v33, %v1974_v11  ;;  %v2130_v15 = vpop.f32.mrb[45].mxu1  ;;  %2188 = vmax.xlane.f32.xlu0 %v5834_v55 }
 0x5bf   : > { %v2131_v43 = vadd.f32 %v2130_v15, %v1972_v46  ;;  %v4335_v41 = vpop.f32.mrb[46].mxu1 }
 0x5c0   : > { %v2142_v31 = vadd.f32 %v4335_v41, %v1975_v19  ;;  %v2133_v18 = vpop.f32.mrb[47].mxu1  ;;  %2186 = vmax.xlane.f32.xlu1 %v5847_v14  ;;  %v5862_v5 = vadd.f32 %v5767_v53, %v2139_v39 }
 0x5c1   : > { %v2134_v37 = vadd.f32 %v2133_v18, %v1973_v30  ;;  %v5865_v24 = vadd.f32 %v5767_v53, %v2131_v43 }
 0x5c2   : > { %2184 = vmax.xlane.f32.xlu0 %v5837_v25  ;;  %v5869_v3 = vadd.f32 %v5767_v53, %v2142_v31 }
 0x5c3   : > { %v5872_v2 = vadd.f32 %v5767_v53, %v2134_v37 }
 0x5c6   : > { %2196 = vmax.xlane.f32.xlu0 %v5862_v5 }
 0x5ca   : > { %2192 = vmax.xlane.f32.xlu0 %v5865_v24 }
 0x5d1   : > { %2330 = vrot.lane.b32.xlu1 %v5703_v62, %s6968_s27 }
 0x5e0   : > { %2328 = vrot.lane.b32.xlu0 %v5705_v44, %s6968_s27 }
 0x5f5   : > { %2198 = vmax.xlane.f32.xlu1 %v5869_v3 }
 0x5f9   : > { %2194 = vmax.xlane.f32.xlu1 %v5872_v2 }
 0x637   : > { %v2173_v36 = vpop.xlane.xlu0 %2172 }
 0x638   : > { %v2202_v34 = vsub.f32 %v5779_v17, %v2173_v36 }
 0x63a   : > { %v2220_v21 = vmul.f32 1.442695, %v2202_v34  ;;  %v2171_v38 = vpop.xlane.xlu1 %2170 }
 0x63b   : > { %v2169_v53 = vpop.xlane.xlu0 %2168  ;;  %v2201_v12 = vsub.f32 %v5792_v8, %v2171_v38 }
 0x63c   : > { %4601 = vpow2.f32 %v2220_v21  ;;  %v2200_v56 = vsub.f32 %v5782_v52, %v2169_v53 }
 0x63d   : > { %v2218_v47 = vmul.f32 1.442695, %v2201_v12 }
 0x63e   : > { %v2216_v54 = vmul.f32 1.442695, %v2200_v56 }
 0x63f   : > { %v2175_v62 = vpop.xlane.xlu0 %2174 }
 0x640   : > { %4603 = vpow2.f32 %v2216_v54  ;;  %v2203_v44 = vsub.f32 %v5786_v61, %v2175_v62 }
 0x641   : > { %v2183_v58 = vpop.xlane.xlu1 %2182 }
 0x642   : > { %v2222_v57 = vmul.f32 1.442695, %v2203_v44  ;;  %v2207_v42 = vsub.f32 %v5813_v22, %v2183_v58 }
 0x643   : > { %v2181_v11 = vpop.xlane.xlu0 %2180 }
 0x644   : > { %4605 = vpow2.f32 %v2222_v57  ;;  %v2206_v17 = vsub.f32 %v5806_v49, %v2181_v11  ;;  %v2230_v19 = vmul.f32 1.442695, %v2207_v42 }
 0x645   : > { %v2179_v46 = vpop.xlane.xlu1 %2178  ;;  %4607 = vpow2.f32 %v2218_v47 }
 0x646   : > { %v5888_v33 = vpop.eup %4601  ;;  %v2228_v52 = vmul.f32 1.442695, %v2206_v17  ;;  %v2205_v61 = vsub.f32 %v5819_v45, %v2179_v46 }
 0x647   : > { %2252 = vadd.xlane.f32.xlu1 %v5888_v33  ;;  %v2177_v8 = vpop.xlane.xlu0 %2176 }
 0x648   : > { %4609 = vpow2.f32 %v2228_v52  ;;  %v2204_v39 = vsub.f32 %v5809_v32, %v2177_v8  ;;  %v2226_v30 = vmul.f32 1.442695, %v2205_v61 }
 0x649   : > { %4611 = vpow2.f32 %v2230_v19  ;;  %v2191_v45 = vpop.xlane.xlu1 %2190 }
 0x64a   : > { %v5893_v15 = vpop.eup %4603  ;;  %v2224_v22 = vmul.f32 1.442695, %v2204_v39  ;;  %v2211_v12 = vsub.f32 %v5841_v4, %v2191_v45 }
 0x64b   : > { %2248 = vadd.xlane.f32.xlu1 %v5893_v15  ;;  %v2189_v49 = vpop.xlane.xlu0 %2188 }
 0x64c   : > { %4613 = vpow2.f32 %v2224_v22  ;;  %v2238_v58 = vmul.f32 1.442695, %v2211_v12  ;;  %v2210_v57 = vsub.f32 %v5834_v55, %v2189_v49 }
 0x64d   : > { %4615 = vpow2.f32 %v2226_v30  ;;  %v2187_v34 = vpop.xlane.xlu1 %2186 }
 0x64e   : > { %v5896_v43 = vpop.eup %4605  ;;  %v2209_v62 = vsub.f32 %v5847_v14, %v2187_v34  ;;  %v2236_v11 = vmul.f32 1.442695, %v2210_v57 }
 0x64f   : > { %2254 = vadd.xlane.f32.xlu1 %v5896_v43  ;;  %v2185_v41 = vpop.xlane.xlu0 %2184  ;;  %v5899_v31 = vpop.eup %4607 }
 0x650   : > { %v2208_v54 = vsub.f32 %v5837_v25, %v2185_v41  ;;  %v2234_v47 = vmul.f32 1.442695, %v2209_v62 }
 0x651   : > { %v2331_v56 = vpop.permute.xlu1 %2330 }
 0x652   : > { %v5901_v18 = vpop.eup %4609  ;;  %v2232_v44 = vmul.f32 1.442695, %v2208_v54 }
 0x653   : > { %2250 = vadd.xlane.f32.xlu1 %v5899_v31  ;;  %2260 = vadd.xlane.f32.xlu0 %v5901_v18  ;;  %v2197_v32 = vpop.xlane.xlu0 %2196  ;;  %v5905_v37 = vpop.eup %4611 }
 0x654   : > { %4617 = vpow2.f32 %v2232_v44  ;;  %v2214_v4 = vsub.f32 %v5862_v5, %v2197_v32 }
 0x655   : > { %4619 = vpow2.f32 %v2238_v58 }
 0x656   : > { %v5907_v36 = vpop.eup %4613  ;;  %4621 = vpow2.f32 %v2234_v47  ;;  %v2244_v19 = vmul.f32 1.442695, %v2214_v4 }
 0x657   : > { %2262 = vadd.xlane.f32.xlu0 %v5905_v37  ;;  %2256 = vadd.xlane.f32.xlu1 %v5907_v36  ;;  %v2193_v21 = vpop.xlane.xlu0 %2192  ;;  %v5911_v53 = vpop.eup %4615  ;;  %4623 = vpow2.f32 %v2236_v11  ;;  %v4531_v11 = vld [vmem:[%s6929_s11] sm:$0xff]  }
 0x65b   : > { %2258 = vadd.xlane.f32.xlu0 %v5911_v53  ;;  %v2329_v38 = vpop.permute.xlu0 %2328 }
 0x65c   : > { %4344 = vmatprep.subr.bf16.mxu0 %v2329_v38 }
 0x65d   : > { %4345 = vmatpush3.bf16.msra.mxu0 %v2329_v38 }
 0x65e   : > { %4346 = vmatprep.subr.bf16.mxu0 %v2331_v56  ;;  %v5926_v52 = vpop.eup %4617 }
 0x65f   : > { %v5929_v8 = vpop.eup %4619 }
 0x661   : > { %4347 = vmatpush3.bf16.msra.mxu0 %v2331_v56 }
 0x668   : > { %2334 = vrot.lane.b32.xlu1 %v5711_v29, %s6968_s27  ;;  %v2212_v29 = vsub.f32 %v5865_v24, %v2193_v21  ;;  %v5931_v24 = vpop.eup %4621 }
 0x669   : > { %v5935_v5 = vpop.eup %4623 }
 0x66a   : > { %v2240_v14 = vmul.f32 1.442695, %v2212_v29 }
 0x671   : > { %2332 = vrot.lane.b32.xlu0 %v5713_v0, %s6968_s27  ;;  %s4801_s27 = sshll.u32 %s4899_s0, 4  ;;  %s4802_s27 = int_to_ptr.vmem [resolvable:$false] %s4801_s27 }
 0x672   : > { %s4803_s7 = scalar_lea.vmem %s4802_s27, 32  ;;  %p4804_p0 = scmp.lt.s32.totalorder %s6836_s25, %s4802_s27 }
 0x673   : > { %p4805_p1 = scmp.lt.s32.totalorder %s4803_s7, %s4797_s30 }
 0x675   : > { %p4806_p2 = por %p4805_p1, %p4804_p0 }
 0x677   : > { %p4807_p3 = pnand %p4806_p2, %p4800_p13 }
 0x682   : > { %v2199_v42 = vpop.xlane.xlu1 %2198 }
 0x683   : > { %v2215_v0 = vsub.f32 %v5869_v3, %v2199_v42 }
 0x685   : > { %v2246_v55 = vmul.f32 1.442695, %v2215_v0 }
 0x686   : > { %v2195_v17 = vpop.xlane.xlu1 %2194 }
 0x687   : > { %v2213_v25 = vsub.f32 %v5872_v2, %v2195_v17 }
 0x689   : > { %v2242_v46 = vmul.f32 1.442695, %v2213_v25 }
 0x68b   : > { %4625 = vpow2.f32 %v2242_v46 }
 0x68c   : > { %2264 = vadd.xlane.f32.xlu1 %v5926_v52  ;;  %4627 = vpow2.f32 %v2240_v14 }
 0x68d   : > { %4629 = vpow2.f32 %v2246_v55 }
 0x68e   : > { %4631 = vpow2.f32 %v2244_v19 }
 0x690   : > { %2266 = vadd.xlane.f32.xlu0 %v5931_v24  ;;  %2270 = vadd.xlane.f32.xlu1 %v5929_v8 }
 0x694   : > { %2268 = vadd.xlane.f32.xlu0 %v5935_v5 }
 0x695   : > { %v5938_v3 = vpop.eup %4625 }
 0x696   : > { %2274 = vadd.xlane.f32.xlu1 %v5938_v3  ;;  %v5941_v2 = vpop.eup %4627 }
 0x697   : > { %v5944_v61 = vpop.eup %4629 }
 0x698   : > { %2272 = vadd.xlane.f32.xlu0 %v5941_v2  ;;  %v5947_v39 = vpop.eup %4631 }
 0x69a   : > { %2278 = vadd.xlane.f32.xlu1 %v5944_v61 }
 0x69c   : > { %2276 = vadd.xlane.f32.xlu0 %v5947_v39 }
 0x6d4   : > { %v2253_v22 = vpop.xlane.xlu1 %2252 }
 0x6d8   : > { %v2249_v49 = vpop.xlane.xlu1 %2248 }
 0x6d9   : > { %4633 = vrcp.f32 %v2249_v49 }
 0x6dc   : > { %v2255_v30 = vpop.xlane.xlu1 %2254 }
 0x6e0   : > { %v2251_v41 = vpop.xlane.xlu1 %2250  ;;  %v2261_v45 = vpop.xlane.xlu0 %2260 }
 0x6e1   : > { %4635 = vrcp.f32 %v2251_v41 }
 0x6e2   : > { %4637 = vrcp.f32 %v2255_v30 }
 0x6e3   : > { %4639 = vrcp.f32 %v2253_v22  ;;  %v4634_v38 = vpop.eup %4633 }
 0x6e4   : > { %v2257_v32 = vpop.xlane.xlu1 %2256  ;;  %v2263_v34 = vpop.xlane.xlu0 %2262  ;;  %v2296_v62 = vmul.f32 %v4634_v38, %v5893_v15 }
 0x6e5   : > { %4641 = vrcp.f32 %v2257_v32 }
 0x6e8   : > { %v2259_v21 = vpop.xlane.xlu0 %2258  ;;  %v2335_v57 = vpop.permute.xlu1 %2334 }
 0x6e9   : > { %4643 = vrcp.f32 %v2259_v21 }
 0x6ea   : > { %4645 = vrcp.f32 %v2263_v34 }
 0x6eb   : > { %v4636_v56 = vpop.eup %4635  ;;  %4647 = vrcp.f32 %v2261_v45 }
 0x6ec   : > { %v4638_v54 = vpop.eup %4637  ;;  %v2333_v12 = vpop.permute.xlu0 %2332  ;;  %v2297_v44 = vmul.f32 %v4636_v56, %v5899_v31 }
 0x6ed   : > { %4348 = vmatprep.subr.bf16.mxu0 %v2333_v12  ;;  %v4640_v58 = vpop.eup %4639  ;;  %v2299_v42 = vmul.f32 %v4638_v54, %v5896_v43 }
 0x6ee   : > { %4349 = vmatpush3.bf16.msra.mxu0 %v2333_v12  ;;  %v2312_v47 = vpack.c.bf16 %v2297_v44, %v2296_v62  ;;  %v2298_v17 = vmul.f32 %v4640_v58, %v5888_v33 }
 0x6ef   : > { %4350 = vmatprep.subr.bf16.mxu0 %v2335_v57  ;;  %v4642_v29 = vpop.eup %4641 }
 0x6f0   : > { %4352 = vmatprep.mubr.bf16.mxu0 %v2312_v47  ;;  %v2313_v0 = vpack.c.bf16 %v2299_v42, %v2298_v17  ;;  %v2300_v25 = vmul.f32 %v4642_v29, %v5907_v36 }
 0x6f2   : > { %4351 = vmatpush3.bf16.msra.mxu0 %v2335_v57 }
 0x6f3   : > { %v4644_v15 = vpop.eup %4643  ;;  %4368 = vmatprep.subr.bf16.mxu0 %v4531_v11 }
 0x6f4   : > { %v4646_v31 = vpop.eup %4645  ;;  %v2301_v4 = vmul.f32 %v4644_v15, %v5911_v53 }
 0x6f5   : > { %4353 = vmatmul.mubr.bf16.vlgmr.msra.gmra.mrb[32].mxu0 %v2313_v0  ;;  %v4648_v43 = vpop.eup %4647  ;;  %v2303_v46 = vmul.f32 %v4646_v31, %v5905_v37 }
 0x6f6   : > { %v2314_v14 = vpack.c.bf16 %v2301_v4, %v2300_v25  ;;  %4369 = vmatpush3.bf16.msra.mxu0 %v4531_v11  ;;  %v2302_v55 = vmul.f32 %v4648_v43, %v5901_v18 }
 0x6f8   : > { %4356 = vmatprep.mubr.bf16.mxu0 %v2314_v14  ;;  %v2315_v19 = vpack.c.bf16 %v2303_v46, %v2302_v55 }
 0x6fd   : > { %4357 = vmatmul.mubr.bf16.gmra.mrb[36].mxu0 %v2315_v19 }
 0x719   : > { %v2265_v33 = vpop.xlane.xlu1 %2264 }
 0x71a   : > { %4649 = vrcp.f32 %v2265_v33 }
 0x71d   : > { %v2271_v22 = vpop.xlane.xlu1 %2270  ;;  %v2267_v49 = vpop.xlane.xlu0 %2266 }
 0x71e   : > { %4651 = vrcp.f32 %v2267_v49 }
 0x71f   : > { %4653 = vrcp.f32 %v2271_v22 }
 0x721   : > { %v2269_v36 = vpop.xlane.xlu0 %2268 }
 0x722   : > { %4655 = vrcp.f32 %v2269_v36 }
 0x723   : > { %v2275_v53 = vpop.xlane.xlu1 %2274 }
 0x724   : > { %4657 = vrcp.f32 %v2275_v53  ;;  %v4650_v41 = vpop.eup %4649 }
 0x725   : > { %v2273_v30 = vpop.xlane.xlu0 %2272  ;;  %v2304_v34 = vmul.f32 %v4650_v41, %v5926_v52 }
 0x726   : > { %4659 = vrcp.f32 %v2273_v30 }
 0x727   : > { %v2279_v45 = vpop.xlane.xlu1 %2278 }
 0x728   : > { %4661 = vrcp.f32 %v2279_v45  ;;  %v4652_v37 = vpop.eup %4651 }
 0x729   : > { %v2277_v32 = vpop.xlane.xlu0 %2276  ;;  %v4654_v18 = vpop.eup %4653  ;;  %v2305_v21 = vmul.f32 %v4652_v37, %v5931_v24 }
 0x72a   : > { %4663 = vrcp.f32 %v2277_v32  ;;  %v2307_v12 = vmul.f32 %v4654_v18, %v5929_v8  ;;  %v4532_v8 = vld [vmem:[%s6929_s11 + $0x8] sm:$0xff]   ;;  %v2455_v32 = vsub.s32 3, %v5059_v1  ;;  %v5984_v18 = vld [vmem:[%s6933_s15] sm:$0xff] }
 0x72b   : > { %v2316_v56 = vpack.c.bf16 %v2305_v21, %v2304_v34  ;;  %4370 = vmatprep.subr.bf16.mxu0 %v4532_v8 }
 0x72c   : > { %v4656_v38 = vpop.eup %4655  ;;  %4371 = vmatpush3.bf16.msra.mxu0 %v4532_v8  ;;  %v5987_v34 = vrot.slane %v5984_v18, %v2455_v32 }
 0x72d   : > { %v2306_v54 = vmul.f32 %v4656_v38, %v5935_v5  ;;  %4360 = vmatprep.mubr.bf16.mxu0 %v2316_v56 }
 0x72e   : > { %v4658_v62 = vpop.eup %4657 }
 0x72f   : > { %v2317_v44 = vpack.c.bf16 %v2307_v12, %v2306_v54  ;;  %v2309_v47 = vmul.f32 %v4658_v62, %v5938_v3 }
 0x730   : > { %v4660_v58 = vpop.eup %4659 }
 0x731   : > { %4361 = vmatmul.mubr.bf16.gmra.mrb[40].mxu0 %v2317_v44  ;;  %v2308_v57 = vmul.f32 %v4660_v58, %v5941_v2 }
 0x732   : > { %v4662_v42 = vpop.eup %4661 }
 0x733   : > { %v2318_v11 = vpack.c.bf16 %v2309_v47, %v2308_v57  ;;  %v2311_v29 = vmul.f32 %v4662_v42, %v5944_v61 }
 0x734   : > { %v4664_v52 = vpop.eup %4663 }
 0x735   : > { %4364 = vmatprep.mubr.bf16.mxu0 %v2318_v11  ;;  %v2310_v24 = vmul.f32 %v4664_v52, %v5947_v39 }
 0x737   : > { %v2319_v5 = vpack.c.bf16 %v2311_v29, %v2310_v24 }
 0x739   : > { %4365 = vmatmul.mubr.bf16.gmra.mrb[44].mxu0 %v2319_v5 }
 0x7c8   : > { %v4354_v17 = vpop.f32.mrb[32].mxu0 }
 0x7c9   : > { %v2378_v2 = vpop.f32.mrb[33].mxu0 }
 0x7ca   : > { %v4355_v15 = vpop.f32.mrb[34].mxu0 }
 0x7cb   : > { %v2442_v3 = vpack.c.bf16 %v4355_v15, %v4354_v17  ;;  %v2381_v0 = vpop.f32.mrb[35].mxu0 }
 0x7cc   : > { %v2441_v31 = vpack.c.bf16 %v2381_v0, %v2378_v2 }
 0x7ce   : > { %4372 = vmatprep.mubr.msk.bf16.mxu0 %vm1525_vm1, %v2441_v31 }
 0x7cf   : > { %4373 = vmatmul.mubr.msk.bf16.vlgmr.msra.gmra.mrb[48].mxu0 %vm1525_vm1, %v2442_v3 }
 0x7d0   : > { %v4358_v39 = vpop.f32.mrb[36].mxu0 }
 0x7d1   : > { %v2394_v61 = vpop.f32.mrb[37].mxu0 }
 0x7d2   : > { %v4359_v25 = vpop.f32.mrb[38].mxu0 }
 0x7d3   : > { %v2444_v4 = vpack.c.bf16 %v4359_v25, %v4358_v39  ;;  %v2397_v43 = vpop.f32.mrb[39].mxu0 }
 0x7d4   : > { %v2443_v14 = vpack.c.bf16 %v2397_v43, %v2394_v61 }
 0x7d6   : > { %4376 = vmatprep.mubr.msk.bf16.mxu0 %vm1525_vm1, %v2443_v14 }
 0x7d7   : > { %4377 = vmatmul.mubr.msk.bf16.gmra.mrb[52].mxu0 %vm1525_vm1, %v2444_v4 }
 0x804   : > { %v4362_v46 = vpop.f32.mrb[40].mxu0 }
 0x805   : > { %v2410_v55 = vpop.f32.mrb[41].mxu0 }
 0x806   : > { %v4363_v19 = vpop.f32.mrb[42].mxu0 }
 0x807   : > { %v2446_v33 = vpack.c.bf16 %v4363_v19, %v4362_v46  ;;  %v2413_v22 = vpop.f32.mrb[43].mxu0 }
 0x808   : > { %v2445_v49 = vpack.c.bf16 %v2413_v22, %v2410_v55 }
 0x80a   : > { %4380 = vmatprep.mubr.msk.bf16.mxu0 %vm1525_vm1, %v2445_v49 }
 0x80b   : > { %4381 = vmatmul.mubr.msk.bf16.gmra.mrb[56].mxu0 %vm1525_vm1, %v2446_v33 }
 0x80c   : > { %v4366_v36 = vpop.f32.mrb[44].mxu0 }
 0x80d   : > { %v2426_v53 = vpop.f32.mrb[45].mxu0 }
 0x80e   : > { %v4367_v30 = vpop.f32.mrb[46].mxu0 }
 0x80f   : > { %v2448_v41 = vpack.c.bf16 %v4367_v30, %v4366_v36  ;;  %v2429_v45 = vpop.f32.mrb[47].mxu0 }
 0x810   : > { %v2447_v37 = vpack.c.bf16 %v2429_v45, %v2426_v53 }
 0x812   : > { %4384 = vmatprep.mubr.msk.bf16.mxu0 %vm1525_vm1, %v2447_v37 }
 0x813   : > { %4385 = vmatmul.mubr.msk.bf16.gmra.mrb[60].mxu0 %vm1525_vm1, %v2448_v41 }
 0x8a2   : > { %v4374_v21 = vpop.f32.mrb[48].mxu0 }
 0x8a3   : > { %v2527_v38 = vpop.f32.mrb[49].mxu0  ;;  %v2536_v56 = vadd.f32 %v4374_v21, %v5987_v34 }
 0x8a4   : > { %v2528_v54 = vadd.f32 %v2527_v38, %v5987_v34  ;;  %v4375_v12 = vpop.f32.mrb[50].mxu0 }
 0x8a5   : > { %v2530_v62 = vpop.f32.mrb[51].mxu0  ;;  %v2539_v58 = vadd.f32 %v4375_v12, %v5987_v34  ;;  %v5997_v47 = vadd.f32 %v2536_v56, %v5636_v60 }
 0x8a6   : > { %v5992_v44 = vadd.f32 %v2528_v54, %v5632_v7  ;;  %v2531_v57 = vadd.f32 %v2530_v62, %v5987_v34 }
 0x8a7   : > { %v6005_v52 = vadd.f32 %v2539_v58, %v5630_v16 }
 0x8a8   : > { %v6000_v42 = vadd.f32 %v2531_v57, %v5634_v40  ;;  %v2606_v11 = vsel %vm1525_vm1, %v5992_v44, 0.0  ;;  %v2612_v40 = vsel %vm1525_vm1, %v5997_v47, 0.0 }
 0x8a9   : > { %2607 = vadd.xlane.f32.xlu0 %v2606_v11  ;;  %v2615_v3 = vsel %vm1525_vm1, %v6005_v52, 0.0 }
 0x8aa   : > { %v4378_v24 = vpop.f32.mrb[52].mxu0  ;;  %v2609_v7 = vsel %vm1525_vm1, %v6000_v42, 0.0 }
 0x8ab   : > { %v2543_v29 = vpop.f32.mrb[53].mxu0  ;;  %2610 = vadd.xlane.f32.xlu1 %v2609_v7  ;;  %v2552_v5 = vadd.f32 %v4378_v24, %v5987_v34 }
 0x8ac   : > { %v2544_v60 = vadd.f32 %v2543_v29, %v5987_v34  ;;  %v4379_v8 = vpop.f32.mrb[54].mxu0 }
 0x8ad   : > { %v2546_v17 = vpop.f32.mrb[55].mxu0  ;;  %2613 = vadd.xlane.f32.xlu0 %v2612_v40  ;;  %v2555_v16 = vadd.f32 %v4379_v8, %v5987_v34  ;;  %v6021_v0 = vadd.f32 %v2552_v5, %v5650_v28 }
 0x8ae   : > { %v6014_v2 = vadd.f32 %v2544_v60, %v5646_v6  ;;  %v2547_v15 = vadd.f32 %v2546_v17, %v5987_v34 }
 0x8af   : > { %2616 = vadd.xlane.f32.xlu1 %v2615_v3  ;;  %v6029_v6 = vadd.f32 %v2555_v16, %v5644_v35  ;;  %v2624_v25 = vsel %vm1525_vm1, %v6021_v0, 0.0 }
 0x8b0   : > { %v6024_v31 = vadd.f32 %v2547_v15, %v5648_v63  ;;  %v2618_v39 = vsel %vm1525_vm1, %v6014_v2, 0.0 }
 0x8b1   : > { %2619 = vadd.xlane.f32.xlu0 %v2618_v39  ;;  %v2627_v28 = vsel %vm1525_vm1, %v6029_v6, 0.0 }
 0x8b2   : > { %v2621_v61 = vsel %vm1525_vm1, %v6024_v31, 0.0 }
 0x8b3   : > { %2622 = vadd.xlane.f32.xlu1 %v2621_v61 }
 0x8b5   : > { %2625 = vadd.xlane.f32.xlu0 %v2624_v25 }
 0x8b7   : > { %2628 = vadd.xlane.f32.xlu1 %v2627_v28 }
 0x8de   : > { %v4382_v63 = vpop.f32.mrb[56].mxu0 }
 0x8df   : > { %v2559_v4 = vpop.f32.mrb[57].mxu0  ;;  %v2568_v43 = vadd.f32 %v4382_v63, %v5987_v34 }
 0x8e0   : > { %v2560_v14 = vadd.f32 %v2559_v4, %v5987_v34  ;;  %v4383_v35 = vpop.f32.mrb[58].mxu0 }
 0x8e1   : > { %v2562_v46 = vpop.f32.mrb[59].mxu0  ;;  %v2571_v19 = vadd.f32 %v4383_v35, %v5987_v34  ;;  %v6045_v22 = vadd.f32 %v2568_v43, %v5664_v48 }
 0x8e2   : > { %v6040_v55 = vadd.f32 %v2560_v14, %v5660_v27  ;;  %v2563_v33 = vadd.f32 %v2562_v46, %v5987_v34 }
 0x8e3   : > { %v6053_v53 = vadd.f32 %v2571_v19, %v5658_v20 }
 0x8e4   : > { %v6048_v49 = vadd.f32 %v2563_v33, %v5662_v23  ;;  %v2630_v36 = vsel %vm1525_vm1, %v6040_v55, 0.0  ;;  %v2636_v23 = vsel %vm1525_vm1, %v6045_v22, 0.0 }
 0x8e5   : > { %2631 = vadd.xlane.f32.xlu0 %v2630_v36  ;;  %v2639_v56 = vsel %vm1525_vm1, %v6053_v53, 0.0 }
 0x8e6   : > { %v4386_v30 = vpop.f32.mrb[60].mxu0  ;;  %v2633_v27 = vsel %vm1525_vm1, %v6048_v49, 0.0 }
 0x8e7   : > { %2634 = vadd.xlane.f32.xlu1 %v2633_v27  ;;  %v2575_v41 = vpop.f32.mrb[61].mxu0  ;;  %v2584_v45 = vadd.f32 %v4386_v30, %v5987_v34 }
 0x8e8   : > { %v2576_v48 = vadd.f32 %v2575_v41, %v5987_v34  ;;  %v4387_v37 = vpop.f32.mrb[62].mxu0 }
 0x8e9   : > { %2637 = vadd.xlane.f32.xlu0 %v2636_v23  ;;  %v2578_v32 = vpop.f32.mrb[63].mxu0  ;;  %v2587_v20 = vadd.f32 %v4387_v37, %v5987_v34  ;;  %v6069_v54 = vadd.f32 %v2584_v45, %v5678_v26  ;;  %v4534_v37 = vld [vmem:[%s6930_s12 + $0x8] sm:$0xff]  }
 0x8ea   : > { %v6062_v21 = vadd.f32 %v2576_v48, %v5674_v51  ;;  %v2579_v38 = vadd.f32 %v2578_v32, %v5987_v34 }
 0x8eb   : > { %2640 = vadd.xlane.f32.xlu1 %v2639_v56  ;;  %v6077_v51 = vadd.f32 %v2587_v20, %v5672_v59  ;;  %v2648_v58 = vsel %vm1525_vm1, %v6069_v54, 0.0 }
 0x8ec   : > { %v6072_v12 = vadd.f32 %v2579_v38, %v5676_v13  ;;  %v2642_v62 = vsel %vm1525_vm1, %v6062_v21, 0.0 }
 0x8ed   : > { %2643 = vadd.xlane.f32.xlu0 %v2642_v62  ;;  %v2651_v26 = vsel %vm1525_vm1, %v6077_v51, 0.0 }
 0x8ee   : > { %v2645_v34 = vsel %vm1525_vm1, %v6072_v12, 0.0 }
 0x8ef   : > { %2646 = vadd.xlane.f32.xlu1 %v2645_v34 }
 0x8f1   : > { %2649 = vadd.xlane.f32.xlu0 %v2648_v58 }
 0x8f3   : > { %2652 = vadd.xlane.f32.xlu1 %v2651_v26 }
 0x936   : > { %v2608_v13 = vpop.xlane.xlu0 %2607 }
 0x937   : > { %v2655_v57 = vmul.f32 0.03125, %v2608_v13 }
 0x938   : > { %v2611_v11 = vpop.xlane.xlu1 %2610 }
 0x939   : > { %v6086_v24 = vsub.f32 %v5992_v44, %v2655_v57  ;;  %v2656_v59 = vmul.f32 0.03125, %v2611_v11 }
 0x93a   : > { %v2614_v7 = vpop.xlane.xlu0 %2613 }
 0x93b   : > { %v6089_v29 = vsub.f32 %v6000_v42, %v2656_v59  ;;  %v2657_v5 = vmul.f32 0.03125, %v2614_v7  ;;  %v2687_v60 = vmul.f32 %v6086_v24, %v6086_v24 }
 0x93c   : > { %v2617_v8 = vpop.xlane.xlu1 %2616 }
 0x93d   : > { %v6094_v40 = vsub.f32 %v5997_v47, %v2657_v5  ;;  %v2658_v17 = vmul.f32 0.03125, %v2617_v8  ;;  %v2703_v16 = vsel %vm1525_vm1, %v2687_v60, 0.0  ;;  %v2688_v44 = vmul.f32 %v6089_v29, %v6089_v29 }
 0x93e   : > { %v2620_v15 = vpop.xlane.xlu0 %2619  ;;  %2704 = vadd.xlane.f32.xlu0 %v2703_v16 }
 0x93f   : > { %v6100_v3 = vsub.f32 %v6005_v52, %v2658_v17  ;;  %v2659_v42 = vmul.f32 0.03125, %v2620_v15  ;;  %v2706_v39 = vsel %vm1525_vm1, %v2688_v44, 0.0  ;;  %v2689_v61 = vmul.f32 %v6094_v40, %v6094_v40 }
 0x940   : > { %v2623_v25 = vpop.xlane.xlu1 %2622  ;;  %2707 = vadd.xlane.f32.xlu1 %v2706_v39 }
 0x941   : > { %v6106_v47 = vsub.f32 %v6014_v2, %v2659_v42  ;;  %v2660_v28 = vmul.f32 0.03125, %v2623_v25  ;;  %v2709_v63 = vsel %vm1525_vm1, %v2689_v61, 0.0  ;;  %v2690_v4 = vmul.f32 %v6100_v3, %v6100_v3 }
 0x942   : > { %v2626_v43 = vpop.xlane.xlu0 %2625  ;;  %2710 = vadd.xlane.f32.xlu0 %v2709_v63 }
 0x943   : > { %v6112_v52 = vsub.f32 %v6024_v31, %v2660_v28  ;;  %v2661_v14 = vmul.f32 0.03125, %v2626_v43  ;;  %v2712_v35 = vsel %vm1525_vm1, %v2690_v4, 0.0  ;;  %v2691_v46 = vmul.f32 %v6106_v47, %v6106_v47 }
 0x944   : > { %v2629_v19 = vpop.xlane.xlu1 %2628  ;;  %2713 = vadd.xlane.f32.xlu1 %v2712_v35 }
 0x945   : > { %v6118_v2 = vsub.f32 %v6021_v0, %v2661_v14  ;;  %v2662_v33 = vmul.f32 0.03125, %v2629_v19  ;;  %v2715_v36 = vsel %vm1525_vm1, %v2691_v46, 0.0  ;;  %v2692_v30 = vmul.f32 %v6112_v52, %v6112_v52 }
 0x946   : > { %2716 = vadd.xlane.f32.xlu0 %v2715_v36 }
 0x947   : > { %v6124_v31 = vsub.f32 %v6029_v6, %v2662_v33  ;;  %v2718_v27 = vsel %vm1525_vm1, %v2692_v30, 0.0  ;;  %v2693_v41 = vmul.f32 %v6118_v2, %v6118_v2  ;;  %v4533_v6 = vld [vmem:[%s6930_s12] sm:$0xff]  }
 0x948   : > { %2719 = vadd.xlane.f32.xlu1 %v2718_v27  ;;  %4388 = vmatprep.subr.bf16.mxu1 %v4533_v6 }
 0x949   : > { %v2721_v45 = vsel %vm1525_vm1, %v2693_v41, 0.0  ;;  %v2694_v0 = vmul.f32 %v6124_v31, %v6124_v31  ;;  %4389 = vmatpush3.bf16.msra.mxu1 %v4533_v6 }
 0x94a   : > { %2722 = vadd.xlane.f32.xlu0 %v2721_v45  ;;  %4390 = vmatprep.subr.bf16.mxu1 %v4534_v37 }
 0x94b   : > { %v2724_v48 = vsel %vm1525_vm1, %v2694_v0, 0.0 }
 0x94c   : > { %2725 = vadd.xlane.f32.xlu1 %v2724_v48 }
 0x94d   : > { %4391 = vmatpush3.bf16.msra.mxu1 %v4534_v37 }
 0x972   : > { %v2632_v23 = vpop.xlane.xlu0 %2631 }
 0x973   : > { %v2663_v32 = vmul.f32 0.03125, %v2632_v23 }
 0x974   : > { %v2635_v20 = vpop.xlane.xlu1 %2634 }
 0x975   : > { %v6140_v38 = vsub.f32 %v6040_v55, %v2663_v32  ;;  %v2664_v56 = vmul.f32 0.03125, %v2635_v20 }
 0x976   : > { %v2638_v62 = vpop.xlane.xlu0 %2637 }
 0x977   : > { %v6143_v34 = vsub.f32 %v6048_v49, %v2664_v56  ;;  %v2665_v58 = vmul.f32 0.03125, %v2638_v62  ;;  %v2695_v26 = vmul.f32 %v6140_v38, %v6140_v38  ;;  %v2817_v56 = vsub.s32 4, %v5059_v1 }
 0x978   : > { %v2641_v13 = vpop.xlane.xlu1 %2640 }
 0x979   : > { %v6148_v57 = vsub.f32 %v6045_v22, %v2665_v58  ;;  %v2666_v11 = vmul.f32 0.03125, %v2641_v13  ;;  %v2727_v59 = vsel %vm1525_vm1, %v2695_v26, 0.0  ;;  %v2696_v55 = vmul.f32 %v6143_v34, %v6143_v34 }
 0x97a   : > { %2728 = vadd.xlane.f32.xlu0 %v2727_v59  ;;  %v2644_v7 = vpop.xlane.xlu0 %2643 }
 0x97b   : > { %v6154_v5 = vsub.f32 %v6053_v53, %v2666_v11  ;;  %v2667_v49 = vmul.f32 0.03125, %v2644_v7  ;;  %v2730_v60 = vsel %vm1525_vm1, %v2696_v55, 0.0  ;;  %v2697_v8 = vmul.f32 %v6148_v57, %v6148_v57 }
 0x97c   : > { %2731 = vadd.xlane.f32.xlu1 %v2730_v60  ;;  %v2647_v22 = vpop.xlane.xlu1 %2646  ;;  %v6189_v55 = vrot.slane %v5984_v18, %v2817_v56  ;;  %v2837_v7 = vsub.s32 5, %v5059_v1 }
 0x97d   : > { %v6160_v17 = vsub.f32 %v6062_v21, %v2667_v49  ;;  %v2668_v16 = vmul.f32 0.03125, %v2647_v22  ;;  %v2733_v44 = vsel %vm1525_vm1, %v2697_v8, 0.0  ;;  %v2698_v15 = vmul.f32 %v6154_v5, %v6154_v5 }
 0x97e   : > { %2734 = vadd.xlane.f32.xlu0 %v2733_v44  ;;  %v2650_v53 = vpop.xlane.xlu0 %2649 }
 0x97f   : > { %v6166_v42 = vsub.f32 %v6072_v12, %v2668_v16  ;;  %v2669_v39 = vmul.f32 0.03125, %v2650_v53  ;;  %v2736_v61 = vsel %vm1525_vm1, %v2698_v15, 0.0  ;;  %v2699_v25 = vmul.f32 %v6160_v17, %v6160_v17 }
 0x980   : > { %2737 = vadd.xlane.f32.xlu1 %v2736_v61  ;;  %v2653_v21 = vpop.xlane.xlu1 %2652 }
 0x981   : > { %v6172_v28 = vsub.f32 %v6069_v54, %v2669_v39  ;;  %v2670_v63 = vmul.f32 0.03125, %v2653_v21  ;;  %v2739_v4 = vsel %vm1525_vm1, %v2699_v25, 0.0  ;;  %v2700_v43 = vmul.f32 %v6166_v42, %v6166_v42 }
 0x982   : > { %2740 = vadd.xlane.f32.xlu0 %v2739_v4  ;;  %v6195_v39 = vrot.slane %v5984_v18, %v2837_v7 }
 0x983   : > { %v6178_v12 = vsub.f32 %v6077_v51, %v2670_v63  ;;  %v2742_v14 = vsel %vm1525_vm1, %v2700_v43, 0.0  ;;  %v2701_v35 = vmul.f32 %v6172_v28, %v6172_v28 }
 0x984   : > { %2743 = vadd.xlane.f32.xlu1 %v2742_v14 }
 0x985   : > { %v2745_v46 = vsel %vm1525_vm1, %v2701_v35, 0.0  ;;  %v2702_v54 = vmul.f32 %v6178_v12, %v6178_v12 }
 0x986   : > { %2746 = vadd.xlane.f32.xlu0 %v2745_v46 }
 0x987   : > { %v2748_v19 = vsel %vm1525_vm1, %v2702_v54, 0.0 }
 0x988   : > { %2749 = vadd.xlane.f32.xlu1 %v2748_v19 }
 0x9cb   : > { %v2705_v33 = vpop.xlane.xlu0 %2704 }
 0x9cc   : > { %v2751_v36 = vmul.f32 0.03125, %v2705_v33 }
 0x9cd   : > { %v2708_v30 = vpop.xlane.xlu1 %2707 }
 0x9ce   : > { %v2767_v51 = vadd.f32 1e-05, %v2751_v36  ;;  %v2752_v27 = vmul.f32 0.03125, %v2708_v30 }
 0x9cf   : > { %v2711_v41 = vpop.xlane.xlu0 %2710 }
 0x9d0   : > { %4665 = vrsqrt.f32 %v2767_v51  ;;  %v2768_v45 = vadd.f32 1e-05, %v2752_v27  ;;  %v2753_v0 = vmul.f32 0.03125, %v2711_v41 }
 0x9d1   : > { %v2714_v48 = vpop.xlane.xlu1 %2713 }
 0x9d2   : > { %4667 = vrsqrt.f32 %v2768_v45  ;;  %v2769_v6 = vadd.f32 1e-05, %v2753_v0  ;;  %v2754_v37 = vmul.f32 0.03125, %v2714_v48 }
 0x9d3   : > { %v2717_v23 = vpop.xlane.xlu0 %2716 }
 0x9d4   : > { %4669 = vrsqrt.f32 %v2769_v6  ;;  %v2770_v32 = vadd.f32 1e-05, %v2754_v37  ;;  %v2755_v20 = vmul.f32 0.03125, %v2717_v23 }
 0x9d5   : > { %v2720_v62 = vpop.xlane.xlu1 %2719 }
 0x9d6   : > { %4671 = vrsqrt.f32 %v2770_v32  ;;  %v2771_v58 = vadd.f32 1e-05, %v2755_v20  ;;  %v2756_v26 = vmul.f32 0.03125, %v2720_v62 }
 0x9d7   : > { %v2723_v13 = vpop.xlane.xlu0 %2722 }
 0x9d8   : > { %4673 = vrsqrt.f32 %v2771_v58  ;;  %v2772_v11 = vadd.f32 1e-05, %v2756_v26  ;;  %v2757_v59 = vmul.f32 0.03125, %v2723_v13 }
 0x9d9   : > { %v2726_v49 = vpop.xlane.xlu1 %2725 }
 0x9da   : > { %v4666_v60 = vpop.eup %4665  ;;  %4675 = vrsqrt.f32 %v2772_v11  ;;  %v2773_v8 = vadd.f32 1e-05, %v2757_v59  ;;  %v2758_v22 = vmul.f32 0.03125, %v2726_v49 }
 0x9db   : > { %v2799_v16 = vmul.f32 %v4666_v60, %v6086_v24 }
 0x9dc   : > { %v4668_v44 = vpop.eup %4667  ;;  %4677 = vrsqrt.f32 %v2773_v8  ;;  %v2774_v15 = vadd.f32 1e-05, %v2758_v22 }
 0x9dd   : > { %v2800_v53 = vmul.f32 %v4668_v44, %v6089_v29  ;;  %v2819_v61 = vmul.f32 %v6189_v55, %v2799_v16 }
 0x9de   : > { %v4670_v25 = vpop.eup %4669  ;;  %4679 = vrsqrt.f32 %v2774_v15 }
 0x9df   : > { %v2801_v21 = vmul.f32 %v4670_v25, %v6094_v40  ;;  %v2820_v63 = vmul.f32 %v6189_v55, %v2800_v53  ;;  %v6203_v14 = vadd.f32 %v6195_v39, %v2819_v61 }
 0x9e0   : > { %v4672_v4 = vpop.eup %4671 }
 0x9e1   : > { %v2821_v43 = vmul.f32 %v6189_v55, %v2801_v21  ;;  %v2802_v24 = vmul.f32 %v4672_v4, %v6100_v3  ;;  %v6206_v29 = vadd.f32 %v6195_v39, %v2820_v63 }
 0x9e2   : > { %v4674_v35 = vpop.eup %4673 }
 0x9e3   : > { %v2822_v46 = vmul.f32 %v6189_v55, %v2802_v24  ;;  %v2803_v54 = vmul.f32 %v4674_v35, %v6106_v47  ;;  %v2855_v40 = vpack.c.bf16 %v6206_v29, %v6203_v14  ;;  %v6213_v33 = vadd.f32 %v6195_v39, %v2821_v43 }
 0x9e4   : > { %v4676_v19 = vpop.eup %4675 }
 0x9e5   : > { %v6216_v3 = vadd.f32 %v6195_v39, %v2822_v46  ;;  %v2804_v36 = vmul.f32 %v4676_v19, %v6112_v52  ;;  %4392 = vmatprep.mubr.msk.bf16.mxu1 %vm1525_vm1, %v2855_v40  ;;  %v2823_v30 = vmul.f32 %v6189_v55, %v2803_v54 }
 0x9e6   : > { %v4678_v51 = vpop.eup %4677 }
 0x9e7   : > { %v2805_v27 = vmul.f32 %v4678_v51, %v6118_v2  ;;  %v2856_v47 = vpack.c.bf16 %v6216_v3, %v6213_v33  ;;  %v2824_v41 = vmul.f32 %v6189_v55, %v2804_v36  ;;  %v6228_v48 = vadd.f32 %v6195_v39, %v2823_v30 }
 0x9e8   : > { %v4680_v45 = vpop.eup %4679 }
 0x9e9   : > { %v2806_v0 = vmul.f32 %v4680_v45, %v6124_v31  ;;  %4393 = vmatmul.mubr.msk.bf16.vlgmr.msra.gmra.mrb[48].mxu1 %vm1525_vm1, %v2856_v47  ;;  %v6231_v52 = vadd.f32 %v6195_v39, %v2824_v41  ;;  %v2825_v6 = vmul.f32 %v6189_v55, %v2805_v27 }
 0x9eb   : > { %v2857_v2 = vpack.c.bf16 %v6231_v52, %v6228_v48  ;;  %v2826_v37 = vmul.f32 %v6189_v55, %v2806_v0  ;;  %v6239_v23 = vadd.f32 %v6195_v39, %v2825_v6 }
 0x9ed   : > { %4396 = vmatprep.mubr.msk.bf16.mxu1 %vm1525_vm1, %v2857_v2  ;;  %v6242_v31 = vadd.f32 %v6195_v39, %v2826_v37 }
 0x9ef   : > { %v2858_v32 = vpack.c.bf16 %v6242_v31, %v6239_v23 }
 0x9f1   : > { %4397 = vmatmul.mubr.msk.bf16.gmra.mrb[52].mxu1 %vm1525_vm1, %v2858_v32 }
 0xa07   : > { %v2729_v20 = vpop.xlane.xlu0 %2728 }
 0xa08   : > { %v2759_v56 = vmul.f32 0.03125, %v2729_v20 }
 0xa09   : > { %v2732_v62 = vpop.xlane.xlu1 %2731 }
 0xa0a   : > { %v2775_v58 = vadd.f32 1e-05, %v2759_v56  ;;  %v2760_v26 = vmul.f32 0.03125, %v2732_v62 }
 0xa0b   : > { %v2735_v13 = vpop.xlane.xlu0 %2734 }
 0xa0c   : > { %4681 = vrsqrt.f32 %v2775_v58  ;;  %v2776_v11 = vadd.f32 1e-05, %v2760_v26  ;;  %v2761_v59 = vmul.f32 0.03125, %v2735_v13 }
 0xa0d   : > { %v2738_v7 = vpop.xlane.xlu1 %2737 }
 0xa0e   : > { %4683 = vrsqrt.f32 %v2776_v11  ;;  %v2777_v49 = vadd.f32 1e-05, %v2761_v59  ;;  %v2762_v60 = vmul.f32 0.03125, %v2738_v7 }
 0xa0f   : > { %v2741_v8 = vpop.xlane.xlu0 %2740 }
 0xa10   : > { %4685 = vrsqrt.f32 %v2777_v49  ;;  %v2778_v22 = vadd.f32 1e-05, %v2762_v60  ;;  %v2763_v16 = vmul.f32 0.03125, %v2741_v8  ;;  %v4535_v8 = vld [vmem:[%s6932_s14] sm:$0xff]  }
 0xa11   : > { %v2744_v44 = vpop.xlane.xlu1 %2743  ;;  %4408 = vmatprep.subr.bf16.mxu0 %v4535_v8 }
 0xa12   : > { %4687 = vrsqrt.f32 %v2778_v22  ;;  %v2779_v15 = vadd.f32 1e-05, %v2763_v16  ;;  %v2764_v53 = vmul.f32 0.03125, %v2744_v44  ;;  %4409 = vmatpush3.bf16.msra.mxu0 %v4535_v8 }
 0xa13   : > { %v2747_v61 = vpop.xlane.xlu0 %2746 }
 0xa14   : > { %4689 = vrsqrt.f32 %v2779_v15  ;;  %v2780_v25 = vadd.f32 1e-05, %v2764_v53  ;;  %v2765_v21 = vmul.f32 0.03125, %v2747_v61 }
 0xa15   : > { %v2750_v63 = vpop.xlane.xlu1 %2749 }
 0xa16   : > { %v4682_v4 = vpop.eup %4681  ;;  %4691 = vrsqrt.f32 %v2780_v25  ;;  %v2781_v43 = vadd.f32 1e-05, %v2765_v21  ;;  %v2766_v24 = vmul.f32 0.03125, %v2750_v63 }
 0xa17   : > { %v2807_v35 = vmul.f32 %v4682_v4, %v6140_v38 }
 0xa18   : > { %v4684_v46 = vpop.eup %4683  ;;  %4693 = vrsqrt.f32 %v2781_v43  ;;  %v2782_v54 = vadd.f32 1e-05, %v2766_v24 }
 0xa19   : > { %v2808_v40 = vmul.f32 %v4684_v46, %v6143_v34  ;;  %v2827_v19 = vmul.f32 %v6189_v55, %v2807_v35 }
 0xa1a   : > { %v4686_v36 = vpop.eup %4685  ;;  %4695 = vrsqrt.f32 %v2782_v54 }
 0xa1b   : > { %v2809_v30 = vmul.f32 %v4686_v36, %v6148_v57  ;;  %v2828_v51 = vmul.f32 %v6189_v55, %v2808_v40  ;;  %v6254_v41 = vadd.f32 %v6195_v39, %v2827_v19 }
 0xa1c   : > { %v4688_v27 = vpop.eup %4687 }
 0xa1d   : > { %v2810_v47 = vmul.f32 %v4688_v27, %v6154_v5  ;;  %v6257_v38 = vadd.f32 %v6195_v39, %v2828_v51  ;;  %v2829_v45 = vmul.f32 %v6189_v55, %v2809_v30 }
 0xa1e   : > { %v4690_v34 = vpop.eup %4689 }
 0xa1f   : > { %v2811_v0 = vmul.f32 %v4690_v34, %v6160_v17  ;;  %v2859_v6 = vpack.c.bf16 %v6257_v38, %v6254_v41  ;;  %v2830_v57 = vmul.f32 %v6189_v55, %v2810_v47  ;;  %v6267_v5 = vadd.f32 %v6195_v39, %v2829_v45 }
 0xa20   : > { %v4692_v2 = vpop.eup %4691 }
 0xa21   : > { %v2812_v37 = vmul.f32 %v4692_v2, %v6166_v42  ;;  %4400 = vmatprep.mubr.msk.bf16.mxu1 %vm1525_vm1, %v2859_v6  ;;  %v6270_v32 = vadd.f32 %v6195_v39, %v2830_v57  ;;  %v2831_v20 = vmul.f32 %v6189_v55, %v2811_v0 }
 0xa22   : > { %v4694_v56 = vpop.eup %4693 }
 0xa23   : > { %v2813_v17 = vmul.f32 %v4694_v56, %v6172_v28  ;;  %v2860_v62 = vpack.c.bf16 %v6270_v32, %v6267_v5  ;;  %v2832_v58 = vmul.f32 %v6189_v55, %v2812_v37  ;;  %v6280_v13 = vadd.f32 %v6195_v39, %v2831_v20 }
 0xa24   : > { %v4696_v26 = vpop.eup %4695 }
 0xa25   : > { %v2814_v42 = vmul.f32 %v4696_v26, %v6178_v12  ;;  %4401 = vmatmul.mubr.msk.bf16.gmra.mrb[56].mxu1 %vm1525_vm1, %v2860_v62  ;;  %v6283_v11 = vadd.f32 %v6195_v39, %v2832_v58  ;;  %v2833_v59 = vmul.f32 %v6189_v55, %v2813_v17 }
 0xa27   : > { %v2861_v28 = vpack.c.bf16 %v6283_v11, %v6280_v13  ;;  %v2834_v7 = vmul.f32 %v6189_v55, %v2814_v42  ;;  %v6291_v49 = vadd.f32 %v6195_v39, %v2833_v59  ;;  %v4536_v55 = vld [vmem:[%s6932_s14 + $0x8] sm:$0xff]  }
 0xa28   : > { %4410 = vmatprep.subr.bf16.mxu0 %v4536_v55 }
 0xa29   : > { %4404 = vmatprep.mubr.msk.bf16.mxu1 %vm1525_vm1, %v2861_v28  ;;  %v6294_v12 = vadd.f32 %v6195_v39, %v2834_v7  ;;  %4411 = vmatpush3.bf16.msra.mxu0 %v4536_v55  ;;  %v6308_v39 = vld [vmem:[%s6931_s13] ss:$0 sm:$0xff] }
 0xa2b   : > { %v2862_v60 = vpack.c.bf16 %v6294_v12, %v6291_v49 }
 0xa2d   : > { %4405 = vmatmul.mubr.msk.bf16.gmra.mrb[60].mxu1 %vm1525_vm1, %v2862_v60 }
 0xabc   : > { %v4394_v22 = vpop.f32.mrb[48].mxu1 }
 0xabd   : > { %v2953_v16 = vadd.f32 %v4394_v22, %v6308_v39  ;;  %v2944_v44 = vpop.f32.mrb[49].mxu1 }
 0xabe   : > { %v2945_v15 = vadd.f32 %v6308_v39, %v2944_v44  ;;  %v4395_v53 = vpop.f32.mrb[50].mxu1 }
 0xabf   : > { %v3025_v61 = vmul.f32 0.70710677, %v2953_v16  ;;  %v2956_v25 = vadd.f32 %v4395_v53, %v6308_v39  ;;  %v2947_v21 = vpop.f32.mrb[51].mxu1  ;;  %v3009_v56 = vmul.f32 0.5, %v2953_v16 }
 0xac0   : > { %v3023_v63 = vmul.f32 0.70710677, %v2945_v15  ;;  %v2948_v4 = vadd.f32 %v6308_v39, %v2947_v21  ;;  %v3007_v58 = vmul.f32 0.5, %v2945_v15 }
 0xac1   : > { %4697 = verf.f32 %v3025_v61  ;;  %v3026_v43 = vmul.f32 0.70710677, %v2956_v25  ;;  %v3010_v17 = vmul.f32 0.5, %v2956_v25 }
 0xac2   : > { %4699 = verf.f32 %v3023_v63  ;;  %v3024_v24 = vmul.f32 0.70710677, %v2948_v4  ;;  %v3008_v26 = vmul.f32 0.5, %v2948_v4 }
 0xac3   : > { %4701 = verf.f32 %v3026_v43 }
 0xac4   : > { %4703 = verf.f32 %v3024_v24  ;;  %v4398_v35 = vpop.f32.mrb[52].mxu1 }
 0xac5   : > { %v2969_v46 = vadd.f32 %v4398_v35, %v6308_v39  ;;  %v2960_v54 = vpop.f32.mrb[53].mxu1 }
 0xac6   : > { %v2961_v40 = vadd.f32 %v6308_v39, %v2960_v54  ;;  %v4399_v19 = vpop.f32.mrb[54].mxu1 }
 0xac7   : > { %v3029_v36 = vmul.f32 0.70710677, %v2969_v46  ;;  %v2972_v30 = vadd.f32 %v4399_v19, %v6308_v39  ;;  %v2963_v51 = vpop.f32.mrb[55].mxu1  ;;  %v3013_v16 = vmul.f32 0.5, %v2969_v46 }
 0xac8   : > { %v3027_v27 = vmul.f32 0.70710677, %v2961_v40  ;;  %v2964_v47 = vadd.f32 %v6308_v39, %v2963_v51  ;;  %v3011_v15 = vmul.f32 0.5, %v2961_v40 }
 0xac9   : > { %4705 = verf.f32 %v3029_v36  ;;  %v3030_v45 = vmul.f32 0.70710677, %v2972_v30  ;;  %v3014_v25 = vmul.f32 0.5, %v2972_v30 }
 0xaca   : > { %4707 = verf.f32 %v3027_v27  ;;  %v3028_v34 = vmul.f32 0.70710677, %v2964_v47  ;;  %v3012_v4 = vmul.f32 0.5, %v2964_v47 }
 0xacb   : > { %v4698_v0 = vpop.eup %4697  ;;  %4709 = verf.f32 %v3030_v45 }
 0xacc   : > { %v4700_v6 = vpop.eup %4699  ;;  %v3057_v57 = vadd.f32 1.0, %v4698_v0  ;;  %4711 = verf.f32 %v3028_v34 }
 0xacd   : > { %v4702_v2 = vpop.eup %4701  ;;  %v3055_v37 = vadd.f32 1.0, %v4700_v6 }
 0xace   : > { %v4704_v20 = vpop.eup %4703  ;;  %v3058_v62 = vadd.f32 1.0, %v4702_v2  ;;  %v3073_v59 = vmul.f32 %v3057_v57, %v3009_v56 }
 0xacf   : > { %v3056_v42 = vadd.f32 1.0, %v4704_v20  ;;  %v3071_v7 = vmul.f32 %v3055_v37, %v3007_v58 }
 0xad0   : > { %v3074_v28 = vmul.f32 %v3058_v62, %v3010_v17 }
 0xad1   : > { %v3072_v60 = vmul.f32 %v3056_v42, %v3008_v26 }
 0xad2   : > { %v3088_v8 = vpack.c.bf16 %v3074_v28, %v3073_v59 }
 0xad3   : > { %v4706_v55 = vpop.eup %4705  ;;  %v3087_v22 = vpack.c.bf16 %v3072_v60, %v3071_v7 }
 0xad4   : > { %v4708_v44 = vpop.eup %4707  ;;  %v3061_v53 = vadd.f32 1.0, %v4706_v55 }
 0xad5   : > { %v4710_v61 = vpop.eup %4709  ;;  %v3059_v21 = vadd.f32 1.0, %v4708_v44  ;;  %4412 = vmatprep.mubr.msk.bf16.mxu0 %vm1525_vm1, %v3087_v22 }
 0xad6   : > { %v4712_v63 = vpop.eup %4711  ;;  %v3062_v43 = vadd.f32 1.0, %v4710_v61  ;;  %4413 = vmatmul.mubr.msk.bf16.vlgmr.msra.gmra.mrb[64].mxu0 %vm1525_vm1, %v3088_v8  ;;  %v3077_v35 = vmul.f32 %v3061_v53, %v3013_v16 }
 0xad7   : > { %v3060_v24 = vadd.f32 1.0, %v4712_v63  ;;  %v3075_v19 = vmul.f32 %v3059_v21, %v3011_v15 }
 0xad8   : > { %v3078_v54 = vmul.f32 %v3062_v43, %v3014_v25 }
 0xad9   : > { %v3076_v36 = vmul.f32 %v3060_v24, %v3012_v4 }
 0xada   : > { %v3090_v51 = vpack.c.bf16 %v3078_v54, %v3077_v35 }
 0xadb   : > { %v3089_v27 = vpack.c.bf16 %v3076_v36, %v3075_v19 }
 0xadd   : > { %4416 = vmatprep.mubr.msk.bf16.mxu0 %vm1525_vm1, %v3089_v27 }
 0xade   : > { %4417 = vmatmul.mubr.msk.bf16.gmra.mrb[68].mxu0 %vm1525_vm1, %v3090_v51 }
 0xaf8   : > { %v4402_v45 = vpop.f32.mrb[56].mxu1 }
 0xaf9   : > { %v2985_v46 = vadd.f32 %v4402_v45, %v6308_v39  ;;  %v2976_v30 = vpop.f32.mrb[57].mxu1 }
 0xafa   : > { %v2977_v34 = vadd.f32 %v6308_v39, %v2976_v30  ;;  %v4403_v0 = vpop.f32.mrb[58].mxu1 }
 0xafb   : > { %v3033_v40 = vmul.f32 0.70710677, %v2985_v46  ;;  %v2988_v47 = vadd.f32 %v4403_v0, %v6308_v39  ;;  %v2979_v6 = vpop.f32.mrb[59].mxu1  ;;  %v3017_v16 = vmul.f32 0.5, %v2985_v46 }
 0xafc   : > { %v3031_v57 = vmul.f32 0.70710677, %v2977_v34  ;;  %v2980_v2 = vadd.f32 %v6308_v39, %v2979_v6  ;;  %v3015_v15 = vmul.f32 0.5, %v2977_v34 }
 0xafd   : > { %4713 = verf.f32 %v3033_v40  ;;  %v3034_v37 = vmul.f32 0.70710677, %v2988_v47  ;;  %v3018_v25 = vmul.f32 0.5, %v2988_v47 }
 0xafe   : > { %4715 = verf.f32 %v3031_v57  ;;  %v3032_v20 = vmul.f32 0.70710677, %v2980_v2  ;;  %v3016_v4 = vmul.f32 0.5, %v2980_v2 }
 0xaff   : > { %4717 = verf.f32 %v3034_v37 }
 0xb00   : > { %4719 = verf.f32 %v3032_v20  ;;  %v4406_v56 = vpop.f32.mrb[60].mxu1 }
 0xb01   : > { %v3001_v17 = vadd.f32 %v4406_v56, %v6308_v39  ;;  %v2992_v62 = vpop.f32.mrb[61].mxu1 }
 0xb02   : > { %v2993_v58 = vadd.f32 %v6308_v39, %v2992_v62  ;;  %v4407_v26 = vpop.f32.mrb[62].mxu1 }
 0xb03   : > { %v3037_v42 = vmul.f32 0.70710677, %v3001_v17  ;;  %v3004_v59 = vadd.f32 %v4407_v26, %v6308_v39  ;;  %v2995_v28 = vpop.f32.mrb[63].mxu1  ;;  %v3021_v46 = vmul.f32 0.5, %v3001_v17 }
 0xb04   : > { %v3035_v7 = vmul.f32 0.70710677, %v2993_v58  ;;  %v2996_v60 = vadd.f32 %v6308_v39, %v2995_v28  ;;  %v3019_v34 = vmul.f32 0.5, %v2993_v58 }
 0xb05   : > { %4721 = verf.f32 %v3037_v42  ;;  %v3038_v8 = vmul.f32 0.70710677, %v3004_v59  ;;  %v3022_v47 = vmul.f32 0.5, %v3004_v59 }
 0xb06   : > { %4723 = verf.f32 %v3035_v7  ;;  %v3036_v55 = vmul.f32 0.70710677, %v2996_v60  ;;  %v3020_v2 = vmul.f32 0.5, %v2996_v60  ;;  %v3101_v7 = vsub.s32 6, %v5059_v1 }
 0xb07   : > { %v4714_v22 = vpop.eup %4713  ;;  %4725 = verf.f32 %v3038_v8 }
 0xb08   : > { %v4716_v44 = vpop.eup %4715  ;;  %v3065_v53 = vadd.f32 1.0, %v4714_v22  ;;  %4727 = verf.f32 %v3036_v55  ;;  %v6336_v17 = vrot.slane %v5984_v18, %v3101_v7 }
 0xb09   : > { %v4718_v61 = vpop.eup %4717  ;;  %v3063_v21 = vadd.f32 1.0, %v4716_v44 }
 0xb0a   : > { %v4720_v63 = vpop.eup %4719  ;;  %v3066_v43 = vadd.f32 1.0, %v4718_v61  ;;  %v3081_v35 = vmul.f32 %v3065_v53, %v3017_v16 }
 0xb0b   : > { %v3064_v24 = vadd.f32 1.0, %v4720_v63  ;;  %v3079_v54 = vmul.f32 %v3063_v21, %v3015_v15 }
 0xb0c   : > { %v3082_v39 = vmul.f32 %v3066_v43, %v3018_v25 }
 0xb0d   : > { %v3080_v19 = vmul.f32 %v3064_v24, %v3016_v4 }
 0xb0e   : > { %v3092_v36 = vpack.c.bf16 %v3082_v39, %v3081_v35 }
 0xb0f   : > { %v4722_v51 = vpop.eup %4721  ;;  %v3091_v27 = vpack.c.bf16 %v3080_v19, %v3079_v54 }
 0xb10   : > { %v4724_v45 = vpop.eup %4723  ;;  %v3069_v30 = vadd.f32 1.0, %v4722_v51 }
 0xb11   : > { %v4726_v0 = vpop.eup %4725  ;;  %v3067_v40 = vadd.f32 1.0, %v4724_v45  ;;  %4420 = vmatprep.mubr.msk.bf16.mxu0 %vm1525_vm1, %v3091_v27 }
 0xb12   : > { %v4728_v6 = vpop.eup %4727  ;;  %v3070_v57 = vadd.f32 1.0, %v4726_v0  ;;  %4421 = vmatmul.mubr.msk.bf16.gmra.mrb[72].mxu0 %vm1525_vm1, %v3092_v36  ;;  %v3085_v20 = vmul.f32 %v3069_v30, %v3021_v46 }
 0xb13   : > { %v3068_v37 = vadd.f32 1.0, %v4728_v6  ;;  %v3083_v62 = vmul.f32 %v3067_v40, %v3019_v34 }
 0xb14   : > { %v3086_v56 = vmul.f32 %v3070_v57, %v3022_v47 }
 0xb15   : > { %v3084_v26 = vmul.f32 %v3068_v37, %v3020_v2 }
 0xb16   : > { %v3094_v42 = vpack.c.bf16 %v3086_v56, %v3085_v20 }
 0xb17   : > { %v3093_v28 = vpack.c.bf16 %v3084_v26, %v3083_v62 }
 0xb19   : > { %4424 = vmatprep.mubr.msk.bf16.mxu0 %vm1525_vm1, %v3093_v28 }
 0xb1a   : > { %4425 = vmatmul.mubr.msk.bf16.gmra.mrb[76].mxu0 %vm1525_vm1, %v3094_v42 }
 0xba9   : > { %v4414_v59 = vpop.f32.mrb[64].mxu0 }
 0xbaa   : > { %v3173_v8 = vpop.f32.mrb[65].mxu0  ;;  %v3182_v58 = vadd.f32 %v4414_v59, %v6336_v17 }
 0xbab   : > { %v3174_v60 = vadd.f32 %v3173_v8, %v6336_v17  ;;  %v4415_v55 = vpop.f32.mrb[66].mxu0 }
 0xbac   : > { %v3176_v22 = vpop.f32.mrb[67].mxu0  ;;  %v3185_v53 = vadd.f32 %v4415_v55, %v6336_v17  ;;  %v6346_v21 = vadd.f32 %v3182_v58, %v6213_v33 }
 0xbad   : > { %v6341_v44 = vadd.f32 %v3174_v60, %v6203_v14  ;;  %v3177_v61 = vadd.f32 %v3176_v22, %v6336_v17 }
 0xbae   : > { %v6354_v16 = vadd.f32 %v3185_v53, %v6216_v3 }
 0xbaf   : > { %v6349_v18 = vadd.f32 %v3177_v61, %v6206_v29  ;;  %v3252_v63 = vsel %vm1525_vm1, %v6341_v44, 0.0  ;;  %v3258_v29 = vsel %vm1525_vm1, %v6346_v21, 0.0 }
 0xbb0   : > { %3253 = vadd.xlane.f32.xlu0 %v3252_v63  ;;  %v3261_v54 = vsel %vm1525_vm1, %v6354_v16, 0.0 }
 0xbb1   : > { %v4418_v25 = vpop.f32.mrb[68].mxu0  ;;  %v3255_v14 = vsel %vm1525_vm1, %v6349_v18, 0.0 }
 0xbb2   : > { %3256 = vadd.xlane.f32.xlu1 %v3255_v14  ;;  %v3189_v43 = vpop.f32.mrb[69].mxu0  ;;  %v3198_v15 = vadd.f32 %v4418_v25, %v6336_v17 }
 0xbb3   : > { %v3190_v33 = vadd.f32 %v3189_v43, %v6336_v17  ;;  %v4419_v4 = vpop.f32.mrb[70].mxu0 }
 0xbb4   : > { %3259 = vadd.xlane.f32.xlu0 %v3258_v29  ;;  %v3192_v24 = vpop.f32.mrb[71].mxu0  ;;  %v3201_v3 = vadd.f32 %v4419_v4, %v6336_v17  ;;  %v6370_v19 = vadd.f32 %v3198_v15, %v6239_v23 }
 0xbb5   : > { %v6363_v35 = vadd.f32 %v3190_v33, %v6228_v48  ;;  %v3193_v39 = vadd.f32 %v3192_v24, %v6336_v17 }
 0xbb6   : > { %3262 = vadd.xlane.f32.xlu1 %v3261_v54  ;;  %v6378_v48 = vadd.f32 %v3201_v3, %v6242_v31  ;;  %v3270_v45 = vsel %vm1525_vm1, %v6370_v19, 0.0 }
 0xbb7   : > { %v6373_v36 = vadd.f32 %v3193_v39, %v6231_v52  ;;  %v3264_v51 = vsel %vm1525_vm1, %v6363_v35, 0.0 }
 0xbb8   : > { %3265 = vadd.xlane.f32.xlu0 %v3264_v51  ;;  %v3273_v23 = vsel %vm1525_vm1, %v6378_v48, 0.0 }
 0xbb9   : > { %v3267_v27 = vsel %vm1525_vm1, %v6373_v36, 0.0 }
 0xbba   : > { %3268 = vadd.xlane.f32.xlu1 %v3267_v27 }
 0xbbc   : > { %3271 = vadd.xlane.f32.xlu0 %v3270_v45 }
 0xbbe   : > { %3274 = vadd.xlane.f32.xlu1 %v3273_v23 }
 0xbe5   : > { %v4422_v52 = vpop.f32.mrb[72].mxu0 }
 0xbe6   : > { %v3205_v30 = vpop.f32.mrb[73].mxu0  ;;  %v3214_v0 = vadd.f32 %v4422_v52, %v6336_v17 }
 0xbe7   : > { %v3206_v40 = vadd.f32 %v3205_v30, %v6336_v17  ;;  %v4423_v31 = vpop.f32.mrb[74].mxu0 }
 0xbe8   : > { %v3208_v6 = vpop.f32.mrb[75].mxu0  ;;  %v3217_v47 = vadd.f32 %v4423_v31, %v6336_v17  ;;  %v6394_v34 = vadd.f32 %v3214_v0, %v6267_v5 }
 0xbe9   : > { %v6389_v46 = vadd.f32 %v3206_v40, %v6254_v41  ;;  %v3209_v57 = vadd.f32 %v3208_v6, %v6336_v17 }
 0xbea   : > { %v6402_v20 = vadd.f32 %v3217_v47, %v6270_v32 }
 0xbeb   : > { %v6397_v2 = vadd.f32 %v3209_v57, %v6257_v38  ;;  %v3276_v37 = vsel %vm1525_vm1, %v6389_v46, 0.0  ;;  %v3282_v38 = vsel %vm1525_vm1, %v6394_v34, 0.0 }
 0xbec   : > { %3277 = vadd.xlane.f32.xlu0 %v3276_v37  ;;  %v3285_v8 = vsel %vm1525_vm1, %v6402_v20, 0.0 }
 0xbed   : > { %v4426_v56 = vpop.f32.mrb[76].mxu0  ;;  %v3279_v41 = vsel %vm1525_vm1, %v6397_v2, 0.0 }
 0xbee   : > { %3280 = vadd.xlane.f32.xlu1 %v3279_v41  ;;  %v3221_v62 = vpop.f32.mrb[77].mxu0  ;;  %v3230_v26 = vadd.f32 %v4426_v56, %v6336_v17 }
 0xbef   : > { %v3222_v5 = vadd.f32 %v3221_v62, %v6336_v17  ;;  %v4427_v42 = vpop.f32.mrb[78].mxu0 }
 0xbf0   : > { %3283 = vadd.xlane.f32.xlu0 %v3282_v38  ;;  %v3224_v28 = vpop.f32.mrb[79].mxu0  ;;  %v3233_v32 = vadd.f32 %v4427_v42, %v6336_v17  ;;  %v6418_v58 = vadd.f32 %v3230_v26, %v6291_v49 }
 0xbf1   : > { %v6411_v7 = vadd.f32 %v3222_v5, %v6280_v13  ;;  %v3225_v59 = vadd.f32 %v3224_v28, %v6336_v17 }
 0xbf2   : > { %3286 = vadd.xlane.f32.xlu1 %v3285_v8  ;;  %v6426_v13 = vadd.f32 %v3233_v32, %v6294_v12  ;;  %v3294_v22 = vsel %vm1525_vm1, %v6418_v58, 0.0 }
 0xbf3   : > { %v6421_v60 = vadd.f32 %v3225_v59, %v6283_v11  ;;  %v3288_v55 = vsel %vm1525_vm1, %v6411_v7, 0.0 }
 0xbf4   : > { %3289 = vadd.xlane.f32.xlu0 %v3288_v55  ;;  %v3297_v49 = vsel %vm1525_vm1, %v6426_v13, 0.0 }
 0xbf5   : > { %v3291_v17 = vsel %vm1525_vm1, %v6421_v60, 0.0 }
 0xbf6   : > { %3292 = vadd.xlane.f32.xlu1 %v3291_v17 }
 0xbf8   : > { %3295 = vadd.xlane.f32.xlu0 %v3294_v22 }
 0xbfa   : > { %3298 = vadd.xlane.f32.xlu1 %v3297_v49 }
 0xc3d   : > { %v3254_v11 = vpop.xlane.xlu0 %3253 }
 0xc3e   : > { %v3300_v53 = vmul.f32 0.03125, %v3254_v11 }
 0xc3f   : > { %v3257_v61 = vpop.xlane.xlu1 %3256 }
 0xc40   : > { %v6435_v63 = vsub.f32 %v6341_v44, %v3300_v53  ;;  %v3301_v12 = vmul.f32 0.03125, %v3257_v61 }
 0xc41   : > { %v3260_v25 = vpop.xlane.xlu0 %3259 }
 0xc42   : > { %v6438_v14 = vsub.f32 %v6349_v18, %v3301_v12  ;;  %v3302_v43 = vmul.f32 0.03125, %v3260_v25  ;;  %v3332_v15 = vmul.f32 %v6435_v63, %v6435_v63 }
 0xc43   : > { %v3263_v33 = vpop.xlane.xlu1 %3262 }
 0xc44   : > { %v6443_v4 = vsub.f32 %v6346_v21, %v3302_v43  ;;  %v3303_v29 = vmul.f32 0.03125, %v3263_v33  ;;  %v3348_v24 = vsel %vm1525_vm1, %v3332_v15, 0.0  ;;  %v3333_v44 = vmul.f32 %v6438_v14, %v6438_v14 }
 0xc45   : > { %3349 = vadd.xlane.f32.xlu0 %v3348_v24  ;;  %v3266_v3 = vpop.xlane.xlu0 %3265 }
 0xc46   : > { %v6449_v39 = vsub.f32 %v6354_v16, %v3303_v29  ;;  %v3304_v18 = vmul.f32 0.03125, %v3266_v3  ;;  %v3351_v54 = vsel %vm1525_vm1, %v3333_v44, 0.0  ;;  %v3334_v51 = vmul.f32 %v6443_v4, %v6443_v4 }
 0xc47   : > { %v3269_v27 = vpop.xlane.xlu1 %3268  ;;  %3352 = vadd.xlane.f32.xlu1 %v3351_v54 }
 0xc48   : > { %v6455_v21 = vsub.f32 %v6363_v35, %v3304_v18  ;;  %v3305_v45 = vmul.f32 0.03125, %v3269_v27  ;;  %v3354_v23 = vsel %vm1525_vm1, %v3334_v51, 0.0  ;;  %v3335_v52 = vmul.f32 %v6449_v39, %v6449_v39 }
 0xc49   : > { %3355 = vadd.xlane.f32.xlu0 %v3354_v23  ;;  %v3272_v16 = vpop.xlane.xlu0 %3271 }
 0xc4a   : > { %v6461_v30 = vsub.f32 %v6373_v36, %v3305_v45  ;;  %v3306_v0 = vmul.f32 0.03125, %v3272_v16  ;;  %v3357_v40 = vsel %vm1525_vm1, %v3335_v52, 0.0  ;;  %v3336_v31 = vmul.f32 %v6455_v21, %v6455_v21 }
 0xc4b   : > { %v3275_v6 = vpop.xlane.xlu1 %3274  ;;  %3358 = vadd.xlane.f32.xlu1 %v3357_v40 }
 0xc4c   : > { %v6467_v35 = vsub.f32 %v6370_v19, %v3306_v0  ;;  %v3307_v47 = vmul.f32 0.03125, %v3275_v6  ;;  %v3360_v57 = vsel %vm1525_vm1, %v3336_v31, 0.0  ;;  %v3337_v37 = vmul.f32 %v6461_v30, %v6461_v30 }
 0xc4d   : > { %3361 = vadd.xlane.f32.xlu0 %v3360_v57 }
 0xc4e   : > { %v6473_v36 = vsub.f32 %v6378_v48, %v3307_v47  ;;  %v3363_v56 = vsel %vm1525_vm1, %v3337_v37, 0.0  ;;  %v3338_v41 = vmul.f32 %v6467_v35, %v6467_v35 }
 0xc4f   : > { %3364 = vadd.xlane.f32.xlu1 %v3363_v56 }
 0xc50   : > { %v3366_v62 = vsel %vm1525_vm1, %v3338_v41, 0.0  ;;  %v3339_v19 = vmul.f32 %v6473_v36, %v6473_v36 }
 0xc51   : > { %3367 = vadd.xlane.f32.xlu0 %v3366_v62 }
 0xc52   : > { %v3369_v26 = vsel %vm1525_vm1, %v3339_v19, 0.0 }
 0xc53   : > { %3370 = vadd.xlane.f32.xlu1 %v3369_v26 }
 0xc79   : > { %v3278_v5 = vpop.xlane.xlu0 %3277 }
 0xc7a   : > { %v3308_v42 = vmul.f32 0.03125, %v3278_v5 }
 0xc7b   : > { %v3281_v38 = vpop.xlane.xlu1 %3280 }
 0xc7c   : > { %v6483_v48 = vsub.f32 %v6389_v46, %v3308_v42  ;;  %v3309_v28 = vmul.f32 0.03125, %v3281_v38 }
 0xc7d   : > { %v3284_v32 = vpop.xlane.xlu0 %3283 }
 0xc7e   : > { %v6486_v59 = vsub.f32 %v6397_v2, %v3309_v28  ;;  %v3310_v8 = vmul.f32 0.03125, %v3284_v32  ;;  %v3340_v55 = vmul.f32 %v6483_v48, %v6483_v48  ;;  %v3462_v28 = vsub.s32 7, %v5059_v1 }
 0xc7f   : > { %v3287_v17 = vpop.xlane.xlu1 %3286 }
 0xc80   : > { %v6491_v22 = vsub.f32 %v6394_v34, %v3310_v8  ;;  %v3311_v49 = vmul.f32 0.03125, %v3287_v17  ;;  %v3372_v11 = vsel %vm1525_vm1, %v3340_v55, 0.0  ;;  %v3341_v46 = vmul.f32 %v6486_v59, %v6486_v59 }
 0xc81   : > { %3373 = vadd.xlane.f32.xlu0 %v3372_v11  ;;  %v3290_v53 = vpop.xlane.xlu0 %3289 }
 0xc82   : > { %v6497_v61 = vsub.f32 %v6402_v20, %v3311_v49  ;;  %v3312_v2 = vmul.f32 0.03125, %v3290_v53  ;;  %v3375_v12 = vsel %vm1525_vm1, %v3341_v46, 0.0  ;;  %v3342_v25 = vmul.f32 %v6491_v22, %v6491_v22  ;;  %v4794_v46 = vld [vmem:[%s6933_s15] sm:$0xff] }
 0xc83   : > { %3376 = vadd.xlane.f32.xlu1 %v3375_v12  ;;  %v3293_v34 = vpop.xlane.xlu1 %3292  ;;  %v6534_v53 = vrot.slane %v4794_v46, %v3462_v28 }
 0xc84   : > { %v6503_v43 = vsub.f32 %v6411_v7, %v3312_v2  ;;  %v3313_v15 = vmul.f32 0.03125, %v3293_v34  ;;  %v3378_v33 = vsel %vm1525_vm1, %v3342_v25, 0.0  ;;  %v3343_v29 = vmul.f32 %v6497_v61, %v6497_v61  ;;  %v4795_v34 = vld [vmem:[%s6933_s15 + $0x8] sm:$0x7] }
 0xc85   : > { %3379 = vadd.xlane.f32.xlu0 %v3378_v33  ;;  %v3296_v20 = vpop.xlane.xlu0 %3295 }
 0xc86   : > { %v6509_v24 = vsub.f32 %v6421_v60, %v3313_v15  ;;  %v3314_v44 = vmul.f32 0.03125, %v3296_v20  ;;  %v3381_v3 = vsel %vm1525_vm1, %v3343_v29, 0.0  ;;  %v3344_v18 = vmul.f32 %v6503_v43, %v6503_v43 }
 0xc87   : > { %3382 = vadd.xlane.f32.xlu1 %v3381_v3  ;;  %v3299_v7 = vpop.xlane.xlu1 %3298  ;;  %v6540_v15 = vrot.slane %v4795_v34, %v5454_v50 }
 0xc88   : > { %v6515_v54 = vsub.f32 %v6418_v58, %v3314_v44  ;;  %v3315_v51 = vmul.f32 0.03125, %v3299_v7  ;;  %v3384_v27 = vsel %vm1525_vm1, %v3344_v18, 0.0  ;;  %v3345_v45 = vmul.f32 %v6509_v24, %v6509_v24 }
 0xc89   : > { %3385 = vadd.xlane.f32.xlu0 %v3384_v27 }
 0xc8a   : > { %v6521_v60 = vsub.f32 %v6426_v13, %v3315_v51  ;;  %v3387_v23 = vsel %vm1525_vm1, %v3345_v45, 0.0  ;;  %v3346_v52 = vmul.f32 %v6515_v54, %v6515_v54 }
 0xc8b   : > { %3388 = vadd.xlane.f32.xlu1 %v3387_v23 }
 0xc8c   : > { %v3390_v16 = vsel %vm1525_vm1, %v3346_v52, 0.0  ;;  %v3347_v58 = vmul.f32 %v6521_v60, %v6521_v60 }
 0xc8d   : > { %3391 = vadd.xlane.f32.xlu0 %v3390_v16 }
 0xc8e   : > { %v3393_v0 = vsel %vm1525_vm1, %v3347_v58, 0.0 }
 0xc8f   : > { %3394 = vadd.xlane.f32.xlu1 %v3393_v0 }
 0xcd2   : > { %v3350_v40 = vpop.xlane.xlu0 %3349 }
 0xcd3   : > { %v3396_v31 = vmul.f32 0.03125, %v3350_v40 }
 0xcd4   : > { %v3353_v6 = vpop.xlane.xlu1 %3352 }
 0xcd5   : > { %v3412_v13 = vadd.f32 1e-05, %v3396_v31  ;;  %v3397_v47 = vmul.f32 0.03125, %v3353_v6 }
 0xcd6   : > { %v3356_v57 = vpop.xlane.xlu0 %3355 }
 0xcd7   : > { %4729 = vrsqrt.f32 %v3412_v13  ;;  %v3413_v37 = vadd.f32 1e-05, %v3397_v47  ;;  %v3398_v56 = vmul.f32 0.03125, %v3356_v57 }
 0xcd8   : > { %v3359_v41 = vpop.xlane.xlu1 %3358 }
 0xcd9   : > { %4731 = vrsqrt.f32 %v3413_v37  ;;  %v3414_v62 = vadd.f32 1e-05, %v3398_v56  ;;  %v3399_v19 = vmul.f32 0.03125, %v3359_v41 }
 0xcda   : > { %v3362_v26 = vpop.xlane.xlu0 %3361 }
 0xcdb   : > { %4733 = vrsqrt.f32 %v3414_v62  ;;  %v3415_v5 = vadd.f32 1e-05, %v3399_v19  ;;  %v3400_v42 = vmul.f32 0.03125, %v3362_v26 }
 0xcdc   : > { %v3365_v38 = vpop.xlane.xlu1 %3364 }
 0xcdd   : > { %4735 = vrsqrt.f32 %v3415_v5  ;;  %v3416_v32 = vadd.f32 1e-05, %v3400_v42  ;;  %v3401_v8 = vmul.f32 0.03125, %v3365_v38 }
 0xcde   : > { %v3368_v55 = vpop.xlane.xlu0 %3367 }
 0xcdf   : > { %4737 = vrsqrt.f32 %v3416_v32  ;;  %v3417_v17 = vadd.f32 1e-05, %v3401_v8  ;;  %v3402_v49 = vmul.f32 0.03125, %v3368_v55 }
 0xce0   : > { %v3371_v11 = vpop.xlane.xlu1 %3370 }
 0xce1   : > { %v4730_v2 = vpop.eup %4729  ;;  %4739 = vrsqrt.f32 %v3417_v17  ;;  %v3418_v12 = vadd.f32 1e-05, %v3402_v49  ;;  %v3403_v25 = vmul.f32 0.03125, %v3371_v11 }
 0xce2   : > { %v3444_v33 = vmul.f32 %v4730_v2, %v6435_v63 }
 0xce3   : > { %v4732_v29 = vpop.eup %4731  ;;  %4741 = vrsqrt.f32 %v3418_v12  ;;  %v3419_v20 = vadd.f32 1e-05, %v3403_v25 }
 0xce4   : > { %v3464_v44 = vmul.f32 %v6534_v53, %v3444_v33  ;;  %v3445_v3 = vmul.f32 %v4732_v29, %v6438_v14 }
 0xce5   : > { %v4734_v18 = vpop.eup %4733  ;;  %4743 = vrsqrt.f32 %v3419_v20 }
 0xce6   : > { %v6546_v7 = vadd.f32 %v6540_v15, %v3464_v44  ;;  %v3465_v51 = vmul.f32 %v6534_v53, %v3445_v3  ;;  %v3446_v27 = vmul.f32 %v4734_v18, %v6443_v4 }
 0xce7   : > { %v4736_v50 = vpop.eup %4735 }
 0xce8   : > { %v3500_v63 = vsel %vm1525_vm1, %v6546_v7, 0.0  ;;  %v6553_v45 = vadd.f32 %v6540_v15, %v3465_v51  ;;  %v3466_v23 = vmul.f32 %v6534_v53, %v3446_v27  ;;  %v3447_v14 = vmul.f32 %v4736_v50, %v6449_v39 }
 0xce9   : > { %v4738_v52 = vpop.eup %4737  ;;  %3501 = vadd.xlane.f32.xlu0 %v3500_v63 }
 0xcea   : > { %v3503_v16 = vsel %vm1525_vm1, %v6553_v45, 0.0  ;;  %v6560_v58 = vadd.f32 %v6540_v15, %v3466_v23  ;;  %v3467_v4 = vmul.f32 %v6534_v53, %v3447_v14  ;;  %v3448_v0 = vmul.f32 %v4738_v52, %v6455_v21 }
 0xceb   : > { %v4740_v40 = vpop.eup %4739  ;;  %3504 = vadd.xlane.f32.xlu1 %v3503_v16 }
 0xcec   : > { %v3506_v31 = vsel %vm1525_vm1, %v6560_v58, 0.0  ;;  %v6567_v6 = vadd.f32 %v6540_v15, %v3467_v4  ;;  %v3468_v39 = vmul.f32 %v6534_v53, %v3448_v0  ;;  %v3449_v13 = vmul.f32 %v4740_v40, %v6461_v30 }
 0xced   : > { %v4742_v47 = vpop.eup %4741  ;;  %3507 = vadd.xlane.f32.xlu0 %v3506_v31 }
 0xcee   : > { %v3509_v57 = vsel %vm1525_vm1, %v6567_v6, 0.0  ;;  %v6574_v37 = vadd.f32 %v6540_v15, %v3468_v39  ;;  %v3469_v21 = vmul.f32 %v6534_v53, %v3449_v13  ;;  %v3450_v56 = vmul.f32 %v4742_v47, %v6467_v35 }
 0xcef   : > { %v4744_v41 = vpop.eup %4743  ;;  %3510 = vadd.xlane.f32.xlu1 %v3509_v57 }
 0xcf0   : > { %v3512_v62 = vsel %vm1525_vm1, %v6574_v37, 0.0  ;;  %v6581_v19 = vadd.f32 %v6540_v15, %v3469_v21  ;;  %v3470_v30 = vmul.f32 %v6534_v53, %v3450_v56  ;;  %v3451_v26 = vmul.f32 %v4744_v41, %v6473_v36 }
 0xcf1   : > { %3513 = vadd.xlane.f32.xlu0 %v3512_v62 }
 0xcf2   : > { %v3515_v5 = vsel %vm1525_vm1, %v6581_v19, 0.0  ;;  %v6588_v42 = vadd.f32 %v6540_v15, %v3470_v30  ;;  %v3471_v35 = vmul.f32 %v6534_v53, %v3451_v26 }
 0xcf3   : > { %3516 = vadd.xlane.f32.xlu1 %v3515_v5 }
 0xcf4   : > { %v3518_v38 = vsel %vm1525_vm1, %v6588_v42, 0.0  ;;  %v6594_v28 = vadd.f32 %v6540_v15, %v3471_v35 }
 0xcf5   : > { %3519 = vadd.xlane.f32.xlu0 %v3518_v38 }
 0xcf6   : > { %v3521_v36 = vsel %vm1525_vm1, %v6594_v28, 0.0 }
 0xcf7   : > { %3522 = vadd.xlane.f32.xlu1 %v3521_v36 }
 0xd0e   : > { %v3374_v32 = vpop.xlane.xlu0 %3373 }
 0xd0f   : > { %v3404_v8 = vmul.f32 0.03125, %v3374_v32 }
 0xd10   : > { %v3377_v55 = vpop.xlane.xlu1 %3376 }
 0xd11   : > { %v3420_v17 = vadd.f32 1e-05, %v3404_v8  ;;  %v3405_v49 = vmul.f32 0.03125, %v3377_v55 }
 0xd12   : > { %v3380_v11 = vpop.xlane.xlu0 %3379 }
 0xd13   : > { %4745 = vrsqrt.f32 %v3420_v17  ;;  %v3421_v46 = vadd.f32 1e-05, %v3405_v49  ;;  %v3406_v2 = vmul.f32 0.03125, %v3380_v11 }
 0xd14   : > { %v3383_v12 = vpop.xlane.xlu1 %3382 }
 0xd15   : > { %4747 = vrsqrt.f32 %v3421_v46  ;;  %v3422_v25 = vadd.f32 1e-05, %v3406_v2  ;;  %v3407_v34 = vmul.f32 0.03125, %v3383_v12 }
 0xd16   : > { %v3386_v33 = vpop.xlane.xlu0 %3385 }
 0xd17   : > { %4749 = vrsqrt.f32 %v3422_v25  ;;  %v3423_v29 = vadd.f32 1e-05, %v3407_v34  ;;  %v3408_v20 = vmul.f32 0.03125, %v3386_v33 }
 0xd18   : > { %v3389_v44 = vpop.xlane.xlu1 %3388 }
 0xd19   : > { %4751 = vrsqrt.f32 %v3423_v29  ;;  %v3424_v3 = vadd.f32 1e-05, %v3408_v20  ;;  %v3409_v18 = vmul.f32 0.03125, %v3389_v44 }
 0xd1a   : > { %v3392_v51 = vpop.xlane.xlu0 %3391 }
 0xd1b   : > { %4753 = vrsqrt.f32 %v3424_v3  ;;  %v3425_v27 = vadd.f32 1e-05, %v3409_v18  ;;  %v3410_v50 = vmul.f32 0.03125, %v3392_v51 }
 0xd1c   : > { %v3395_v63 = vpop.xlane.xlu1 %3394 }
 0xd1d   : > { %v4746_v23 = vpop.eup %4745  ;;  %4755 = vrsqrt.f32 %v3425_v27  ;;  %v3426_v14 = vadd.f32 1e-05, %v3410_v50  ;;  %v3411_v52 = vmul.f32 0.03125, %v3395_v63 }
 0xd1e   : > { %v3452_v16 = vmul.f32 %v4746_v23, %v6483_v48 }
 0xd1f   : > { %v4748_v4 = vpop.eup %4747  ;;  %4757 = vrsqrt.f32 %v3426_v14  ;;  %v3427_v0 = vadd.f32 1e-05, %v3411_v52 }
 0xd20   : > { %v3472_v40 = vmul.f32 %v6534_v53, %v3452_v16  ;;  %v3453_v31 = vmul.f32 %v4748_v4, %v6486_v59 }
 0xd21   : > { %v4750_v39 = vpop.eup %4749  ;;  %4759 = vrsqrt.f32 %v3427_v0 }
 0xd22   : > { %v6602_v13 = vadd.f32 %v6540_v15, %v3472_v40  ;;  %v3473_v47 = vmul.f32 %v6534_v53, %v3453_v31  ;;  %v3454_v57 = vmul.f32 %v4750_v39, %v6491_v22 }
 0xd23   : > { %v4752_v21 = vpop.eup %4751 }
 0xd24   : > { %v3524_v48 = vsel %vm1525_vm1, %v6602_v13, 0.0  ;;  %v6609_v56 = vadd.f32 %v6540_v15, %v3473_v47  ;;  %v3474_v41 = vmul.f32 %v6534_v53, %v3454_v57  ;;  %v3455_v59 = vmul.f32 %v4752_v21, %v6497_v61 }
 0xd25   : > { %v4754_v62 = vpop.eup %4753  ;;  %3525 = vadd.xlane.f32.xlu0 %v3524_v48 }
 0xd26   : > { %v3527_v30 = vsel %vm1525_vm1, %v6609_v56, 0.0  ;;  %v6616_v26 = vadd.f32 %v6540_v15, %v3474_v41  ;;  %v3475_v22 = vmul.f32 %v6534_v53, %v3455_v59  ;;  %v3456_v5 = vmul.f32 %v4754_v62, %v6503_v43 }
 0xd27   : > { %v4756_v35 = vpop.eup %4755  ;;  %3528 = vadd.xlane.f32.xlu1 %v3527_v30 }
 0xd28   : > { %v3530_v38 = vsel %vm1525_vm1, %v6616_v26, 0.0  ;;  %v6623_v36 = vadd.f32 %v6540_v15, %v3475_v22  ;;  %v3476_v61 = vmul.f32 %v6534_v53, %v3456_v5  ;;  %v3457_v32 = vmul.f32 %v4756_v35, %v6509_v24 }
 0xd29   : > { %v4758_v8 = vpop.eup %4757  ;;  %3531 = vadd.xlane.f32.xlu0 %v3530_v38 }
 0xd2a   : > { %v3533_v55 = vsel %vm1525_vm1, %v6623_v36, 0.0  ;;  %v6630_v17 = vadd.f32 %v6540_v15, %v3476_v61  ;;  %v3477_v43 = vmul.f32 %v6534_v53, %v3457_v32  ;;  %v3458_v49 = vmul.f32 %v4758_v8, %v6515_v54 }
 0xd2b   : > { %v4760_v11 = vpop.eup %4759  ;;  %3534 = vadd.xlane.f32.xlu1 %v3533_v55  ;;  %v4895_v8 = vmov 0.0  }
 0xd2c   : > { %v3536_v46 = vsel %vm1525_vm1, %v6630_v17, 0.0  ;;  %v6637_v2 = vadd.f32 %v6540_v15, %v3477_v43  ;;  %v3478_v24 = vmul.f32 %v6534_v53, %v3458_v49  ;;  %v3459_v12 = vmul.f32 %v4760_v11, %v6521_v60  ;;  %4428 = vmatprep.subr.bf16.mxu1 %v4895_v8  ;;  %4444 = vmatprep.mubr.msk.bf16.mxu1 %vm4896_vm2, %v4895_v8 }
 0xd2d   : > { %3537 = vadd.xlane.f32.xlu0 %v3536_v46 }
 0xd2e   : > { %v3539_v25 = vsel %vm1525_vm1, %v6637_v2, 0.0  ;;  %v6644_v34 = vadd.f32 %v6540_v15, %v3478_v24  ;;  %v3479_v54 = vmul.f32 %v6534_v53, %v3459_v12 }
 0xd2f   : > { %3540 = vadd.xlane.f32.xlu1 %v3539_v25 }
 0xd30   : > { %v3542_v33 = vsel %vm1525_vm1, %v6644_v34, 0.0  ;;  %v6650_v29 = vadd.f32 %v6540_v15, %v3479_v54 }
 0xd31   : > { %3543 = vadd.xlane.f32.xlu0 %v3542_v33 }
 0xd32   : > { %v3545_v60 = vsel %vm1525_vm1, %v6650_v29, 0.0 }
 0xd33   : > { %3546 = vadd.xlane.f32.xlu1 %v3545_v60 }
 0xd76   : > { %v3502_v20 = vpop.xlane.xlu0 %3501 }
 0xd77   : > { %v3548_v44 = vmul.f32 0.03125, %v3502_v20 }
 0xd78   : > { %v3505_v3 = vpop.xlane.xlu1 %3504 }
 0xd79   : > { %v6655_v18 = vsub.f32 %v6546_v7, %v3548_v44  ;;  %v3549_v51 = vmul.f32 0.03125, %v3505_v3 }
 0xd7a   : > { %v3508_v53 = vpop.xlane.xlu0 %3507 }
 0xd7b   : > { %v6658_v27 = vsub.f32 %v6553_v45, %v3549_v51  ;;  %v3550_v50 = vmul.f32 0.03125, %v3508_v53  ;;  %v3580_v15 = vmul.f32 %v6655_v18, %v6655_v18 }
 0xd7c   : > { %v3511_v63 = vpop.xlane.xlu1 %3510 }
 0xd7d   : > { %v6663_v23 = vsub.f32 %v6560_v58, %v3550_v50  ;;  %v3551_v14 = vmul.f32 0.03125, %v3511_v63  ;;  %v3596_v52 = vsel %vm1525_vm1, %v3580_v15, 0.0  ;;  %v3581_v7 = vmul.f32 %v6658_v27, %v6658_v27 }
 0xd7e   : > { %3597 = vadd.xlane.f32.xlu0 %v3596_v52  ;;  %v3514_v16 = vpop.xlane.xlu0 %3513 }
 0xd7f   : > { %v6669_v4 = vsub.f32 %v6567_v6, %v3551_v14  ;;  %v3552_v45 = vmul.f32 0.03125, %v3514_v16  ;;  %v3599_v0 = vsel %vm1525_vm1, %v3581_v7, 0.0  ;;  %v3582_v40 = vmul.f32 %v6663_v23, %v6663_v23 }
 0xd80   : > { %3600 = vadd.xlane.f32.xlu1 %v3599_v0  ;;  %v3517_v58 = vpop.xlane.xlu1 %3516 }
 0xd81   : > { %v6675_v31 = vsub.f32 %v6574_v37, %v3552_v45  ;;  %v3553_v39 = vmul.f32 0.03125, %v3517_v58  ;;  %v3602_v47 = vsel %vm1525_vm1, %v3582_v40, 0.0  ;;  %v3583_v57 = vmul.f32 %v6669_v4, %v6669_v4 }
 0xd82   : > { %3603 = vadd.xlane.f32.xlu0 %v3602_v47  ;;  %v3520_v6 = vpop.xlane.xlu0 %3519 }
 0xd83   : > { %v6681_v21 = vsub.f32 %v6581_v19, %v3553_v39  ;;  %v3554_v48 = vmul.f32 0.03125, %v3520_v6  ;;  %v3605_v41 = vsel %vm1525_vm1, %v3583_v57, 0.0  ;;  %v3584_v59 = vmul.f32 %v6675_v31, %v6675_v31 }
 0xd84   : > { %3606 = vadd.xlane.f32.xlu1 %v3605_v41  ;;  %v3523_v37 = vpop.xlane.xlu1 %3522  ;;  %v4897_v41 = vmov 0  }
 0xd85   : > { %v6687_v62 = vsub.f32 %v6588_v42, %v3554_v48  ;;  %v3555_v30 = vmul.f32 0.03125, %v3523_v37  ;;  %v3608_v22 = vsel %vm1525_vm1, %v3584_v59, 0.0  ;;  %v3585_v5 = vmul.f32 %v6681_v21, %v6681_v21  ;;  %4522 = vset.pattern.permute.xlu0 %v4897_v41 }
 0xd86   : > { %3609 = vadd.xlane.f32.xlu0 %v3608_v22 }
 0xd87   : > { %v6693_v19 = vsub.f32 %v6594_v28, %v3555_v30  ;;  %v3611_v35 = vsel %vm1525_vm1, %v3585_v5, 0.0  ;;  %v3586_v38 = vmul.f32 %v6687_v62, %v6687_v62 }
 0xd88   : > { %3612 = vadd.xlane.f32.xlu1 %v3611_v35 }
 0xd89   : > { %v3614_v61 = vsel %vm1525_vm1, %v3586_v38, 0.0  ;;  %v3587_v42 = vmul.f32 %v6693_v19, %v6693_v19 }
 0xd8a   : > { %3615 = vadd.xlane.f32.xlu0 %v3614_v61 }
 0xd8b   : > { %v3617_v32 = vsel %vm1525_vm1, %v3587_v42, 0.0 }
 0xd8c   : > { %3618 = vadd.xlane.f32.xlu1 %v3617_v32 }
 0xdb2   : > { %v3526_v28 = vpop.xlane.xlu0 %3525 }
 0xdb3   : > { %v3556_v55 = vmul.f32 0.03125, %v3526_v28 }
 0xdb4   : > { %v3529_v43 = vpop.xlane.xlu1 %3528 }
 0xdb5   : > { %v6704_v49 = vsub.f32 %v6602_v13, %v3556_v55  ;;  %v3557_v11 = vmul.f32 0.03125, %v3529_v43 }
 0xdb6   : > { %v3532_v46 = vpop.xlane.xlu0 %3531 }
 0xdb7   : > { %v6707_v24 = vsub.f32 %v6609_v56, %v3557_v11  ;;  %v3558_v12 = vmul.f32 0.03125, %v3532_v46  ;;  %v3588_v25 = vmul.f32 %v6704_v49, %v6704_v49 }
 0xdb8   : > { %v3535_v54 = vpop.xlane.xlu1 %3534 }
 0xdb9   : > { %v6712_v33 = vsub.f32 %v6616_v26, %v3558_v12  ;;  %v3559_v60 = vmul.f32 0.03125, %v3535_v54  ;;  %v3620_v20 = vsel %vm1525_vm1, %v3588_v25, 0.0  ;;  %v3589_v13 = vmul.f32 %v6707_v24, %v6707_v24 }
 0xdba   : > { %3621 = vadd.xlane.f32.xlu0 %v3620_v20  ;;  %v3538_v44 = vpop.xlane.xlu0 %3537 }
 0xdbb   : > { %v6718_v3 = vsub.f32 %v6623_v36, %v3559_v60  ;;  %v3560_v56 = vmul.f32 0.03125, %v3538_v44  ;;  %v3623_v51 = vsel %vm1525_vm1, %v3589_v13, 0.0  ;;  %v3590_v53 = vmul.f32 %v6712_v33, %v6712_v33 }
 0xdbc   : > { %3624 = vadd.xlane.f32.xlu1 %v3623_v51  ;;  %v3541_v26 = vpop.xlane.xlu1 %3540 }
 0xdbd   : > { %v6724_v50 = vsub.f32 %v6630_v17, %v3560_v56  ;;  %v3561_v15 = vmul.f32 0.03125, %v3541_v26  ;;  %v3626_v63 = vsel %vm1525_vm1, %v3590_v53, 0.0  ;;  %v3591_v14 = vmul.f32 %v6718_v3, %v6718_v3 }
 0xdbe   : > { %3627 = vadd.xlane.f32.xlu0 %v3626_v63  ;;  %v3544_v36 = vpop.xlane.xlu0 %3543 }
 0xdbf   : > { %v6730_v52 = vsub.f32 %v6637_v2, %v3561_v15  ;;  %v3562_v7 = vmul.f32 0.03125, %v3544_v36  ;;  %v3629_v16 = vsel %vm1525_vm1, %v3591_v14, 0.0  ;;  %v3592_v45 = vmul.f32 %v6724_v50, %v6724_v50 }
 0xdc0   : > { %3630 = vadd.xlane.f32.xlu1 %v3629_v16  ;;  %v3547_v17 = vpop.xlane.xlu1 %3546 }
 0xdc1   : > { %v6736_v0 = vsub.f32 %v6644_v34, %v3562_v7  ;;  %v3563_v40 = vmul.f32 0.03125, %v3547_v17  ;;  %v3632_v58 = vsel %vm1525_vm1, %v3592_v45, 0.0  ;;  %v3593_v39 = vmul.f32 %v6730_v52, %v6730_v52 }
 0xdc2   : > { %3633 = vadd.xlane.f32.xlu0 %v3632_v58 }
 0xdc3   : > { %v6742_v2 = vsub.f32 %v6650_v29, %v3563_v40  ;;  %v3635_v47 = vsel %vm1525_vm1, %v3593_v39, 0.0  ;;  %v3594_v57 = vmul.f32 %v6736_v0, %v6736_v0  ;;  %v3757_v29 = vld [vmem:[%s6935_s17] sm:$0x3] }
 0xdc4   : > { %3636 = vadd.xlane.f32.xlu1 %v3635_v47 }
 0xdc5   : > { %v3638_v6 = vsel %vm1525_vm1, %v3594_v57, 0.0  ;;  %v3595_v34 = vmul.f32 %v6742_v2, %v6742_v2 }
 0xdc6   : > { %3639 = vadd.xlane.f32.xlu0 %v3638_v6 }
 0xdc7   : > { %v3641_v48 = vsel %vm1525_vm1, %v3595_v34, 0.0 }
 0xdc8   : > { %3642 = vadd.xlane.f32.xlu1 %v3641_v48 }
 0xddc   : > { %3760 = vperm.xlu0 %4522, %v3757_v29  }
 0xe0b   : > { %v3598_v59 = vpop.xlane.xlu0 %3597 }
 0xe0c   : > { %v3644_v37 = vmul.f32 0.03125, %v3598_v59 }
 0xe0d   : > { %v3601_v30 = vpop.xlane.xlu1 %3600 }
 0xe0e   : > { %v3660_v22 = vadd.f32 1e-05, %v3644_v37  ;;  %v3645_v5 = vmul.f32 0.03125, %v3601_v30 }
 0xe0f   : > { %v3604_v35 = vpop.xlane.xlu0 %3603 }
 0xe10   : > { %4761 = vrsqrt.f32 %v3660_v22  ;;  %v3661_v38 = vadd.f32 1e-05, %v3645_v5  ;;  %v3646_v61 = vmul.f32 0.03125, %v3604_v35 }
 0xe11   : > { %v3607_v42 = vpop.xlane.xlu1 %3606 }
 0xe12   : > { %4763 = vrsqrt.f32 %v3661_v38  ;;  %v3662_v32 = vadd.f32 1e-05, %v3646_v61  ;;  %v3647_v28 = vmul.f32 0.03125, %v3607_v42 }
 0xe13   : > { %v3610_v55 = vpop.xlane.xlu0 %3609 }
 0xe14   : > { %4765 = vrsqrt.f32 %v3662_v32  ;;  %v3663_v43 = vadd.f32 1e-05, %v3647_v28  ;;  %v3648_v11 = vmul.f32 0.03125, %v3610_v55 }
 0xe15   : > { %v3613_v46 = vpop.xlane.xlu1 %3612 }
 0xe16   : > { %4767 = vrsqrt.f32 %v3663_v43  ;;  %v3664_v12 = vadd.f32 1e-05, %v3648_v11  ;;  %v3649_v25 = vmul.f32 0.03125, %v3613_v46 }
 0xe17   : > { %v3616_v54 = vpop.xlane.xlu0 %3615 }
 0xe18   : > { %v3665_v60 = vadd.f32 1e-05, %v3649_v25  ;;  %4769 = vrsqrt.f32 %v3664_v12  ;;  %v3650_v44 = vmul.f32 0.03125, %v3616_v54 }
 0xe19   : > { %v3619_v20 = vpop.xlane.xlu1 %3618 }
 0xe1a   : > { %v4762_v13 = vpop.eup %4761  ;;  %4771 = vrsqrt.f32 %v3665_v60  ;;  %v3651_v56 = vmul.f32 0.03125, %v3619_v20  ;;  %v3666_v36 = vadd.f32 1e-05, %v3650_v44 }
 0xe1b   : > { %v3692_v51 = vmul.f32 %v4762_v13, %v6655_v18 }
 0xe1c   : > { %v4764_v53 = vpop.eup %4763  ;;  %v3667_v26 = vadd.f32 1e-05, %v3651_v56 }
 0xe1d   : > { %v3693_v15 = vmul.f32 %v4764_v53, %v6658_v27  ;;  %v3712_v63 = vmul.f32 %v5087_v9, %v3692_v51 }
 0xe1e   : > { %v4766_v14 = vpop.eup %4765  ;;  %4773 = vrsqrt.f32 %v3667_v26 }
 0xe1f   : > { %v3713_v7 = vmul.f32 %v5087_v9, %v3693_v15  ;;  %v3694_v16 = vmul.f32 %v4766_v14, %v6663_v23  ;;  %v3732_v17 = vadd.f32 %v5091_v10, %v3712_v63  ;;  %4775 = vrsqrt.f32 %v3666_v36 }
 0xe20   : > { %v4768_v45 = vpop.eup %4767 }
 0xe21   : > { %v3733_v40 = vadd.f32 %v5091_v10, %v3713_v7  ;;  %v3695_v18 = vmul.f32 %v4768_v45, %v6669_v4  ;;  %v3714_v27 = vmul.f32 %v5087_v9, %v3694_v16 }
 0xe22   : > { %v4770_v58 = vpop.eup %4769 }
 0xe23   : > { %v3749_v39 = vpack.c.bf16 %v3733_v40, %v3732_v17  ;;  %v3715_v47 = vmul.f32 %v5087_v9, %v3695_v18  ;;  %v3734_v48 = vadd.f32 %v5091_v10, %v3714_v27  ;;  %v3696_v4 = vmul.f32 %v4770_v58, %v6675_v31 }
 0xe24   : > { %v4772_v57 = vpop.eup %4771 }
 0xe25   : > { %v3767_v6 = vsel %vm1525_vm1, %v3749_v39, 0  ;;  %v3735_v23 = vadd.f32 %v5091_v10, %v3715_v47  ;;  %v3697_v34 = vmul.f32 %v4772_v57, %v6681_v21  ;;  %v3716_v37 = vmul.f32 %v5087_v9, %v3696_v4 }
 0xe26   : > { %4429 = vmatpush3.bf16.xpose.msra.mxu1 %v3767_v6 }
 0xe27   : > { %4430 = vmatprep.subr.bf16.mxu1 %v4895_v8  ;;  %v3750_v29 = vpack.c.bf16 %v3735_v23, %v3734_v48  ;;  %v3717_v41 = vmul.f32 %v5087_v9, %v3697_v34  ;;  %v3736_v35 = vadd.f32 %v5091_v10, %v3716_v37 }
 0xe28   : > { %v4774_v59 = vpop.eup %4773 }
 0xe29   : > { %v4776_v30 = vpop.eup %4775  ;;  %v3770_v22 = vsel %vm1525_vm1, %v3750_v29, 0  ;;  %v3737_v5 = vadd.f32 %v5091_v10, %v3717_v41  ;;  %v3699_v21 = vmul.f32 %v4774_v59, %v6693_v19 }
 0xe2a   : > { %v3698_v31 = vmul.f32 %v4776_v30, %v6687_v62 }
 0xe2b   : > { %v3751_v38 = vpack.c.bf16 %v3737_v5, %v3736_v35  ;;  %v3719_v61 = vmul.f32 %v5087_v9, %v3699_v21 }
 0xe2c   : > { %v3718_v42 = vmul.f32 %v5087_v9, %v3698_v31 }
 0xe2d   : > { %v3773_v32 = vsel %vm1525_vm1, %v3751_v38, 0  ;;  %v3739_v28 = vadd.f32 %v5091_v10, %v3719_v61 }
 0xe2e   : > { %4431 = vmatpush3.bf16.xpose.msra.mxu1 %v3770_v22  ;;  %v3738_v19 = vadd.f32 %v5091_v10, %v3718_v42 }
 0xe2f   : > { %4432 = vmatprep.subr.bf16.mxu1 %v4895_v8 }
 0xe30   : > { %v3752_v55 = vpack.c.bf16 %v3739_v28, %v3738_v19 }
 0xe32   : > { %v3776_v43 = vsel %vm1525_vm1, %v3752_v55, 0 }
 0xe36   : > { %4433 = vmatpush3.bf16.xpose.msra.mxu1 %v3773_v32 }
 0xe37   : > { %4434 = vmatprep.subr.bf16.mxu1 %v4895_v8 }
 0xe3e   : > { %4435 = vmatpush3.bf16.xpose.msra.mxu1 %v3776_v43 }
 0xe3f   : > { %4436 = vmatprep.subr.bf16.mxu1 %v4895_v8 }
 0xe47   : > { %v3622_v62 = vpop.xlane.xlu0 %3621 }
 0xe48   : > { %v3652_v11 = vmul.f32 0.03125, %v3622_v62 }
 0xe49   : > { %v3625_v46 = vpop.xlane.xlu1 %3624 }
 0xe4a   : > { %v3668_v12 = vadd.f32 1e-05, %v3652_v11  ;;  %v3653_v25 = vmul.f32 0.03125, %v3625_v46 }
 0xe4b   : > { %v3628_v54 = vpop.xlane.xlu0 %3627 }
 0xe4c   : > { %4777 = vrsqrt.f32 %v3668_v12  ;;  %v3669_v60 = vadd.f32 1e-05, %v3653_v25  ;;  %v3654_v20 = vmul.f32 0.03125, %v3628_v54  ;;  %v3748_v25 = vld [vmem:[%s6934_s16] sm:$0x1] }
 0xe4d   : > { %v3631_v13 = vpop.xlane.xlu1 %3630 }
 0xe4e   : > { %4779 = vrsqrt.f32 %v3669_v60  ;;  %v3670_v44 = vadd.f32 1e-05, %v3654_v20  ;;  %v3655_v56 = vmul.f32 0.03125, %v3631_v13  ;;  %v4796_v13 = vld [vmem:[%s5760_s26] sm:$0x1]  ;;  %s6942_s26 = scalar_lea.vmem [#allocation4], %s6823_s28 }
 0xe4f   : > { %v3634_v51 = vpop.xlane.xlu0 %3633  ;;  %vm3830_vm3 = vcmp.gt.f32.partialorder %v4796_v13, 0.5  ;;  %s6842_s6 = sshll.u32 %s6942_s26, 4  ;;  %s6874_s6 = int_to_ptr.vmem [resolvable:$true] %s6842_s6 }
 0xe50   : > { %4781 = vrsqrt.f32 %v3670_v44  ;;  %v3671_v53 = vadd.f32 1e-05, %v3655_v56  ;;  %v3656_v26 = vmul.f32 0.03125, %v3634_v51 }
 0xe51   : > { %v3637_v15 = vpop.xlane.xlu1 %3636 }
 0xe52   : > { %4783 = vrsqrt.f32 %v3671_v53  ;;  %v3672_v63 = vadd.f32 1e-05, %v3656_v26  ;;  %v3657_v14 = vmul.f32 0.03125, %v3637_v15 }
 0xe53   : > { %v3640_v36 = vpop.xlane.xlu0 %3639 }
 0xe54   : > { %v3673_v7 = vadd.f32 1e-05, %v3657_v14  ;;  %4785 = vrsqrt.f32 %v3672_v63  ;;  %v3658_v17 = vmul.f32 0.03125, %v3640_v36 }
 0xe55   : > { %v3643_v16 = vpop.xlane.xlu1 %3642 }
 0xe56   : > { %v4778_v45 = vpop.eup %4777  ;;  %4787 = vrsqrt.f32 %v3673_v7  ;;  %v3659_v40 = vmul.f32 0.03125, %v3643_v16  ;;  %v3674_v6 = vadd.f32 1e-05, %v3658_v17 }
 0xe57   : > { %v3700_v18 = vmul.f32 %v4778_v45, %v6704_v49 }
 0xe58   : > { %v4780_v58 = vpop.eup %4779  ;;  %v3675_v39 = vadd.f32 1e-05, %v3659_v40 }
 0xe59   : > { %v3701_v27 = vmul.f32 %v4780_v58, %v6707_v24  ;;  %v3720_v47 = vmul.f32 %v5087_v9, %v3700_v18 }
 0xe5a   : > { %v4782_v57 = vpop.eup %4781  ;;  %4789 = vrsqrt.f32 %v3675_v39 }
 0xe5b   : > { %v3721_v23 = vmul.f32 %v5087_v9, %v3701_v27  ;;  %v3702_v34 = vmul.f32 %v4782_v57, %v6712_v33  ;;  %v3740_v4 = vadd.f32 %v5091_v10, %v3720_v47  ;;  %4791 = vrsqrt.f32 %v3674_v6 }
 0xe5c   : > { %v4784_v48 = vpop.eup %4783 }
 0xe5d   : > { %v3741_v29 = vadd.f32 %v5091_v10, %v3721_v23  ;;  %v3703_v49 = vmul.f32 %v4784_v48, %v6718_v3  ;;  %v3722_v24 = vmul.f32 %v5087_v9, %v3702_v34 }
 0xe5e   : > { %v4786_v41 = vpop.eup %4785 }
 0xe5f   : > { %v3753_v59 = vpack.c.bf16 %v3741_v29, %v3740_v4  ;;  %v3723_v37 = vmul.f32 %v5087_v9, %v3703_v49  ;;  %v3742_v21 = vadd.f32 %v5091_v10, %v3722_v24  ;;  %v3704_v3 = vmul.f32 %v4786_v41, %v6724_v50 }
 0xe60   : > { %v4788_v30 = vpop.eup %4787 }
 0xe61   : > { %v3779_v22 = vsel %vm1525_vm1, %v3753_v59, 0  ;;  %v3743_v33 = vadd.f32 %v5091_v10, %v3723_v37  ;;  %v3705_v5 = vmul.f32 %v4788_v30, %v6730_v52  ;;  %v3724_v61 = vmul.f32 %v5087_v9, %v3704_v3 }
 0xe62   : > { %4437 = vmatpush3.bf16.xpose.msra.mxu1 %v3779_v22 }
 0xe63   : > { %4438 = vmatprep.subr.bf16.mxu1 %v4895_v8  ;;  %v3754_v35 = vpack.c.bf16 %v3743_v33, %v3742_v21  ;;  %v3725_v31 = vmul.f32 %v5087_v9, %v3705_v5  ;;  %v3744_v19 = vadd.f32 %v5091_v10, %v3724_v61 }
 0xe64   : > { %v4790_v38 = vpop.eup %4789 }
 0xe65   : > { %v4792_v42 = vpop.eup %4791  ;;  %v3782_v32 = vsel %vm1525_vm1, %v3754_v35, 0  ;;  %v3745_v28 = vadd.f32 %v5091_v10, %v3725_v31  ;;  %v3707_v52 = vmul.f32 %v4790_v38, %v6742_v2 }
 0xe66   : > { %v3706_v50 = vmul.f32 %v4792_v42, %v6736_v0 }
 0xe67   : > { %v3755_v55 = vpack.c.bf16 %v3745_v28, %v3744_v19  ;;  %v3727_v43 = vmul.f32 %v5087_v9, %v3707_v52 }
 0xe68   : > { %v3726_v62 = vmul.f32 %v5087_v9, %v3706_v50  ;;  %v4898_v9 = vmov 1966171168  }
 0xe69   : > { %v3785_v11 = vsel %vm1525_vm1, %v3755_v55, 0  ;;  %v3747_v46 = vadd.f32 %v5091_v10, %v3727_v43  ;;  %v3835_v54 = vunpack.c.l.s4 %v4898_v9 }
 0xe6a   : > { %4439 = vmatpush3.bf16.xpose.msra.mxu1 %v3782_v32  ;;  %v3746_v2 = vadd.f32 %v5091_v10, %v3726_v62 }
 0xe6b   : > { %4440 = vmatprep.subr.bf16.mxu1 %v4895_v8  ;;  %v3836_v60 = vunpack.c.0.s8 %v3835_v54 }
 0xe6c   : > { %v3756_v12 = vpack.c.bf16 %v3747_v46, %v3746_v2 }
 0xe6d   : > { %v3839_v10 = vsub.s32 %v3836_v60, %v5059_v1 }
 0xe6e   : > { %v3788_v0 = vsel %vm1525_vm1, %v3756_v12, 0 }
 0xe72   : > { %4441 = vmatpush3.bf16.xpose.msra.mxu1 %v3785_v11 }
 0xe73   : > { %4442 = vmatprep.subr.bf16.mxu1 %v4895_v8  ;;  %v3761_v8 = vpop.permute.xlu0 %3760 }
 0xe7a   : > { %4443 = vmatpush3.bf16.xpose.msra.mxu1 %v3788_v0 }
 0xe81   : > { %4445 = vmatmul.mubr.msk.bf16.vlgmr.msra.gmra.mrb[64].mxu1 %vm1525_vm1, %v3748_v25 }
 0xf54   : > { %v3824_v20 = vpop.f32.mrb[64].mxu1 }
 0xf55   : > { %v3825_v44 = vadd.f32 %v3824_v20, %v3761_v8  ;;  %v4446_v56 = vpop.f32.mrb[65].mxu1 }
 0xf56   : > { %v3827_v51 = vpop.f32.mrb[66].mxu1 }
 0xf57   : > { %v3831_v1 = vsel %vm3830_vm3, -inf, %v3825_v44  ;;  %v3840_v53 = vrot.slane %v3825_v44, %v3839_v10  ;;  %v4447_v26 = vpop.f32.mrb[67].mxu1 }
 0xf58   : > { %3832 = vst [vmem:[%s651_s8] sm:$0x1] %v3831_v1 }
 0xf59   : > { %v3841_v15 = vcombine.high %v3840_v53, %v3840_v53 }
 0xf5a   : > { %4810 = shalt.err (!%p4807_p3)
}
 0xf5b   : > { %s4811_s8 = scalar_lea.hbm %s6834_s5, 16  ;;  %s4815_s0 = scalar_lea.hbm %s6937_s19, 32 }
 0xf5c   : > { %p4812_p4 = scmp.ne.s32.totalorder %s6834_s5, %s4811_s8  ;;  %p4816_p9 = scmp.lt.u32.totalorder %s6834_s5, %s6937_s19 }
 0xf5d   : > { %p4817_p10 = scmp.lt.u32.totalorder %s4815_s0, %s4811_s8  ;;  %p4819_p12 = scmp.lt.u32.totalorder %s4811_s8, %s6834_s5 }
 0xf5e   : > { %p4813_p7 = pnand %p4812_p4, %p5044_p5 }
 0xf5f   : > { %p4818_p11 = por %p4817_p10, %p4816_p9 }
 0xf60   : > { %p4814_p8 = pneg %p4813_p7 }
 0xf61   : > { %p4820_p13 = por %p4819_p12, %p4818_p11 }
 0xf63   : > { %p4821_p0 = pnand %p4820_p13, %p4814_p8 }
 0xf65   : > { %4824 = shalt.err (!%p4821_p0)
}
 0xf66   : > { %4472 = dma.vmem_to_hbm [thread:$0]  (%p5044_p5), %s6836_s25, 16, %s6834_s5, %s3853_s21   ;;  %v3848_v63 = vrot.slane %v3841_v15, %v3839_v10 }
 0xf67   : > { %s6969_s9 = sshll.u32 %s5027_s2, 4  ;;  %s6970_s30 = scalar_lea.vmem [#allocation4], %s6823_s28 }
 0xf68   : > { %s6871_s26 = scalar_lea.hbm %s6938_s20, %s6969_s9  ;;  %v3850_v14 = vsel %vm3830_vm3, -inf, %v3848_v63  ;;  %s3857_s8 = scalar_lea.sflag [#allocation5], %s6823_s28 }
 0xf69   : > { %3851 = vst [vmem:[%s6970_s30] sm:$0x1] %v3850_v14  ;;  %s4825_s0 = scalar_lea.vmem %s6874_s6, 16  ;;  %s4900_s2 = smov [#allocation4]  }
 0xf6a   : > { %p4826_p1 = scmp.ne.s32.totalorder %s6874_s6, %s4825_s0  ;;  %s4829_s25 = sshll.u32 %s4900_s2, 4  ;;  %s4830_s25 = int_to_ptr.vmem [resolvable:$false] %s4829_s25 }
 0xf6b   : > { %s4831_s5 = scalar_lea.vmem %s4830_s25, 32  ;;  %p4832_p4 = scmp.lt.s32.totalorder %s6874_s6, %s4830_s25 }
 0xf6c   : > { %p4827_p2 = pnand %p4826_p1, %p5044_p5  ;;  %p4833_p7 = scmp.lt.s32.totalorder %s4831_s5, %s4825_s0 }
 0xf6e   : > { %p4828_p3 = pneg %p4827_p2  ;;  %p4834_p8 = por %p4833_p7, %p4832_p4 }
 0xf70   : > { %p4835_p9 = pnand %p4834_p8, %p4828_p3 }
 0xf72   : > { %4838 = shalt.err (!%p4835_p9)
}
 0xf73   : > { %s4839_s28 = scalar_lea.hbm %s6871_s26, 16  ;;  %s4843_s9 = scalar_lea.hbm %s6938_s20, 32 }
 0xf74   : > { %p4840_p10 = scmp.ne.s32.totalorder %s6871_s26, %s4839_s28  ;;  %p4844_p13 = scmp.lt.u32.totalorder %s6871_s26, %s6938_s20 }
 0xf75   : > { %p4845_p0 = scmp.lt.u32.totalorder %s4843_s9, %s4839_s28  ;;  %p4847_p2 = scmp.lt.u32.totalorder %s4839_s28, %s6871_s26 }
 0xf76   : > { %p4841_p11 = pnand %p4840_p10, %p5044_p5 }
 0xf77   : > { %p4846_p1 = por %p4845_p0, %p4844_p13 }
 0xf78   : > { %p4842_p12 = pneg %p4841_p11 }
 0xf79   : > { %p4848_p3 = por %p4847_p2, %p4846_p1 }
 0xf7b   : > { %p4849_p4 = pnand %p4848_p3, %p4842_p12 }
 0xf7d   : > { %4852 = shalt.err (!%p4849_p4)
}
 0xf7e   : > { %4473 = dma.vmem_to_hbm [thread:$0]  (%p5044_p5), %s6874_s6, 16, %s6871_s26, %s3857_s8  }
 0xf7f PF: > { %p4483_p7 = scmp.ge.s32.totalorder %s4891_s24, 2  ;;  %s3894_s30 = sand.u32 1, %s4879_s1  }
 0xf80   : > { %s3895_s0 = scalar_lea.sflag [#allocation3], %s3894_s30 }
 0xf81   : > { %p4477_p8 = pnand %p4483_p7, %p5048_p6 }
 0xf83   : > { %4870 = dma.done.wait (!%p4477_p8), %s3895_s0, 16  }
 0xf84   : > { %4872 = vsyncadd (!%p4477_p8), %s3895_s0, 4294967280  ;;  %s3903_s2 = scalar_lea.sflag [#allocation5], %s3894_s30 }
 0xf85   : > { %4874 = dma.done.wait (!%p4477_p8), %s3903_s2, 16  }
 0xf86   : > { %4876 = vsyncadd (!%p4477_p8), %s3903_s2, 4294967280  ;;  %s6971_s4 = sld [smem:[#allocation8_spill]]  ;;  %p34_p5 = scmp.ge.s32.totalorder %s5031_s3, 4  }
 0xf87   : > { %s6972_s1 = smov %s4883_s22  ;;  %s6973_s22 = smov %s4887_s23 }
 0xf88   : > { %s6975_s24 = smov %s5031_s3  ;;  %36 = sbr.rel (!%p34_p5) target bundleno = 17 (0x11), region = 154 }
 0xf8c   : > { %s6974_s23 = smov %s6971_s4 }
 0xf8f   :  { %3907 = vsyncpa [#allocation3], 1 }
 0xf90   :  { %3909 = vsyncpa [#allocation3 + $0x1], 1 }
 0xf91   :  { %3910 = vsyncpa [#allocation5], 1 }
 0xf92   :  { %3912 = vsyncpa [#allocation5 + $0x1], 1 }

</bundles_post_ra>
